<compile_context>
chip_gen: v7x
topology: tpu7x:2x2x1
jax: 0.10.0
libtpu: 0.0.40
codegen_flags: <defaults>
</compile_context>

<pallas_src>
import numpy as np
import jax
import jax.numpy as jnp
from jax import lax
from jax.experimental import pallas as pl
from jax.experimental.pallas import tpu as pltpu

NEG_SLOPE = 0.01  # nn.LeakyReLU default


def _leaky(v):
    return jnp.where(v > 0, v, NEG_SLOPE * v)


def _round_up(v, m):
    return -(-v // m) * m


# ------------------------------- forward pass -------------------------------

def enc_block_forward(x_ncdhw, params, scale_factor):
    W1, b1, W2, b2, Ws, bs = params                 # conv weights in DHWIO layout
    N, C0, D, H, W = x_ncdhw.shape
    C1 = W1.shape[-1]
    C2 = W2.shape[-1]
    assert scale_factor == 0.5 and D % 2 == 0 and H % 2 == 0 and W % 2 == 0
    # TODO(synk): general (non-0.5) 'area' scale factors need ragged pooling windows.

    S = D * H * W
    Dq, Hq, Wq = D // 2, H // 2, W // 2
    S2 = Dq * Hq * Wq
    HW = H * W
    PAD = HW + W + 1                                # max |flat offset| of any 3x3x3 tap
    K1 = _round_up(27 * C0, 128)                    # padded reduction dim, conv1
    K2 = _round_up(27 * C1 + C0, 128)               # padded reduction dim, conv2 + fused skip

    # ---------------- host-side prep (cheap, O(S)) ----------------
    # NCDHW is already channel-first with (d,h,w) row-major -> flat layout needs no transpose.
    x_flat = x_ncdhw.reshape(N, C0, S).astype(jnp.float32)
    x_pad = jnp.pad(x_flat, ((0, 0), (0, 0), (PAD, PAD))).astype(jnp.bfloat16)

    # Boundary-validity mask per 3x3x3 tap (zeros h/w wrap-around of the flat shift;
    # the d direction is handled by the flat zero padding itself).  0/1 -> exact in bf16.
    idx = np.arange(S)
    d_i, h_i, w_i = idx // HW, (idx // W) % H, idx % W
    tap_mask = np.zeros((27, S), np.float32)
    t = 0
    for kd in range(3):
        for kh in range(3):
            for kw in range(3):
                od, oh, ow = kd - 1, kh - 1, kw - 1
                ok = ((d_i + od >= 0) & (d_i + od < D) &
                      (h_i + oh >= 0) & (h_i + oh < H) &
                      (w_i + ow >= 0) & (w_i + ow < W))
                tap_mask[t] = ok
                t += 1
    tap_mask = jnp.asarray(tap_mask, jnp.bfloat16)

    # 'area' 0.5-downsample as one MXU dot: pooled[C2,S2] = y[C2,S] @ P[S,S2], P sparse with
    # eight 0.125 entries per column (0.125 is exact in bf16).  Pooling is linear, so the skip
    # branch and the conv2 bias fold through it for free.
    # TODO(synk): for large volumes, block the spatial axis in the grid (2-voxel halo) and use a
    # per-block pooling matrix instead of this O(S*S2) dense one.
    j_of_i = (d_i // 2) * (Hq * Wq) + (h_i // 2) * Wq + (w_i // 2)
    pool_mat = np.zeros((S, S2), np.float32)
    pool_mat[np.arange(S), j_of_i] = 0.125
    pool_mat = jnp.asarray(pool_mat, jnp.bfloat16)

    # Weights as [Cout, (kd,kh,kw,ci)], skip conv folded into W2, K zero-padded, bf16 on the MXU.
    W1m = jnp.transpose(W1, (4, 0, 1, 2, 3)).reshape(C1, 27 * C0)
    W1p = jnp.zeros((C1, K1), jnp.float32).at[:, :27 * C0].set(W1m).astype(jnp.bfloat16)
    W2m = jnp.transpose(W2, (4, 0, 1, 2, 3)).reshape(C2, 27 * C1)
    Wsm = jnp.transpose(Ws.reshape(C0, C2))         # (C2, C0)
    W2f = (jnp.zeros((C2, K2), jnp.float32)
           .at[:, :27 * C1].set(W2m)
           .at[:, 27 * C1:27 * C1 + C0].set(Wsm)).astype(jnp.bfloat16)
    b1c = b1.reshape(C1, 1).astype(jnp.float32)
    b2c = (b2 + bs).reshape(C2, 1).astype(jnp.float32)

    offs = [(kd - 1) * HW + (kh - 1) * W + (kw - 1)
            for kd in range(3) for kh in range(3) for kw in range(3)]

    # ---------------- fused kernel: conv1 + conv2 + skip + area pooling ----------------
    def kernel(x_ref, m_ref, w1_ref, b1_ref, w2_ref, b2_ref, p_ref, o_ref):
        xp = x_ref[0]                               # (C0, S + 2*PAD) bf16, flat zero-padded x
        mask = m_ref[...]                           # (27, S) bf16
        xa = _leaky(xp)                             # LeakyReLU once, before patch extraction

        def build_cols(src, cin, kdim, extra=None):
            # src: (cin, S + 2*PAD) flat, zero-padded bf16 activations -> (kdim, S) cols block
            slabs = [src[:, PAD + off: PAD + off + S] * mask[i:i + 1, :]
                     for i, off in enumerate(offs)]
            rows = 27 * cin
            if extra is not None:
                slabs.append(extra)
                rows += extra.shape[0]
            if kdim > rows:
                slabs.append(jnp.zeros((kdim - rows, S), src.dtype))
            return jnp.concatenate(slabs, axis=0)

        # conv1 (3x3x3, C0 -> C1): fused im2col in VMEM + one lane-dense MXU dot
        cols1 = build_cols(xa, C0, K1)                                   # (K1, S) bf16
        h1 = jnp.dot(w1_ref[...], cols1,
                     preferred_element_type=jnp.float32) + b1_ref[...]
        h1 = _leaky(h1).astype(jnp.bfloat16)                             # (C1, S), VMEM only

        # conv2 (3x3x3, C1 -> C2) with the 1x1x1 skip conv fused into the same dot
        zp = jnp.zeros((C1, PAD), jnp.bfloat16)
        h1p = jnp.concatenate([zp, h1, zp], axis=1)                      # (C1, S + 2*PAD)
        cols2 = build_cols(h1p, C1, K2, extra=xp[:, PAD:PAD + S])        # (K2, S) bf16
        s = jnp.dot(w2_ref[...], cols2,
                    preferred_element_type=jnp.float32)                  # (C2, S) = conv2 + skip

        # fused 'area' 0.5 downsample: one lane-dense dot with the sparse averaging matrix,
        # biases (conv2 + skip) added on the pooled (C2, S2) tile.
        pooled = jnp.dot(s.astype(jnp.bfloat16), p_ref[...],
                         preferred_element_type=jnp.float32)             # (C2, S2)
        o_ref[0] = (pooled + b2_ref[...]).astype(o_ref.dtype)

    out_flat = pl.pallas_call(
        kernel,
        out_shape=jax.ShapeDtypeStruct((N, C2, S2), jnp.float32),
        grid=(N,),
        in_specs=[
            pl.BlockSpec((1, C0, S + 2 * PAD), lambda n: (n, 0, 0)),
            pl.BlockSpec((27, S), lambda n: (0, 0)),
            pl.BlockSpec((C1, K1), lambda n: (0, 0)),
            pl.BlockSpec((C1, 1), lambda n: (0, 0)),
            pl.BlockSpec((C2, K2), lambda n: (0, 0)),
            pl.BlockSpec((C2, 1), lambda n: (0, 0)),
            pl.BlockSpec((S, S2), lambda n: (0, 0)),
        ],
        out_specs=pl.BlockSpec((1, C2, S2), lambda n: (n, 0, 0)),
        compiler_params=pltpu.CompilerParams(dimension_semantics=("parallel",)),
    )(x_pad, tap_mask, W1p, b1c, W2f, b2c, pool_mat)

    # [N, C2, S2] is already NCDHW order -> plain reshape, no transpose.
    return out_flat.reshape(N, C2, Dq, Hq, Wq)


# --------------------------- pure-JAX reference -----------------------------

def enc_block_reference(x_ncdhw, params, scale_factor):
    W1, b1, W2, b2, Ws, bs = params
    assert scale_factor == 0.5
    x = jnp.transpose(x_ncdhw, (0, 2, 3, 4, 1)).astype(jnp.float32)
    dn = ('NDHWC', 'DHWIO', 'NDHWC')
    h = _leaky(x)
    h = lax.conv_general_dilated(h, W1, (1, 1, 1), 'SAME', dimension_numbers=dn) + b1
    h = _leaky(h)
    y = lax.conv_general_dilated(h, W2, (1, 1, 1), 'SAME', dimension_numbers=dn) + b2
    z = lax.conv_general_dilated(x, Ws, (1, 1, 1), 'SAME', dimension_numbers=dn) + bs

    def pool(a):
        r = lax.reduce_window(a, 0.0, lax.add, (1, 2, 2, 2, 1), (1, 2, 2, 2, 1), 'VALID')
        return r / 8.0

    out = pool(y) + pool(z)
    return jnp.transpose(out, (0, 4, 1, 2, 3))


# ----------------------------------- main -----------------------------------

if __name__ == "__main__":
    key = jax.random.PRNGKey(0)
    kx, k1, k2, k3, k4, k5, k6 = jax.random.split(key, 7)

    N = 2
    channels = (4, 8, 8)      # (c0, c1, c2) as in EncBlock(channels, scale_factor)
    C0, C1, C2 = channels
    D = H = W = 8
    scale_factor = 0.5

    x = jax.random.normal(kx, (N, C0, D, H, W), jnp.float32)

    params = (
        jax.random.normal(k1, (3, 3, 3, C0, C1), jnp.float32) * 0.1,   # conv1 weight (DHWIO)
        jax.random.normal(k2, (C1,), jnp.float32) * 0.1,               # conv1 bias
        jax.random.normal(k3, (3, 3, 3, C1, C2), jnp.float32) * 0.1,   # conv2 weight (DHWIO)
        jax.random.normal(k4, (C2,), jnp.float32) * 0.1,               # conv2 bias
        jax.random.normal(k5, (1, 1, 1, C0, C2), jnp.float32) * 0.1,   # skip 1x1x1 weight
        jax.random.normal(k6, (C2,), jnp.float32) * 0.1,               # skip bias
    )

    out = enc_block_forward(x, params, scale_factor)
    out = jax.block_until_ready(out)

    ref = enc_block_reference(x, params, scale_factor)
    assert out.shape == (N, C2, D // 2, H // 2, W // 2), out.shape
    # bf16 MXU operands (f32 accumulation) -> looser tolerance than a pure-f32 pipeline.
    np.testing.assert_allclose(np.asarray(out), np.asarray(ref), atol=5e-2, rtol=5e-2)

    print("KERNEL_OK")
</pallas_src>

<mosaic_0001>
module attributes {stable_mosaic.version = 11 : i64} {
  func.func @kernel(%arg0: i32, %arg1: memref<1x4x658xbf16, #tpu.memory_space<vmem>>, %arg2: memref<27x512xbf16, #tpu.memory_space<vmem>>, %arg3: memref<8x128xbf16, #tpu.memory_space<vmem>>, %arg4: memref<8x1xf32, #tpu.memory_space<vmem>>, %arg5: memref<8x256xbf16, #tpu.memory_space<vmem>>, %arg6: memref<8x1xf32, #tpu.memory_space<vmem>>, %arg7: memref<512x64xbf16, #tpu.memory_space<vmem>>, %arg8: memref<1x8x64xf32, #tpu.memory_space<vmem>>) attributes {dimension_semantics = [#tpu.dimension_semantics<parallel>], iteration_bounds = array<i64: 2>, scalar_prefetch = 0 : i64, scratch_operands = 0 : i64, tpu.core_type = #tpu.core_type<tc>, window_params = [{transform_indices = @transform_0, window_bounds = array<i64: 1, 4, 658>}, {pipeline_mode = #tpu.pipeline_mode<synchronous>, transform_indices = @transform_1, window_bounds = array<i64: 27, 512>}, {pipeline_mode = #tpu.pipeline_mode<synchronous>, transform_indices = @transform_2, window_bounds = array<i64: 8, 128>}, {pipeline_mode = #tpu.pipeline_mode<synchronous>, transform_indices = @transform_3, window_bounds = array<i64: 8, 1>}, {pipeline_mode = #tpu.pipeline_mode<synchronous>, transform_indices = @transform_4, window_bounds = array<i64: 8, 256>}, {pipeline_mode = #tpu.pipeline_mode<synchronous>, transform_indices = @transform_5, window_bounds = array<i64: 8, 1>}, {pipeline_mode = #tpu.pipeline_mode<synchronous>, transform_indices = @transform_6, window_bounds = array<i64: 512, 64>}, {transform_indices = @transform_7, window_bounds = array<i64: 1, 8, 64>}]} {
    %c0 = arith.constant 0 : index
    %c0_0 = arith.constant 0 : index
    %c0_1 = arith.constant 0 : index
    %0 = vector.load %arg1[%c0, %c0_0, %c0_1] : memref<1x4x658xbf16, #tpu.memory_space<vmem>>, vector<1x4x658xbf16>
    %1 = vector.shape_cast %0 : vector<1x4x658xbf16> to vector<4x658xbf16>
    %c0_2 = arith.constant 0 : index
    %c0_3 = arith.constant 0 : index
    %2 = vector.load %arg2[%c0_2, %c0_3] : memref<27x512xbf16, #tpu.memory_space<vmem>>, vector<27x512xbf16>
    %cst = arith.constant 0.000000e+00 : bf16
    %3 = vector.broadcast %cst : bf16 to vector<4x658xbf16>
    %4 = arith.cmpf ogt, %1, %3 : vector<4x658xbf16>
    %cst_4 = arith.constant 1.000980e-02 : bf16
    %5 = vector.broadcast %cst_4 : bf16 to vector<4x658xbf16>
    %6 = arith.mulf %5, %1 : vector<4x658xbf16>
    %7 = arith.select %4, %1, %6 : vector<4x658xi1>, vector<4x658xbf16>
    %8 = vector.extract_strided_slice %7 {offsets = [0, 0], sizes = [4, 512], strides = [1, 1]} : vector<4x658xbf16> to vector<4x512xbf16>
    %9 = vector.extract_strided_slice %2 {offsets = [0, 0], sizes = [1, 512], strides = [1, 1]} : vector<27x512xbf16> to vector<1x512xbf16>
    %10 = vector.broadcast %9 : vector<1x512xbf16> to vector<4x512xbf16>
    %11 = arith.mulf %8, %10 : vector<4x512xbf16>
    %12 = vector.extract_strided_slice %7 {offsets = [0, 1], sizes = [4, 512], strides = [1, 1]} : vector<4x658xbf16> to vector<4x512xbf16>
    %13 = vector.extract_strided_slice %2 {offsets = [1, 0], sizes = [1, 512], strides = [1, 1]} : vector<27x512xbf16> to vector<1x512xbf16>
    %14 = vector.broadcast %13 : vector<1x512xbf16> to vector<4x512xbf16>
    %15 = arith.mulf %12, %14 : vector<4x512xbf16>
    %16 = vector.extract_strided_slice %7 {offsets = [0, 2], sizes = [4, 512], strides = [1, 1]} : vector<4x658xbf16> to vector<4x512xbf16>
    %17 = vector.extract_strided_slice %2 {offsets = [2, 0], sizes = [1, 512], strides = [1, 1]} : vector<27x512xbf16> to vector<1x512xbf16>
    %18 = vector.broadcast %17 : vector<1x512xbf16> to vector<4x512xbf16>
    %19 = arith.mulf %16, %18 : vector<4x512xbf16>
    %20 = vector.extract_strided_slice %7 {offsets = [0, 8], sizes = [4, 512], strides = [1, 1]} : vector<4x658xbf16> to vector<4x512xbf16>
    %21 = vector.extract_strided_slice %2 {offsets = [3, 0], sizes = [1, 512], strides = [1, 1]} : vector<27x512xbf16> to vector<1x512xbf16>
    %22 = vector.broadcast %21 : vector<1x512xbf16> to vector<4x512xbf16>
    %23 = arith.mulf %20, %22 : vector<4x512xbf16>
    %24 = vector.extract_strided_slice %7 {offsets = [0, 9], sizes = [4, 512], strides = [1, 1]} : vector<4x658xbf16> to vector<4x512xbf16>
    %25 = vector.extract_strided_slice %2 {offsets = [4, 0], sizes = [1, 512], strides = [1, 1]} : vector<27x512xbf16> to vector<1x512xbf16>
    %26 = vector.broadcast %25 : vector<1x512xbf16> to vector<4x512xbf16>
    %27 = arith.mulf %24, %26 : vector<4x512xbf16>
    %28 = vector.extract_strided_slice %7 {offsets = [0, 10], sizes = [4, 512], strides = [1, 1]} : vector<4x658xbf16> to vector<4x512xbf16>
    %29 = vector.extract_strided_slice %2 {offsets = [5, 0], sizes = [1, 512], strides = [1, 1]} : vector<27x512xbf16> to vector<1x512xbf16>
    %30 = vector.broadcast %29 : vector<1x512xbf16> to vector<4x512xbf16>
    %31 = arith.mulf %28, %30 : vector<4x512xbf16>
    %32 = vector.extract_strided_slice %7 {offsets = [0, 16], sizes = [4, 512], strides = [1, 1]} : vector<4x658xbf16> to vector<4x512xbf16>
    %33 = vector.extract_strided_slice %2 {offsets = [6, 0], sizes = [1, 512], strides = [1, 1]} : vector<27x512xbf16> to vector<1x512xbf16>
    %34 = vector.broadcast %33 : vector<1x512xbf16> to vector<4x512xbf16>
    %35 = arith.mulf %32, %34 : vector<4x512xbf16>
    %36 = vector.extract_strided_slice %7 {offsets = [0, 17], sizes = [4, 512], strides = [1, 1]} : vector<4x658xbf16> to vector<4x512xbf16>
    %37 = vector.extract_strided_slice %2 {offsets = [7, 0], sizes = [1, 512], strides = [1, 1]} : vector<27x512xbf16> to vector<1x512xbf16>
    %38 = vector.broadcast %37 : vector<1x512xbf16> to vector<4x512xbf16>
    %39 = arith.mulf %36, %38 : vector<4x512xbf16>
    %40 = vector.extract_strided_slice %7 {offsets = [0, 18], sizes = [4, 512], strides = [1, 1]} : vector<4x658xbf16> to vector<4x512xbf16>
    %41 = vector.extract_strided_slice %2 {offsets = [8, 0], sizes = [1, 512], strides = [1, 1]} : vector<27x512xbf16> to vector<1x512xbf16>
    %42 = vector.broadcast %41 : vector<1x512xbf16> to vector<4x512xbf16>
    %43 = arith.mulf %40, %42 : vector<4x512xbf16>
    %44 = vector.extract_strided_slice %7 {offsets = [0, 64], sizes = [4, 512], strides = [1, 1]} : vector<4x658xbf16> to vector<4x512xbf16>
    %45 = vector.extract_strided_slice %2 {offsets = [9, 0], sizes = [1, 512], strides = [1, 1]} : vector<27x512xbf16> to vector<1x512xbf16>
    %46 = vector.broadcast %45 : vector<1x512xbf16> to vector<4x512xbf16>
    %47 = arith.mulf %44, %46 : vector<4x512xbf16>
    %48 = vector.extract_strided_slice %7 {offsets = [0, 65], sizes = [4, 512], strides = [1, 1]} : vector<4x658xbf16> to vector<4x512xbf16>
    %49 = vector.extract_strided_slice %2 {offsets = [10, 0], sizes = [1, 512], strides = [1, 1]} : vector<27x512xbf16> to vector<1x512xbf16>
    %50 = vector.broadcast %49 : vector<1x512xbf16> to vector<4x512xbf16>
    %51 = arith.mulf %48, %50 : vector<4x512xbf16>
    %52 = vector.extract_strided_slice %7 {offsets = [0, 66], sizes = [4, 512], strides = [1, 1]} : vector<4x658xbf16> to vector<4x512xbf16>
    %53 = vector.extract_strided_slice %2 {offsets = [11, 0], sizes = [1, 512], strides = [1, 1]} : vector<27x512xbf16> to vector<1x512xbf16>
    %54 = vector.broadcast %53 : vector<1x512xbf16> to vector<4x512xbf16>
    %55 = arith.mulf %52, %54 : vector<4x512xbf16>
    %56 = vector.extract_strided_slice %7 {offsets = [0, 72], sizes = [4, 512], strides = [1, 1]} : vector<4x658xbf16> to vector<4x512xbf16>
    %57 = vector.extract_strided_slice %2 {offsets = [12, 0], sizes = [1, 512], strides = [1, 1]} : vector<27x512xbf16> to vector<1x512xbf16>
    %58 = vector.broadcast %57 : vector<1x512xbf16> to vector<4x512xbf16>
    %59 = arith.mulf %56, %58 : vector<4x512xbf16>
    %60 = vector.extract_strided_slice %7 {offsets = [0, 73], sizes = [4, 512], strides = [1, 1]} : vector<4x658xbf16> to vector<4x512xbf16>
    %61 = vector.extract_strided_slice %2 {offsets = [13, 0], sizes = [1, 512], strides = [1, 1]} : vector<27x512xbf16> to vector<1x512xbf16>
    %62 = vector.broadcast %61 : vector<1x512xbf16> to vector<4x512xbf16>
    %63 = arith.mulf %60, %62 : vector<4x512xbf16>
    %64 = vector.extract_strided_slice %7 {offsets = [0, 74], sizes = [4, 512], strides = [1, 1]} : vector<4x658xbf16> to vector<4x512xbf16>
    %65 = vector.extract_strided_slice %2 {offsets = [14, 0], sizes = [1, 512], strides = [1, 1]} : vector<27x512xbf16> to vector<1x512xbf16>
    %66 = vector.broadcast %65 : vector<1x512xbf16> to vector<4x512xbf16>
    %67 = arith.mulf %64, %66 : vector<4x512xbf16>
    %68 = vector.extract_strided_slice %7 {offsets = [0, 80], sizes = [4, 512], strides = [1, 1]} : vector<4x658xbf16> to vector<4x512xbf16>
    %69 = vector.extract_strided_slice %2 {offsets = [15, 0], sizes = [1, 512], strides = [1, 1]} : vector<27x512xbf16> to vector<1x512xbf16>
    %70 = vector.broadcast %69 : vector<1x512xbf16> to vector<4x512xbf16>
    %71 = arith.mulf %68, %70 : vector<4x512xbf16>
    %72 = vector.extract_strided_slice %7 {offsets = [0, 81], sizes = [4, 512], strides = [1, 1]} : vector<4x658xbf16> to vector<4x512xbf16>
    %73 = vector.extract_strided_slice %2 {offsets = [16, 0], sizes = [1, 512], strides = [1, 1]} : vector<27x512xbf16> to vector<1x512xbf16>
    %74 = vector.broadcast %73 : vector<1x512xbf16> to vector<4x512xbf16>
    %75 = arith.mulf %72, %74 : vector<4x512xbf16>
    %76 = vector.extract_strided_slice %7 {offsets = [0, 82], sizes = [4, 512], strides = [1, 1]} : vector<4x658xbf16> to vector<4x512xbf16>
    %77 = vector.extract_strided_slice %2 {offsets = [17, 0], sizes = [1, 512], strides = [1, 1]} : vector<27x512xbf16> to vector<1x512xbf16>
    %78 = vector.broadcast %77 : vector<1x512xbf16> to vector<4x512xbf16>
    %79 = arith.mulf %76, %78 : vector<4x512xbf16>
    %80 = vector.extract_strided_slice %7 {offsets = [0, 128], sizes = [4, 512], strides = [1, 1]} : vector<4x658xbf16> to vector<4x512xbf16>
    %81 = vector.extract_strided_slice %2 {offsets = [18, 0], sizes = [1, 512], strides = [1, 1]} : vector<27x512xbf16> to vector<1x512xbf16>
    %82 = vector.broadcast %81 : vector<1x512xbf16> to vector<4x512xbf16>
    %83 = arith.mulf %80, %82 : vector<4x512xbf16>
    %84 = vector.extract_strided_slice %7 {offsets = [0, 129], sizes = [4, 512], strides = [1, 1]} : vector<4x658xbf16> to vector<4x512xbf16>
    %85 = vector.extract_strided_slice %2 {offsets = [19, 0], sizes = [1, 512], strides = [1, 1]} : vector<27x512xbf16> to vector<1x512xbf16>
    %86 = vector.broadcast %85 : vector<1x512xbf16> to vector<4x512xbf16>
    %87 = arith.mulf %84, %86 : vector<4x512xbf16>
    %88 = vector.extract_strided_slice %7 {offsets = [0, 130], sizes = [4, 512], strides = [1, 1]} : vector<4x658xbf16> to vector<4x512xbf16>
    %89 = vector.extract_strided_slice %2 {offsets = [20, 0], sizes = [1, 512], strides = [1, 1]} : vector<27x512xbf16> to vector<1x512xbf16>
    %90 = vector.broadcast %89 : vector<1x512xbf16> to vector<4x512xbf16>
    %91 = arith.mulf %88, %90 : vector<4x512xbf16>
    %92 = vector.extract_strided_slice %7 {offsets = [0, 136], sizes = [4, 512], strides = [1, 1]} : vector<4x658xbf16> to vector<4x512xbf16>
    %93 = vector.extract_strided_slice %2 {offsets = [21, 0], sizes = [1, 512], strides = [1, 1]} : vector<27x512xbf16> to vector<1x512xbf16>
    %94 = vector.broadcast %93 : vector<1x512xbf16> to vector<4x512xbf16>
    %95 = arith.mulf %92, %94 : vector<4x512xbf16>
    %96 = vector.extract_strided_slice %7 {offsets = [0, 137], sizes = [4, 512], strides = [1, 1]} : vector<4x658xbf16> to vector<4x512xbf16>
    %97 = vector.extract_strided_slice %2 {offsets = [22, 0], sizes = [1, 512], strides = [1, 1]} : vector<27x512xbf16> to vector<1x512xbf16>
    %98 = vector.broadcast %97 : vector<1x512xbf16> to vector<4x512xbf16>
    %99 = arith.mulf %96, %98 : vector<4x512xbf16>
    %100 = vector.extract_strided_slice %7 {offsets = [0, 138], sizes = [4, 512], strides = [1, 1]} : vector<4x658xbf16> to vector<4x512xbf16>
    %101 = vector.extract_strided_slice %2 {offsets = [23, 0], sizes = [1, 512], strides = [1, 1]} : vector<27x512xbf16> to vector<1x512xbf16>
    %102 = vector.broadcast %101 : vector<1x512xbf16> to vector<4x512xbf16>
    %103 = arith.mulf %100, %102 : vector<4x512xbf16>
    %104 = vector.extract_strided_slice %7 {offsets = [0, 144], sizes = [4, 512], strides = [1, 1]} : vector<4x658xbf16> to vector<4x512xbf16>
    %105 = vector.extract_strided_slice %2 {offsets = [24, 0], sizes = [1, 512], strides = [1, 1]} : vector<27x512xbf16> to vector<1x512xbf16>
    %106 = vector.broadcast %105 : vector<1x512xbf16> to vector<4x512xbf16>
    %107 = arith.mulf %104, %106 : vector<4x512xbf16>
    %108 = vector.extract_strided_slice %7 {offsets = [0, 145], sizes = [4, 512], strides = [1, 1]} : vector<4x658xbf16> to vector<4x512xbf16>
    %109 = vector.extract_strided_slice %2 {offsets = [25, 0], sizes = [1, 512], strides = [1, 1]} : vector<27x512xbf16> to vector<1x512xbf16>
    %110 = vector.broadcast %109 : vector<1x512xbf16> to vector<4x512xbf16>
    %111 = arith.mulf %108, %110 : vector<4x512xbf16>
    %112 = vector.extract_strided_slice %7 {offsets = [0, 146], sizes = [4, 512], strides = [1, 1]} : vector<4x658xbf16> to vector<4x512xbf16>
    %113 = vector.extract_strided_slice %2 {offsets = [26, 0], sizes = [1, 512], strides = [1, 1]} : vector<27x512xbf16> to vector<1x512xbf16>
    %114 = vector.broadcast %113 : vector<1x512xbf16> to vector<4x512xbf16>
    %115 = arith.mulf %112, %114 : vector<4x512xbf16>
    %cst_5 = arith.constant 0.000000e+00 : bf16
    %116 = vector.broadcast %cst_5 : bf16 to vector<20x512xbf16>
    %117 = tpu.concatenate %11, %15, %19, %23, %27, %31, %35, %39, %43, %47, %51, %55, %59, %63, %67, %71 in 0 : vector<4x512xbf16>, vector<4x512xbf16>, vector<4x512xbf16>, vector<4x512xbf16>, vector<4x512xbf16>, vector<4x512xbf16>, vector<4x512xbf16>, vector<4x512xbf16>, vector<4x512xbf16>, vector<4x512xbf16>, vector<4x512xbf16>, vector<4x512xbf16>, vector<4x512xbf16>, vector<4x512xbf16>, vector<4x512xbf16>, vector<4x512xbf16> -> vector<64x512xbf16>
    %118 = tpu.concatenate %75, %79, %83, %87, %91, %95, %99, %103, %107, %111, %115, %116 in 0 : vector<4x512xbf16>, vector<4x512xbf16>, vector<4x512xbf16>, vector<4x512xbf16>, vector<4x512xbf16>, vector<4x512xbf16>, vector<4x512xbf16>, vector<4x512xbf16>, vector<4x512xbf16>, vector<4x512xbf16>, vector<4x512xbf16>, vector<20x512xbf16> -> vector<64x512xbf16>
    %119 = tpu.concatenate %117, %118 in 0 : vector<64x512xbf16>, vector<64x512xbf16> -> vector<128x512xbf16>
    %c0_6 = arith.constant 0 : index
    %c0_7 = arith.constant 0 : index
    %120 = vector.load %arg3[%c0_6, %c0_7] : memref<8x128xbf16, #tpu.memory_space<vmem>>, vector<8x128xbf16>
    %cst_8 = arith.constant dense<0.000000e+00> : vector<8x512xf32>
    %121 = tpu.matmul %120, %119, %cst_8 {dimension_numbers = #tpu.dot_dimension_numbers<[1], [0], [0], [1], [0, 0, 1, 1], [], []>} : vector<8x128xbf16>, vector<128x512xbf16>, vector<8x512xf32> -> vector<8x512xf32>
    %c0_9 = arith.constant 0 : index
    %c0_10 = arith.constant 0 : index
    %122 = vector.load %arg4[%c0_9, %c0_10] : memref<8x1xf32, #tpu.memory_space<vmem>>, vector<8x1xf32>
    %123 = vector.broadcast %122 : vector<8x1xf32> to vector<8x512xf32>
    %124 = arith.addf %121, %123 : vector<8x512xf32>
    %cst_11 = arith.constant 0.000000e+00 : f32
    %125 = vector.broadcast %cst_11 : f32 to vector<8x512xf32>
    %126 = arith.cmpf ogt, %124, %125 : vector<8x512xf32>
    %cst_12 = arith.constant 0.00999999977 : f32
    %127 = vector.broadcast %cst_12 : f32 to vector<8x512xf32>
    %128 = arith.mulf %127, %124 : vector<8x512xf32>
    %129 = arith.select %126, %124, %128 : vector<8x512xi1>, vector<8x512xf32>
    %130 = arith.truncf %129 : vector<8x512xf32> to vector<8x512xbf16>
    %cst_13 = arith.constant 0.000000e+00 : bf16
    %131 = vector.broadcast %cst_13 : bf16 to vector<8x73xbf16>
    %132 = tpu.concatenate %131, %130, %131 in 1 : vector<8x73xbf16>, vector<8x512xbf16>, vector<8x73xbf16> -> vector<8x658xbf16>
    %133 = vector.extract_strided_slice %1 {offsets = [0, 73], sizes = [4, 512], strides = [1, 1]} : vector<4x658xbf16> to vector<4x512xbf16>
    %134 = vector.extract_strided_slice %132 {offsets = [0, 0], sizes = [8, 512], strides = [1, 1]} : vector<8x658xbf16> to vector<8x512xbf16>
    %135 = vector.extract_strided_slice %2 {offsets = [0, 0], sizes = [1, 512], strides = [1, 1]} : vector<27x512xbf16> to vector<1x512xbf16>
    %136 = vector.broadcast %135 : vector<1x512xbf16> to vector<8x512xbf16>
    %137 = arith.mulf %134, %136 : vector<8x512xbf16>
    %138 = vector.extract_strided_slice %132 {offsets = [0, 1], sizes = [8, 512], strides = [1, 1]} : vector<8x658xbf16> to vector<8x512xbf16>
    %139 = vector.extract_strided_slice %2 {offsets = [1, 0], sizes = [1, 512], strides = [1, 1]} : vector<27x512xbf16> to vector<1x512xbf16>
    %140 = vector.broadcast %139 : vector<1x512xbf16> to vector<8x512xbf16>
    %141 = arith.mulf %138, %140 : vector<8x512xbf16>
    %142 = vector.extract_strided_slice %132 {offsets = [0, 2], sizes = [8, 512], strides = [1, 1]} : vector<8x658xbf16> to vector<8x512xbf16>
    %143 = vector.extract_strided_slice %2 {offsets = [2, 0], sizes = [1, 512], strides = [1, 1]} : vector<27x512xbf16> to vector<1x512xbf16>
    %144 = vector.broadcast %143 : vector<1x512xbf16> to vector<8x512xbf16>
    %145 = arith.mulf %142, %144 : vector<8x512xbf16>
    %146 = vector.extract_strided_slice %132 {offsets = [0, 8], sizes = [8, 512], strides = [1, 1]} : vector<8x658xbf16> to vector<8x512xbf16>
    %147 = vector.extract_strided_slice %2 {offsets = [3, 0], sizes = [1, 512], strides = [1, 1]} : vector<27x512xbf16> to vector<1x512xbf16>
    %148 = vector.broadcast %147 : vector<1x512xbf16> to vector<8x512xbf16>
    %149 = arith.mulf %146, %148 : vector<8x512xbf16>
    %150 = vector.extract_strided_slice %132 {offsets = [0, 9], sizes = [8, 512], strides = [1, 1]} : vector<8x658xbf16> to vector<8x512xbf16>
    %151 = vector.extract_strided_slice %2 {offsets = [4, 0], sizes = [1, 512], strides = [1, 1]} : vector<27x512xbf16> to vector<1x512xbf16>
    %152 = vector.broadcast %151 : vector<1x512xbf16> to vector<8x512xbf16>
    %153 = arith.mulf %150, %152 : vector<8x512xbf16>
    %154 = vector.extract_strided_slice %132 {offsets = [0, 10], sizes = [8, 512], strides = [1, 1]} : vector<8x658xbf16> to vector<8x512xbf16>
    %155 = vector.extract_strided_slice %2 {offsets = [5, 0], sizes = [1, 512], strides = [1, 1]} : vector<27x512xbf16> to vector<1x512xbf16>
    %156 = vector.broadcast %155 : vector<1x512xbf16> to vector<8x512xbf16>
    %157 = arith.mulf %154, %156 : vector<8x512xbf16>
    %158 = vector.extract_strided_slice %132 {offsets = [0, 16], sizes = [8, 512], strides = [1, 1]} : vector<8x658xbf16> to vector<8x512xbf16>
    %159 = vector.extract_strided_slice %2 {offsets = [6, 0], sizes = [1, 512], strides = [1, 1]} : vector<27x512xbf16> to vector<1x512xbf16>
    %160 = vector.broadcast %159 : vector<1x512xbf16> to vector<8x512xbf16>
    %161 = arith.mulf %158, %160 : vector<8x512xbf16>
    %162 = vector.extract_strided_slice %132 {offsets = [0, 17], sizes = [8, 512], strides = [1, 1]} : vector<8x658xbf16> to vector<8x512xbf16>
    %163 = vector.extract_strided_slice %2 {offsets = [7, 0], sizes = [1, 512], strides = [1, 1]} : vector<27x512xbf16> to vector<1x512xbf16>
    %164 = vector.broadcast %163 : vector<1x512xbf16> to vector<8x512xbf16>
    %165 = arith.mulf %162, %164 : vector<8x512xbf16>
    %166 = vector.extract_strided_slice %132 {offsets = [0, 18], sizes = [8, 512], strides = [1, 1]} : vector<8x658xbf16> to vector<8x512xbf16>
    %167 = vector.extract_strided_slice %2 {offsets = [8, 0], sizes = [1, 512], strides = [1, 1]} : vector<27x512xbf16> to vector<1x512xbf16>
    %168 = vector.broadcast %167 : vector<1x512xbf16> to vector<8x512xbf16>
    %169 = arith.mulf %166, %168 : vector<8x512xbf16>
    %170 = vector.extract_strided_slice %132 {offsets = [0, 64], sizes = [8, 512], strides = [1, 1]} : vector<8x658xbf16> to vector<8x512xbf16>
    %171 = vector.extract_strided_slice %2 {offsets = [9, 0], sizes = [1, 512], strides = [1, 1]} : vector<27x512xbf16> to vector<1x512xbf16>
    %172 = vector.broadcast %171 : vector<1x512xbf16> to vector<8x512xbf16>
    %173 = arith.mulf %170, %172 : vector<8x512xbf16>
    %174 = vector.extract_strided_slice %132 {offsets = [0, 65], sizes = [8, 512], strides = [1, 1]} : vector<8x658xbf16> to vector<8x512xbf16>
    %175 = vector.extract_strided_slice %2 {offsets = [10, 0], sizes = [1, 512], strides = [1, 1]} : vector<27x512xbf16> to vector<1x512xbf16>
    %176 = vector.broadcast %175 : vector<1x512xbf16> to vector<8x512xbf16>
    %177 = arith.mulf %174, %176 : vector<8x512xbf16>
    %178 = vector.extract_strided_slice %132 {offsets = [0, 66], sizes = [8, 512], strides = [1, 1]} : vector<8x658xbf16> to vector<8x512xbf16>
    %179 = vector.extract_strided_slice %2 {offsets = [11, 0], sizes = [1, 512], strides = [1, 1]} : vector<27x512xbf16> to vector<1x512xbf16>
    %180 = vector.broadcast %179 : vector<1x512xbf16> to vector<8x512xbf16>
    %181 = arith.mulf %178, %180 : vector<8x512xbf16>
    %182 = vector.extract_strided_slice %132 {offsets = [0, 72], sizes = [8, 512], strides = [1, 1]} : vector<8x658xbf16> to vector<8x512xbf16>
    %183 = vector.extract_strided_slice %2 {offsets = [12, 0], sizes = [1, 512], strides = [1, 1]} : vector<27x512xbf16> to vector<1x512xbf16>
    %184 = vector.broadcast %183 : vector<1x512xbf16> to vector<8x512xbf16>
    %185 = arith.mulf %182, %184 : vector<8x512xbf16>
    %186 = vector.extract_strided_slice %132 {offsets = [0, 73], sizes = [8, 512], strides = [1, 1]} : vector<8x658xbf16> to vector<8x512xbf16>
    %187 = vector.extract_strided_slice %2 {offsets = [13, 0], sizes = [1, 512], strides = [1, 1]} : vector<27x512xbf16> to vector<1x512xbf16>
    %188 = vector.broadcast %187 : vector<1x512xbf16> to vector<8x512xbf16>
    %189 = arith.mulf %186, %188 : vector<8x512xbf16>
    %190 = vector.extract_strided_slice %132 {offsets = [0, 74], sizes = [8, 512], strides = [1, 1]} : vector<8x658xbf16> to vector<8x512xbf16>
    %191 = vector.extract_strided_slice %2 {offsets = [14, 0], sizes = [1, 512], strides = [1, 1]} : vector<27x512xbf16> to vector<1x512xbf16>
    %192 = vector.broadcast %191 : vector<1x512xbf16> to vector<8x512xbf16>
    %193 = arith.mulf %190, %192 : vector<8x512xbf16>
    %194 = vector.extract_strided_slice %132 {offsets = [0, 80], sizes = [8, 512], strides = [1, 1]} : vector<8x658xbf16> to vector<8x512xbf16>
    %195 = vector.extract_strided_slice %2 {offsets = [15, 0], sizes = [1, 512], strides = [1, 1]} : vector<27x512xbf16> to vector<1x512xbf16>
    %196 = vector.broadcast %195 : vector<1x512xbf16> to vector<8x512xbf16>
    %197 = arith.mulf %194, %196 : vector<8x512xbf16>
    %198 = vector.extract_strided_slice %132 {offsets = [0, 81], sizes = [8, 512], strides = [1, 1]} : vector<8x658xbf16> to vector<8x512xbf16>
    %199 = vector.extract_strided_slice %2 {offsets = [16, 0], sizes = [1, 512], strides = [1, 1]} : vector<27x512xbf16> to vector<1x512xbf16>
    %200 = vector.broadcast %199 : vector<1x512xbf16> to vector<8x512xbf16>
    %201 = arith.mulf %198, %200 : vector<8x512xbf16>
    %202 = vector.extract_strided_slice %132 {offsets = [0, 82], sizes = [8, 512], strides = [1, 1]} : vector<8x658xbf16> to vector<8x512xbf16>
    %203 = vector.extract_strided_slice %2 {offsets = [17, 0], sizes = [1, 512], strides = [1, 1]} : vector<27x512xbf16> to vector<1x512xbf16>
    %204 = vector.broadcast %203 : vector<1x512xbf16> to vector<8x512xbf16>
    %205 = arith.mulf %202, %204 : vector<8x512xbf16>
    %206 = vector.extract_strided_slice %132 {offsets = [0, 128], sizes = [8, 512], strides = [1, 1]} : vector<8x658xbf16> to vector<8x512xbf16>
    %207 = vector.extract_strided_slice %2 {offsets = [18, 0], sizes = [1, 512], strides = [1, 1]} : vector<27x512xbf16> to vector<1x512xbf16>
    %208 = vector.broadcast %207 : vector<1x512xbf16> to vector<8x512xbf16>
    %209 = arith.mulf %206, %208 : vector<8x512xbf16>
    %210 = vector.extract_strided_slice %132 {offsets = [0, 129], sizes = [8, 512], strides = [1, 1]} : vector<8x658xbf16> to vector<8x512xbf16>
    %211 = vector.extract_strided_slice %2 {offsets = [19, 0], sizes = [1, 512], strides = [1, 1]} : vector<27x512xbf16> to vector<1x512xbf16>
    %212 = vector.broadcast %211 : vector<1x512xbf16> to vector<8x512xbf16>
    %213 = arith.mulf %210, %212 : vector<8x512xbf16>
    %214 = vector.extract_strided_slice %132 {offsets = [0, 130], sizes = [8, 512], strides = [1, 1]} : vector<8x658xbf16> to vector<8x512xbf16>
    %215 = vector.extract_strided_slice %2 {offsets = [20, 0], sizes = [1, 512], strides = [1, 1]} : vector<27x512xbf16> to vector<1x512xbf16>
    %216 = vector.broadcast %215 : vector<1x512xbf16> to vector<8x512xbf16>
    %217 = arith.mulf %214, %216 : vector<8x512xbf16>
    %218 = vector.extract_strided_slice %132 {offsets = [0, 136], sizes = [8, 512], strides = [1, 1]} : vector<8x658xbf16> to vector<8x512xbf16>
    %219 = vector.extract_strided_slice %2 {offsets = [21, 0], sizes = [1, 512], strides = [1, 1]} : vector<27x512xbf16> to vector<1x512xbf16>
    %220 = vector.broadcast %219 : vector<1x512xbf16> to vector<8x512xbf16>
    %221 = arith.mulf %218, %220 : vector<8x512xbf16>
    %222 = vector.extract_strided_slice %132 {offsets = [0, 137], sizes = [8, 512], strides = [1, 1]} : vector<8x658xbf16> to vector<8x512xbf16>
    %223 = vector.extract_strided_slice %2 {offsets = [22, 0], sizes = [1, 512], strides = [1, 1]} : vector<27x512xbf16> to vector<1x512xbf16>
    %224 = vector.broadcast %223 : vector<1x512xbf16> to vector<8x512xbf16>
    %225 = arith.mulf %222, %224 : vector<8x512xbf16>
    %226 = vector.extract_strided_slice %132 {offsets = [0, 138], sizes = [8, 512], strides = [1, 1]} : vector<8x658xbf16> to vector<8x512xbf16>
    %227 = vector.extract_strided_slice %2 {offsets = [23, 0], sizes = [1, 512], strides = [1, 1]} : vector<27x512xbf16> to vector<1x512xbf16>
    %228 = vector.broadcast %227 : vector<1x512xbf16> to vector<8x512xbf16>
    %229 = arith.mulf %226, %228 : vector<8x512xbf16>
    %230 = vector.extract_strided_slice %132 {offsets = [0, 144], sizes = [8, 512], strides = [1, 1]} : vector<8x658xbf16> to vector<8x512xbf16>
    %231 = vector.extract_strided_slice %2 {offsets = [24, 0], sizes = [1, 512], strides = [1, 1]} : vector<27x512xbf16> to vector<1x512xbf16>
    %232 = vector.broadcast %231 : vector<1x512xbf16> to vector<8x512xbf16>
    %233 = arith.mulf %230, %232 : vector<8x512xbf16>
    %234 = vector.extract_strided_slice %132 {offsets = [0, 145], sizes = [8, 512], strides = [1, 1]} : vector<8x658xbf16> to vector<8x512xbf16>
    %235 = vector.extract_strided_slice %2 {offsets = [25, 0], sizes = [1, 512], strides = [1, 1]} : vector<27x512xbf16> to vector<1x512xbf16>
    %236 = vector.broadcast %235 : vector<1x512xbf16> to vector<8x512xbf16>
    %237 = arith.mulf %234, %236 : vector<8x512xbf16>
    %238 = vector.extract_strided_slice %132 {offsets = [0, 146], sizes = [8, 512], strides = [1, 1]} : vector<8x658xbf16> to vector<8x512xbf16>
    %239 = vector.extract_strided_slice %2 {offsets = [26, 0], sizes = [1, 512], strides = [1, 1]} : vector<27x512xbf16> to vector<1x512xbf16>
    %240 = vector.broadcast %239 : vector<1x512xbf16> to vector<8x512xbf16>
    %241 = arith.mulf %238, %240 : vector<8x512xbf16>
    %cst_14 = arith.constant 0.000000e+00 : bf16
    %242 = vector.broadcast %cst_14 : bf16 to vector<36x512xbf16>
    %243 = tpu.concatenate %137, %141, %145, %149, %153, %157, %161, %165, %169, %173, %177, %181, %185, %189, %193, %197 in 0 : vector<8x512xbf16>, vector<8x512xbf16>, vector<8x512xbf16>, vector<8x512xbf16>, vector<8x512xbf16>, vector<8x512xbf16>, vector<8x512xbf16>, vector<8x512xbf16>, vector<8x512xbf16>, vector<8x512xbf16>, vector<8x512xbf16>, vector<8x512xbf16>, vector<8x512xbf16>, vector<8x512xbf16>, vector<8x512xbf16>, vector<8x512xbf16> -> vector<128x512xbf16>
    %244 = tpu.concatenate %201, %205, %209, %213, %217, %221, %225, %229, %233, %237, %241, %133, %242 in 0 : vector<8x512xbf16>, vector<8x512xbf16>, vector<8x512xbf16>, vector<8x512xbf16>, vector<8x512xbf16>, vector<8x512xbf16>, vector<8x512xbf16>, vector<8x512xbf16>, vector<8x512xbf16>, vector<8x512xbf16>, vector<8x512xbf16>, vector<4x512xbf16>, vector<36x512xbf16> -> vector<128x512xbf16>
    %245 = tpu.concatenate %243, %244 in 0 : vector<128x512xbf16>, vector<128x512xbf16> -> vector<256x512xbf16>
    %c0_15 = arith.constant 0 : index
    %c0_16 = arith.constant 0 : index
    %246 = vector.load %arg5[%c0_15, %c0_16] : memref<8x256xbf16, #tpu.memory_space<vmem>>, vector<8x256xbf16>
    %cst_17 = arith.constant dense<0.000000e+00> : vector<8x512xf32>
    %247 = tpu.matmul %246, %245, %cst_17 {dimension_numbers = #tpu.dot_dimension_numbers<[1], [0], [0], [1], [0, 0, 1, 1], [], []>} : vector<8x256xbf16>, vector<256x512xbf16>, vector<8x512xf32> -> vector<8x512xf32>
    %248 = arith.truncf %247 : vector<8x512xf32> to vector<8x512xbf16>
    %c0_18 = arith.constant 0 : index
    %c0_19 = arith.constant 0 : index
    %249 = vector.load %arg7[%c0_18, %c0_19] : memref<512x64xbf16, #tpu.memory_space<vmem>>, vector<512x64xbf16>
    %cst_20 = arith.constant dense<0.000000e+00> : vector<8x64xf32>
    %250 = tpu.matmul %248, %249, %cst_20 {dimension_numbers = #tpu.dot_dimension_numbers<[1], [0], [0], [1], [0, 0, 1, 1], [], []>} : vector<8x512xbf16>, vector<512x64xbf16>, vector<8x64xf32> -> vector<8x64xf32>
    %c0_21 = arith.constant 0 : index
    %c0_22 = arith.constant 0 : index
    %251 = vector.load %arg6[%c0_21, %c0_22] : memref<8x1xf32, #tpu.memory_space<vmem>>, vector<8x1xf32>
    %252 = vector.broadcast %251 : vector<8x1xf32> to vector<8x64xf32>
    %253 = arith.addf %250, %252 : vector<8x64xf32>
    %c0_23 = arith.constant 0 : index
    %c0_24 = arith.constant 0 : index
    %c0_25 = arith.constant 0 : index
    %254 = vector.load %arg8[%c0_23, %c0_24, %c0_25] : memref<1x8x64xf32, #tpu.memory_space<vmem>>, vector<1x8x64xf32>
    %255 = vector.shape_cast %254 : vector<1x8x64xf32> to vector<8x64xf32>
    %256 = vector.shape_cast %253 : vector<8x64xf32> to vector<1x8x64xf32>
    tpu.vector_store %arg8[%c0_23, %c0_24, %c0_25], %256 {strides = array<i32>} : memref<1x8x64xf32, #tpu.memory_space<vmem>>, vector<1x8x64xf32>,
    return
  }
  func.func @transform_0(%arg0: i32) -> (i32, i32, i32) {
    %c0_i32 = arith.constant 0 : i32
    %c0_i32_0 = arith.constant 0 : i32
    %c0_i32_1 = arith.constant 0 : i32
    return %arg0, %c0_i32, %c0_i32_0 : i32, i32, i32
  }
  func.func @transform_1(%arg0: i32) -> (i32, i32) {
    %c0_i32 = arith.constant 0 : i32
    %c0_i32_0 = arith.constant 0 : i32
    %c0_i32_1 = arith.constant 0 : i32
    return %c0_i32, %c0_i32_0 : i32, i32
  }
  func.func @transform_2(%arg0: i32) -> (i32, i32) {
    %c0_i32 = arith.constant 0 : i32
    %c0_i32_0 = arith.constant 0 : i32
    %c0_i32_1 = arith.constant 0 : i32
    return %c0_i32, %c0_i32_0 : i32, i32
  }
  func.func @transform_3(%arg0: i32) -> (i32, i32) {
    %c0_i32 = arith.constant 0 : i32
    %c0_i32_0 = arith.constant 0 : i32
    %c0_i32_1 = arith.constant 0 : i32
    return %c0_i32, %c0_i32_0 : i32, i32
  }
  func.func @transform_4(%arg0: i32) -> (i32, i32) {
    %c0_i32 = arith.constant 0 : i32
    %c0_i32_0 = arith.constant 0 : i32
    %c0_i32_1 = arith.constant 0 : i32
    return %c0_i32, %c0_i32_0 : i32, i32
  }
  func.func @transform_5(%arg0: i32) -> (i32, i32) {
    %c0_i32 = arith.constant 0 : i32
    %c0_i32_0 = arith.constant 0 : i32
    %c0_i32_1 = arith.constant 0 : i32
    return %c0_i32, %c0_i32_0 : i32, i32
  }
  func.func @transform_6(%arg0: i32) -> (i32, i32) {
    %c0_i32 = arith.constant 0 : i32
    %c0_i32_0 = arith.constant 0 : i32
    %c0_i32_1 = arith.constant 0 : i32
    return %c0_i32, %c0_i32_0 : i32, i32
  }
  func.func @transform_7(%arg0: i32) -> (i32, i32, i32) {
    %c0_i32 = arith.constant 0 : i32
    %c0_i32_0 = arith.constant 0 : i32
    %c0_i32_1 = arith.constant 0 : i32
    return %arg0, %c0_i32, %c0_i32_0 : i32, i32, i32
  }
}

</mosaic_0001>

<bundles_post_ra>
// kernel: tpu_custom_call.1
= control target key start
LH: loop header
LB: loop body
LE: loop exit
PB: predicated region body
PF: predicated region fallthrough
CT: control target
= control target key end

     0   :  { %12 = vsyncpa [#allocation3], 0  ;;  %s8919_s0 = inlined_call_operand.vmem [shape: bf16[2,4,658], index: 0, kind: input, shape index: {}]   ;;  %s8920_s1 = inlined_call_operand.vmem [shape: bf16[27,512], index: 1, kind: input, shape index: {}]   ;;  %s8921_s2 = inlined_call_operand.vmem [shape: bf16[8,128], index: 2, kind: input, shape index: {}]   ;;  %s8922_s3 = inlined_call_operand.vmem [shape: f32[8,1], index: 3, kind: input, shape index: {}]   ;;  %s8923_s4 = inlined_call_operand.vmem [shape: bf16[8,256], index: 4, kind: input, shape index: {}]   ;;  %s8924_s5 = inlined_call_operand.vmem [shape: f32[8,1], index: 5, kind: input, shape index: {}]   ;;  %s8925_s6 = inlined_call_operand.vmem [shape: bf16[512,64], index: 6, kind: input, shape index: {}]   ;;  %s8926_s7 = inlined_call_operand.hbm [shape: f32[2,8,64], index: 7, kind: output, shape index: {}]  }
   0x1   :  { %14 = vsyncpa [#allocation3 + $0x1], 0  ;;  %s5480_s24 = smov 0   ;;  %s5482_s25 = smov 0  }
   0x2   :  { %s5484_s26 = smov 0   ;;  %s5486_s27 = smov 0  }
   0x3 LB: > { %s5501_s28 = sadd.s32 4294967295, %s5401_s27   ;;  %s5103_s29 = sadd.s32 4294967294, %s5401_s27   ;;  %s5401_s27 = sphi %s5486_s27, %s9772_s27   ;;  %s5397_s26 = sphi %s5484_s26, %s9771_s26   ;;  %s5393_s25 = sphi %s5482_s25, %s9770_s25   ;;  %s5389_s24 = sphi %s5480_s24, %s9769_s24  }
   0x4   : > { %s5505_s30 = sadd.s32 1, %s5401_s27   ;;  %s179_s8 = sadd.s32 1, %s5397_s26 }
   0x5   : > { %s176_s9 = ssub.s32 %s5401_s27, %s5505_s30  ;;  %p189_p0 = scmp.ne.s32.totalorder %s5397_s26, %s5393_s25 }
   0x6   : > { %p177_p1 = scmp.eq.s32.totalorder %s176_s9, 0  ;;  %p190_p2 = scmp.eq.s32.totalorder %s5501_s28, 1 }
   0x7   : > { %p195_p3 = scmp.ne.s32.totalorder %s5393_s25, %s5389_s24  ;;  %p196_p4 = scmp.eq.s32.totalorder %s5103_s29, 1 }
   0x8   : > { %s5516_s10 = scalar_select %p177_p1, %s5397_s26, %s179_s8  }
   0x9   : > { %p5518_p5 = por %p190_p2, %p189_p0  ;;  %p5522_p6 = por %p196_p4, %p195_p3 }
   0xa   : > { %p5106_p7 = scmp.ge.s32.totalorder %s5401_s27, 1  ;;  %p240_p8 = scmp.lt.s32.totalorder %s5401_s27, 3 }
   0xc   : > { %p241_p9 = pnand %p5106_p7, %p240_p8 }
   0xe   : > { %244 = sbr.rel (%p241_p9) target bundleno = 1764 (0x6e4), region = 48 }
  0x15   : > { %p272_p10 = scmp.lt.s32.totalorder %s5501_s28, 1  ;;  %v285_v0 = vld [vmem:[%s8920_s1 + $0x20] sm:$0xff]  ;;  %v286_v1 = vld [vmem:[%s8920_s1 + $0x28] sm:$0xff]  ;;  %v308_v2 = vlaneseq  ;;  %v5403_v3 = vmov 1983009808   ;;  %s9116_s9 = smov 127  }
  0x16   : > { %v340_v4 = vunpack.c.l.s4 %v5403_v3  ;;  %v5535_v5 = vcombine.low %v285_v0, %v285_v0  ;;  %v5537_v6 = vcombine.high %v285_v0, %v285_v0  ;;  %v5539_v7 = vcombine.low %v286_v1, %v286_v1  ;;  %v281_v8 = vld [vmem:[%s8920_s1] sm:$0xff]  ;;  %v282_v9 = vld [vmem:[%s8920_s1 + $0x8] sm:$0xff]  ;;  %s5405_s13 = smov 126   ;;  %s9114_s14 = smov 120  }
  0x17   : > { %s273_s21 = scalar_select %p272_p10, %s5501_s28, 1  ;;  %v5548_v10 = vshrl.u32 %v308_v2, 7  ;;  %v5550_v11 = vcombine.high %v286_v1, %v286_v1  ;;  %v5109_v12 = vcombine.low %v281_v8, %v281_v8  ;;  %v5110_v13 = vcombine.high %v281_v8, %v281_v8 }
  0x18   : > { %v1160_v14 = vshrl.u32 %v5535_v5, 16  ;;  %v1167_v15 = vshrl.u32 %v5537_v6, 16  ;;  %v1174_v16 = vshrl.u32 %v5539_v7, 16  ;;  %v5111_v19 = vcombine.low %v282_v9, %v282_v9  ;;  %s9008_s15 = smov 82   ;;  %s5408_s16 = smov 119  }
  0x19   : > { %s5207_s22 = smul.u32 12, %s273_s21  ;;  %v5556_v17 = vsub.s32 0, %v5548_v10  ;;  %v1181_v18 = vshrl.u32 %v5550_v11, 16  ;;  %v5112_v20 = vcombine.high %v282_v9, %v282_v9  ;;  %v341_v21 = vunpack.c.0.s8 %v340_v4  ;;  %s9112_s21 = smov 118  }
  0x1a   : > { %v5559_v22 = vpack.i.b16 %v1160_v14, %v1160_v14  ;;  %v5561_v23 = vpack.i.b16 %v1167_v15, %v1167_v15  ;;  %v5563_v24 = vpack.i.b16 %v1174_v16, %v1174_v16  ;;  %v356_v26 = vshrl.u32 %v5109_v12, 16  ;;  %s9106_s23 = smov 111   ;;  %s9118_s29 = smov 110  }
  0x1b   : > { %s5568_s8 = scalar_lea.vmem %s8919_s0, %s5207_s22  ;;  %v5570_v25 = vpack.i.b16 %v1181_v18, %v1181_v18  ;;  %v363_v27 = vshrl.u32 %v5110_v13, 16  ;;  %v370_v28 = vshrl.u32 %v5111_v19, 16  ;;  %v377_v34 = vshrl.u32 %v5112_v20, 16  ;;  %s9120_s22 = smov 112  }
  0x1c   : > { %v280_v29 = vld [vmem:[%s5568_s8 + $0x8] sm:$0xf]  ;;  %v279_v30 = vld [vmem:[%s5568_s8] sm:$0xff]  ;;  %v5576_v31 = vrot.slane %v5559_v22, %v5556_v17  ;;  %v5580_v32 = vrot.slane %v5561_v23, %v5556_v17  ;;  %v5584_v33 = vrot.slane %v5563_v24, %v5556_v17  ;;  %v5590_v38 = vpack.i.b16 %v356_v26, %v356_v26  ;;  %s9002_s17 = smov 1   ;;  %s8989_s18 = smov 8  }
  0x1d   : > { %vm290_vm0 = vcmp.gt.bf16.partialorder %v280_v29, 0  ;;  %v292_v35 = vmul.bf16 1009007652, %v280_v29  ;;  %vm289_vm1 = vcmp.gt.bf16.partialorder %v279_v30, 0  ;;  %v291_v36 = vmul.bf16 1009007652, %v279_v30 }
  0x1e   : > { %9198 = vst [vmem:[#allocation5_spill] sm:$0xff] %v5576_v31  ;;  %9199 = vst [vmem:[#allocation6_spill] sm:$0xff] %v5580_v32  ;;  %v5588_v37 = vrot.slane %v5570_v25, %v5556_v17  ;;  %v5592_v39 = vpack.i.b16 %v363_v27, %v363_v27  ;;  %v5598_v42 = vpack.i.b16 %v370_v28, %v370_v28  ;;  %v5614_v47 = vsub.s32 1, %v5548_v10  ;;  %s8972_s19 = smov 2   ;;  %s8976_s20 = smov 10  }
  0x1f   : > { %9200 = vst [vmem:[#allocation7_spill] sm:$0xff] %v5584_v33  ;;  %v5594_v40 = vsel %vm290_vm0, %v280_v29, %v292_v35  ;;  %v5596_v41 = vsel %vm289_vm1, %v279_v30, %v291_v36  ;;  %v5600_v43 = vpack.i.b16 %v377_v34, %v377_v34  ;;  %v5607_v44 = vsub.s32 %v341_v21, %v5548_v10  ;;  %v283_v35 = vld [vmem:[%s8920_s1 + $0x10] sm:$0xff] }
  0x20   : > { %9201 = vst [vmem:[#allocation8_spill] sm:$0xff] %v5588_v37  ;;  %1282 = vrot.lane.b32.xlu1 %v5594_v40, %s9116_s9  ;;  %1280 = vrot.lane.b32.xlu0 %v5596_v41, %s9116_s9  ;;  %v1192_v45 = vcombine.low %v5576_v31, %v5580_v32  ;;  %v1193_v46 = vcombine.low %v5584_v33, %v5588_v37  ;;  %v5661_v61 = vsub.s32 2, %v5548_v10  ;;  %v5739_v34 = vsub.s32 3, %v5548_v10 }
  0x21   : > { %v5618_v48 = vrot.slane %v5590_v38, %v5556_v17  ;;  %v5622_v49 = vrot.slane %v5592_v39, %v5556_v17  ;;  %v5626_v50 = vrot.slane %v5598_v42, %v5556_v17  ;;  %v5630_v51 = vrot.slane %v5600_v43, %v5556_v17 }
  0x22   : > { %v5634_v52 = vrot.slane %v5590_v38, %v5614_v47  ;;  %v5638_v53 = vrot.slane %v5592_v39, %v5614_v47  ;;  %v5642_v54 = vrot.slane %v5598_v42, %v5614_v47  ;;  %v5646_v55 = vrot.slane %v5600_v43, %v5614_v47 }
  0x23   : > { %9202 = vst [vmem:[#allocation9_spill] sm:$0xff] %v5618_v48  ;;  %9203 = vst [vmem:[#allocation10_spill] sm:$0xff] %v5622_v49  ;;  %v5648_v56 = vpack.i.b16 %v5109_v12, %v5109_v12  ;;  %v5650_v57 = vpack.i.b16 %v5110_v13, %v5110_v13  ;;  %v1200_v58 = vrot.slane %v1192_v45, %v5607_v44  ;;  %v284_v45 = vld [vmem:[%s8920_s1 + $0x18] sm:$0xff]  ;;  %vm1238_vm2 = vcmask 1045504  }
  0x24   : > { %9204 = vst [vmem:[#allocation11_spill] sm:$0xff] %v5626_v50  ;;  %9205 = vst [vmem:[#allocation12_spill] sm:$0xff] %v5630_v51  ;;  %1333 = vrot.lane.b32.xlu1 %v5596_v41, %s5405_s13  ;;  %1335 = vrot.lane.b32.xlu0 %v5594_v40, %s5405_s13  ;;  %v1207_v59 = vrot.slane %v1193_v46, %v5607_v44  ;;  %v5658_v60 = vpack.i.b16 %v5111_v19, %v5111_v19  ;;  %vm1289_vm3 = vcmask 1043456   ;;  %vm1291_vm4 = vcmask 1039360  }
  0x25   : > { %9206 = vst [vmem:[#allocation13_spill] sm:$0xff] %v5634_v52  ;;  %9207 = vst [vmem:[#allocation14_spill] sm:$0xff] %v5638_v53  ;;  %v5663_v62 = vpack.i.b16 %v5112_v20, %v5112_v20  ;;  %v388_v63 = vcombine.low %v5618_v48, %v5622_v49  ;;  %v389_v0 = vcombine.low %v5626_v50, %v5630_v51  ;;  %vm1343_vm5 = vcmask 1031168  }
  0x26   : > { %9208 = vst [vmem:[#allocation15_spill] sm:$0xff] %v5642_v54  ;;  %9209 = vst [vmem:[#allocation16_spill] sm:$0xff] %v5646_v55  ;;  %v480_v1 = vcombine.low %v5634_v52, %v5638_v53  ;;  %v481_v2 = vcombine.low %v5642_v54, %v5646_v55  ;;  %v5675_v3 = vrot.slane %v5648_v56, %v5614_v47  ;;  %vm1395_vm6 = vcmask 982016  }
  0x27   : > { %v5679_v4 = vrot.slane %v5650_v57, %v5614_v47  ;;  %v5683_v8 = vrot.slane %v5658_v60, %v5614_v47  ;;  %v5687_v9 = vrot.slane %v5663_v62, %v5614_v47  ;;  %v1208_v12 = vcombine.low %v1200_v58, %v1207_v59 }
  0x28   : > { %9210 = vst [vmem:[#allocation17_spill] sm:$0xff] %v5675_v3  ;;  %1385 = vrot.lane.b32.xlu1 %v5596_v41, %s9114_s14  ;;  %1387 = vrot.lane.b32.xlu0 %v5594_v40, %s9114_s14  ;;  %v5695_v13 = vrot.slane %v5590_v38, %v5661_v61  ;;  %v5699_v14 = vrot.slane %v5592_v39, %v5661_v61  ;;  %vm9124_vm7 = vcmask 973824   ;;  %vm9111_vm8 = vcmask 965632  }
  0x29   : > { %9211 = vst [vmem:[#allocation18_spill] sm:$0xff] %v5679_v4  ;;  %9212 = vst [vmem:[#allocation19_spill] sm:$0xff] %v5683_v8  ;;  %v5703_v15 = vrot.slane %v5598_v42, %v5661_v61  ;;  %v5707_v16 = vrot.slane %v5600_v43, %v5661_v61  ;;  %v5710_v18 = vrot.slane %v388_v63, %v5607_v44  ;;  %vm1573_vm9 = vcmask 916480  }
  0x2a   : > { %9213 = vst [vmem:[#allocation20_spill] sm:$0xff] %v5687_v9  ;;  %9214 = vst [vmem:[#allocation21_spill] sm:$0xff] %v5695_v13  ;;  %v5713_v19 = vrot.slane %v389_v0, %v5607_v44  ;;  %v5716_v20 = vrot.slane %v480_v1, %v5607_v44  ;;  %v5719_v21 = vrot.slane %v481_v2, %v5607_v44  ;;  %vm9110_vm10 = vcmask 908288  }
  0x2b   : > { %9215 = vst [vmem:[#allocation22_spill] sm:$0xff] %v5699_v14  ;;  %9216 = vst [vmem:[#allocation23_spill] sm:$0xff] %v5703_v15  ;;  %v434_v26 = vcombine.low %v5675_v3, %v5679_v4  ;;  %v435_v27 = vcombine.low %v5683_v8, %v5687_v9  ;;  %v572_v28 = vcombine.low %v5695_v13, %v5699_v14  ;;  %vm9123_vm11 = vcmask 900096  }
  0x2c   : > { %9217 = vst [vmem:[#allocation24_spill] sm:$0xff] %v5707_v16  ;;  %1209 = vrot.lane.b32.xlu0 %v1208_v12, %s9008_s15  ;;  %1437 = vrot.lane.b32.xlu1 %v5596_v41, %s5408_s16  ;;  %v5732_v29 = vrot.slane %v5648_v56, %v5661_v61  ;;  %v5736_v30 = vrot.slane %v5650_v57, %v5661_v61  ;;  %vm9053_vm12 = vcmask 670720   ;;  %vm9041_vm13 = vcmask 7168   ;;  %s9312_s15 = smov 64  }
  0x2d   : > { %v573_v36 = vcombine.low %v5703_v15, %v5707_v16  ;;  %v5754_v10 = vrot.slane %v434_v26, %v5607_v44  ;;  %v5757_v59 = vrot.slane %v435_v27, %v5607_v44  ;;  %v5761_v63 = vrot.slane %v5658_v60, %v5661_v61 }
  0x2e   : > { %9218 = vst [vmem:[#allocation25_spill] sm:$0xff] %v5732_v29  ;;  %9219 = vst [vmem:[#allocation26_spill] sm:$0xff] %v5736_v30  ;;  %v5765_v0 = vrot.slane %v5663_v62, %v5661_v61  ;;  %v5772_v1 = vrot.slane %v572_v28, %v5607_v44  ;;  %v526_v2 = vcombine.low %v5732_v29, %v5736_v30  ;;  %vm454_vm14 = vcmask 15360  }
  0x2f   : > { %9220 = vst [vmem:[#allocation27_spill] sm:$0xff] %v5761_v63  ;;  %v5778_v12 = vrot.slane %v5590_v38, %v5739_v34  ;;  %v5781_v26 = vrot.slane %v573_v36, %v5607_v44  ;;  %v5785_v27 = vrot.slane %v5592_v39, %v5739_v34  ;;  %v5113_v58 = vcombine.low %v283_v35, %v283_v35 }
  0x30   : > { %9221 = vst [vmem:[#allocation28_spill] sm:$0xff] %v5765_v0  ;;  %1439 = vrot.lane.b32.xlu0 %v5594_v40, %s5408_s16  ;;  %1489 = vrot.lane.b32.xlu1 %v5596_v41, %s9112_s21  ;;  %v5114_v46 = vcombine.high %v283_v35, %v283_v35  ;;  %v5789_v28 = vrot.slane %v5598_v42, %v5739_v34  ;;  %vm9045_vm15 = vcmask 64512   ;;  %vm546_vm0 = vcmask 72704  }
  0x31   : > { %9222 = vst [vmem:[#allocation29_spill] sm:$0xff] %v5778_v12  ;;  %9223 = vst [vmem:[#allocation30_spill] sm:$0xff] %v5785_v27  ;;  %v5793_v16 = vrot.slane %v5600_v43, %v5739_v34  ;;  %v5115_v30 = vcombine.low %v284_v45, %v284_v45  ;;  %v5116_v38 = vcombine.high %v284_v45, %v284_v45  ;;  %v758_v29 = vshrl.u32 %v5113_v58, 16 }
  0x32   : > { %9224 = vst [vmem:[#allocation31_spill] sm:$0xff] %v5789_v28  ;;  %v5797_v36 = vrot.slane %v5648_v56, %v5739_v34  ;;  %v765_v15 = vshrl.u32 %v5114_v46, 16  ;;  %v5799_v39 = vpack.i.b16 %v5113_v58, %v5113_v58  ;;  %v5807_v42 = vrot.slane %v5650_v57, %v5739_v34 }
  0x33   : > { %9225 = vst [vmem:[#allocation32_spill] sm:$0xff] %v5793_v16  ;;  %v5811_v43 = vrot.slane %v5658_v60, %v5739_v34  ;;  %v772_v35 = vshrl.u32 %v5115_v30, 16  ;;  %v779_v45 = vshrl.u32 %v5116_v38, 16  ;;  %v5815_v58 = vrot.slane %v5663_v62, %v5739_v34 }
  0x34   : > { %9226 = vst [vmem:[#allocation33_spill] sm:$0xff] %v5797_v36  ;;  %1491 = vrot.lane.b32.xlu0 %v5594_v40, %s9112_s21  ;;  %1563 = vrot.lane.b32.xlu1 %v5596_v41, %s9120_s22  ;;  %9227 = vst [vmem:[#allocation34_spill] sm:$0xff] %v5807_v42  ;;  %v5817_v14 = vpack.i.b16 %v758_v29, %v758_v29  ;;  %v5819_v13 = vpack.i.b16 %v765_v15, %v765_v15  ;;  %vm9042_vm1 = vcmask 80896  }
  0x35   : > { %9228 = vst [vmem:[#allocation35_spill] sm:$0xff] %v5811_v43  ;;  %9229 = vst [vmem:[#allocation36_spill] sm:$0xff] %v5815_v58  ;;  %v5821_v9 = vpack.i.b16 %v5114_v46, %v5114_v46  ;;  %v5823_v55 = vpack.i.b16 %v772_v35, %v772_v35  ;;  %v5825_v8 = vpack.i.b16 %v779_v45, %v779_v45 }
  0x36   : > { %v5829_v4 = vrot.slane %v5799_v39, %v5556_v17  ;;  %v5831_v3 = vpack.i.b16 %v5115_v30, %v5115_v30  ;;  %v5835_v54 = vrot.slane %v5817_v14, %v5556_v17  ;;  %v5839_v15 = vrot.slane %v5819_v13, %v5556_v17 }
  0x37   : > { %v5843_v29 = vrot.slane %v5821_v9, %v5556_v17  ;;  %v5845_v46 = vpack.i.b16 %v5116_v38, %v5116_v38  ;;  %v450_v30 = vcombine.low %v5754_v10, %v5757_v59  ;;  %v5855_v35 = vrot.slane %v5823_v55, %v5556_v17 }
  0x38   : > { %9230 = vst [vmem:[#allocation37_spill] sm:$0xff] %v5829_v4  ;;  %9231 = vst [vmem:[#allocation38_spill] sm:$0xff] %v5835_v54  ;;  %1565 = vrot.lane.b32.xlu0 %v5594_v40, %s9120_s22  ;;  %1627 = vrot.lane.b32.xlu1 %v5596_v41, %s9106_s23  ;;  %v5859_v45 = vrot.slane %v5825_v8, %v5556_v17  ;;  %v527_v38 = vcombine.low %v5761_v63, %v5765_v0 }
  0x39   : > { %9232 = vst [vmem:[#allocation39_spill] sm:$0xff] %v5839_v15  ;;  %9233 = vst [vmem:[#allocation40_spill] sm:$0xff] %v5843_v29  ;;  %v5864_v53 = vrot.slane %v526_v2, %v5607_v44  ;;  %v5868_v52 = vrot.slane %v5831_v3, %v5556_v17  ;;  %v5872_v10 = vrot.slane %v5845_v46, %v5556_v17 }
  0x3a   : > { %9234 = vst [vmem:[#allocation41_spill] sm:$0xff] %v5855_v35  ;;  %9235 = vst [vmem:[#allocation42_spill] sm:$0xff] %v5859_v45  ;;  %v664_v51 = vcombine.low %v5778_v12, %v5785_v27  ;;  %v665_v0 = vcombine.low %v5789_v28, %v5793_v16  ;;  %v618_v2 = vcombine.low %v5797_v36, %v5807_v42 }
  0x3b   : > { %9236 = vst [vmem:[#allocation43_spill] sm:$0xff] %v5868_v52  ;;  %9237 = vst [vmem:[#allocation44_spill] sm:$0xff] %v5872_v10  ;;  %v619_v63 = vcombine.low %v5811_v43, %v5815_v58  ;;  %v790_v50 = vcombine.low %v5835_v54, %v5839_v15  ;;  %v732_v49 = vcombine.low %v5829_v4, %v5843_v29 }
  0x3c   : > { %v5890_v59 = vrot.slane %v5817_v14, %v5614_v47  ;;  %1629 = vrot.lane.b32.xlu0 %v5594_v40, %s9106_s23  ;;  %1679 = vrot.lane.b32.xlu1 %v5596_v41, %s9118_s29  ;;  %v791_v58 = vcombine.low %v5855_v35, %v5859_v45  ;;  %v5900_v15 = vrot.slane %v5819_v13, %v5614_v47 }
  0x3d   : > { %v5904_v29 = vrot.slane %v5823_v55, %v5614_v47  ;;  %v733_v4 = vcombine.low %v5868_v52, %v5872_v10  ;;  %v5910_v54 = vrot.slane %v5825_v8, %v5614_v47  ;;  %v5914_v16 = vrot.slane %v5799_v39, %v5614_v47 }
  0x3e   : > { %9238 = vst [vmem:[#allocation45_spill] sm:$0xff] %v5890_v59  ;;  %9239 = vst [vmem:[#allocation46_spill] sm:$0xff] %v5900_v15  ;;  %v5918_v45 = vrot.slane %v5821_v9, %v5614_v47  ;;  %v541_v35 = vrot.slane %v527_v38, %v5607_v44  ;;  %v5922_v43 = vrot.slane %v664_v51, %v5607_v44 }
  0x3f   : > { %9240 = vst [vmem:[#allocation47_spill] sm:$0xff] %v5904_v29  ;;  %9241 = vst [vmem:[#allocation48_spill] sm:$0xff] %v5910_v54  ;;  %v5926_v10 = vrot.slane %v5831_v3, %v5614_v47  ;;  %v5930_v52 = vrot.slane %v5845_v46, %v5614_v47  ;;  %v679_v42 = vrot.slane %v665_v0, %v5607_v44 }
  0x40   : > { %9242 = vst [vmem:[#allocation49_spill] sm:$0xff] %v5914_v16  ;;  %9243 = vst [vmem:[#allocation50_spill] sm:$0xff] %v5918_v45  ;;  %v5934_v36 = vrot.slane %v618_v2, %v5607_v44  ;;  %v633_v28 = vrot.slane %v619_v63, %v5607_v44  ;;  %v5938_v38 = vrot.slane %v790_v50, %v5607_v44  ;;  %1681 = vrot.lane.b32.xlu0 %v5594_v40, %s9118_s29 }
  0x41   : > { %9244 = vst [vmem:[#allocation51_spill] sm:$0xff] %v5926_v10  ;;  %9245 = vst [vmem:[#allocation52_spill] sm:$0xff] %v5930_v52  ;;  %v9246_v51 = vcombine.low %v5710_v18, %v5713_v19  ;;  %v5947_v27 = vrot.slane %v791_v58, %v5607_v44  ;;  %v5950_v0 = vrot.slane %v732_v49, %v5607_v44 }
  0x42   : > { %v882_v63 = vcombine.low %v5890_v59, %v5900_v15  ;;  %v5955_v50 = vrot.slane %v733_v4, %v5607_v44  ;;  %v883_v2 = vcombine.low %v5904_v29, %v5910_v54  ;;  %v836_v12 = vcombine.low %v5914_v16, %v5918_v45 }
  0x43   : > { %405 = vrot.lane.b32.xlu1 %v9246_v51, %s9002_s17  ;;  %v5963_v18 = vrot.slane %v5817_v14, %v5661_v61  ;;  %v837_v49 = vcombine.low %v5926_v10, %v5930_v52  ;;  %v5969_v19 = vrot.slane %v5819_v13, %v5661_v61  ;;  %v5973_v4 = vrot.slane %v5823_v55, %v5661_v61  ;;  %s5428_s17 = smov 81  }
  0x44   : > { %v5977_v58 = vrot.slane %v5825_v8, %v5661_v61  ;;  %v5981_v51 = vrot.slane %v5799_v39, %v5661_v61  ;;  %v5985_v54 = vrot.slane %v5821_v9, %v5661_v61  ;;  %v5989_v52 = vrot.slane %v5831_v3, %v5661_v61  ;;  %451 = vrot.lane.b32.xlu0 %v450_v30, %s8972_s19  ;;  %s8974_s19 = smov 9  }
  0x45   : > { %9247 = vst [vmem:[#allocation53_spill] sm:$0xff] %v5963_v18  ;;  %9248 = vst [vmem:[#allocation54_spill] sm:$0xff] %v5969_v19  ;;  %v5993_v10 = vrot.slane %v5845_v46, %v5661_v61  ;;  %v9255_v45 = vcombine.low %v5716_v20, %v5719_v21  ;;  %v542_v16 = vcombine.low %v5864_v53, %v541_v35 }
  0x46   : > { %9249 = vst [vmem:[#allocation55_spill] sm:$0xff] %v5973_v4  ;;  %9250 = vst [vmem:[#allocation56_spill] sm:$0xff] %v5977_v58  ;;  %v680_v29 = vcombine.low %v5922_v43, %v679_v42  ;;  %v634_v15 = vcombine.low %v5934_v36, %v633_v28  ;;  %v806_v59 = vcombine.low %v5938_v38, %v5947_v27  ;;  %v1236_v38 = vrot.slane %v5596_v41, 2 }
  0x47   : > { %9251 = vst [vmem:[#allocation57_spill] sm:$0xff] %v5981_v51  ;;  %9252 = vst [vmem:[#allocation58_spill] sm:$0xff] %v5985_v54  ;;  %497 = vrot.lane.b32.xlu1 %v9255_v45, %s8989_s18  ;;  %v748_v48 = vcombine.low %v5950_v0, %v5955_v50  ;;  %v6008_v37 = vrot.slane %v882_v63, %v5607_v44  ;;  %v6011_v20 = vrot.slane %v883_v2, %v5607_v44  ;;  %s8994_s18 = smov 65  }
  0x48   : > { %9253 = vst [vmem:[#allocation59_spill] sm:$0xff] %v5989_v52  ;;  %9254 = vst [vmem:[#allocation60_spill] sm:$0xff] %v5993_v10  ;;  %v6014_v21 = vrot.slane %v836_v12, %v5607_v44  ;;  %v6017_v53 = vrot.slane %v837_v49, %v5607_v44  ;;  %v974_v28 = vcombine.low %v5963_v18, %v5969_v19  ;;  %543 = vrot.lane.b32.xlu0 %v542_v16, %s8974_s19  ;;  %s8980_s19 = smov 17  }
  0x49   : > { %v975_v27 = vcombine.low %v5973_v4, %v5977_v58  ;;  %v928_v36 = vcombine.low %v5981_v51, %v5985_v54  ;;  %v929_v42 = vcombine.low %v5989_v52, %v5993_v10  ;;  %v6029_v43 = vrot.slane %v5817_v14, %v5739_v34 }
  0x4a   : > { %v6033_v12 = vrot.slane %v5819_v13, %v5739_v34  ;;  %v9258_v30 = vcombine.low %v5772_v1, %v5781_v26  ;;  %v6042_v35 = vrot.slane %v5823_v55, %v5739_v34  ;;  %v6046_v14 = vrot.slane %v5825_v8, %v5739_v34 }
  0x4b   : > { %9256 = vst [vmem:[#allocation61_spill] sm:$0xff] %v6029_v43  ;;  %v6050_v13 = vpack.i.b16 %v5535_v5, %v5535_v5  ;;  %v6054_v45 = vrot.slane %v5799_v39, %v5739_v34  ;;  %v6058_v1 = vrot.slane %v5821_v9, %v5739_v34  ;;  %v1110_v55 = vpack.i.b16 %v5537_v6, %v5537_v6 }
  0x4c   : > { %9257 = vst [vmem:[#allocation62_spill] sm:$0xff] %v6033_v12  ;;  %589 = vrot.lane.b32.xlu1 %v9258_v30, %s8976_s20  ;;  %9259 = vst [vmem:[#allocation63_spill] sm:$0xff] %v6042_v35  ;;  %v6064_v16 = vpack.i.b16 %v5539_v7, %v5539_v7  ;;  %v6068_v8 = vrot.slane %v5831_v3, %v5739_v34  ;;  %v6072_v5 = vrot.slane %v5845_v46, %v5739_v34  ;;  %s8978_s20 = smov 16  }
  0x4d   : > { %9260 = vst [vmem:[#allocation64_spill] sm:$0xff] %v6046_v14  ;;  %9261 = vst [vmem:[#allocation65_spill] sm:$0xff] %v6054_v45  ;;  %v6076_v9 = vpack.i.b16 %v5550_v11, %v5550_v11  ;;  %v6080_v6 = vrot.slane %v6050_v13, %v5614_v47  ;;  %v898_v7 = vcombine.low %v6008_v37, %v6011_v20  ;;  %635 = vrot.lane.b32.xlu0 %v634_v15, %s8978_s20  ;;  %s9010_s20 = smov 64  }
  0x4e   : > { %9262 = vst [vmem:[#allocation66_spill] sm:$0xff] %v6058_v1  ;;  %9263 = vst [vmem:[#allocation67_spill] sm:$0xff] %v6068_v8  ;;  %v852_v3 = vcombine.low %v6014_v21, %v6017_v53  ;;  %v982_v26 = vrot.slane %v974_v28, %v5607_v44  ;;  %v989_v39 = vrot.slane %v975_v27, %v5607_v44  ;;  %v1237_v30 = vrot.slane %v5594_v40, 2 }
  0x4f   : > { %9264 = vst [vmem:[#allocation68_spill] sm:$0xff] %v6072_v5  ;;  %9265 = vst [vmem:[#allocation69_spill] sm:$0xff] %v6080_v6  ;;  %v1066_v11 = vcombine.low %v6029_v43, %v6033_v12  ;;  %v6093_v46 = vrot.slane %v1110_v55, %v5614_v47  ;;  %v6097_v37 = vrot.slane %v6064_v16, %v5614_v47 }
  0x50   : > { %681 = vrot.lane.b32.xlu1 %v680_v29, %s8980_s19  ;;  %v936_v0 = vrot.slane %v928_v36, %v5607_v44  ;;  %v943_v63 = vrot.slane %v929_v42, %v5607_v44  ;;  %v1067_v29 = vcombine.low %v6042_v35, %v6046_v14  ;;  %v6106_v15 = vrot.slane %v6076_v9, %v5614_v47  ;;  %s8987_s19 = smov 18  }
  0x51   : > { %9266 = vst [vmem:[#allocation70_spill] sm:$0xff] %v6093_v46  ;;  %9267 = vst [vmem:[#allocation71_spill] sm:$0xff] %v6097_v37  ;;  %v1020_v50 = vcombine.low %v6054_v45, %v6058_v1  ;;  %v1021_v2 = vcombine.low %v6068_v8, %v6072_v5  ;;  %v6114_v49 = vrot.slane %v6050_v13, %v5556_v17  ;;  %749 = vrot.lane.b32.xlu0 %v748_v48, %s8987_s19  ;;  %s8996_s19 = smov 66  }
  0x52   : > { %9268 = vst [vmem:[#allocation72_spill] sm:$0xff] %v6106_v15  ;;  %v1245_v20 = vcombine.low %v6080_v6, %v6093_v46  ;;  %v6119_v21 = vrot.slane %v1110_v55, %v5556_v17  ;;  %v6123_v53 = vrot.slane %v6064_v16, %v5556_v17  ;;  %v6127_v28 = vrot.slane %v6076_v9, %v5556_v17 }
  0x53   : > { %9269 = vst [vmem:[#allocation73_spill] sm:$0xff] %v6114_v49  ;;  %v1246_v27 = vcombine.low %v6097_v37, %v6106_v15  ;;  %v990_v36 = vcombine.low %v982_v26, %v989_v39  ;;  %v1074_v42 = vrot.slane %v1066_v11, %v5607_v44  ;;  %v944_v6 = vcombine.low %v936_v0, %v943_v63 }
  0x54   : > { %9270 = vst [vmem:[#allocation74_spill] sm:$0xff] %v6119_v21  ;;  %9271 = vst [vmem:[#allocation75_spill] sm:$0xff] %v6123_v53  ;;  %807 = vrot.lane.b32.xlu1 %v806_v59, %s9010_s20  ;;  %v1253_v46 = vrot.slane %v1245_v20, %v5607_v44  ;;  %v6139_v14 = vrot.slane %v6050_v13, %v5661_v61  ;;  %v6142_v15 = vrot.slane %v1110_v55, %v5661_v61  ;;  %s9088_s20 = smov 56  }
  0x55   : > { %9272 = vst [vmem:[#allocation76_spill] sm:$0xff] %v6127_v28  ;;  %v1260_v5 = vrot.slane %v1246_v27, %v5607_v44  ;;  %v1081_v59 = vrot.slane %v1067_v29, %v5607_v44  ;;  %v1028_v48 = vrot.slane %v1020_v50, %v5607_v44  ;;  %v6148_v26 = vrot.slane %v6064_v16, %v5661_v61 }
  0x56   : > { %9273 = vst [vmem:[#allocation77_spill] sm:$0xff] %v6139_v14  ;;  %9274 = vst [vmem:[#allocation78_spill] sm:$0xff] %v6142_v15  ;;  %v6152_v39 = vrot.slane %v6076_v9, %v5661_v61  ;;  %v1035_v11 = vrot.slane %v1021_v2, %v5607_v44  ;;  %v1134_v0 = vcombine.low %v6114_v49, %v6119_v21  ;;  %853 = vrot.lane.b32.xlu0 %v852_v3, %s8994_s18  ;;  %s9000_s18 = smov 73  }
  0x57   : > { %9275 = vst [vmem:[#allocation79_spill] sm:$0xff] %v6148_v26  ;;  %v1135_v63 = vcombine.low %v6123_v53, %v6127_v28  ;;  %v6161_v29 = vrot.slane %v5559_v22, %v5661_v61  ;;  %v1261_v50 = vcombine.low %v1253_v46, %v1260_v5  ;;  %v6167_v2 = vrot.slane %v5561_v23, %v5661_v61 }
  0x58   : > { %9276 = vst [vmem:[#allocation80_spill] sm:$0xff] %v6152_v39  ;;  %899 = vrot.lane.b32.xlu1 %v898_v7, %s8996_s19  ;;  %v6171_v20 = vrot.slane %v5563_v24, %v5661_v61  ;;  %v1239_v27 = vsel %vm1238_vm2, %v1236_v38, %v1237_v30  ;;  %v6176_v37 = vrot.slane %v5570_v25, %v5661_v61  ;;  %s8998_s19 = smov 72  }
  0x59   : > { %9277 = vst [vmem:[#allocation81_spill] sm:$0xff] %v6161_v29  ;;  %9278 = vst [vmem:[#allocation82_spill] sm:$0xff] %v6167_v2  ;;  %v6180_v7 = vrot.slane %v6050_v13, %v5739_v34  ;;  %v6183_v5 = vrot.slane %v1110_v55, %v5739_v34  ;;  %v1082_v3 = vcombine.low %v1074_v42, %v1081_v59 }
  0x5a   : > { %9279 = vst [vmem:[#allocation83_spill] sm:$0xff] %v6171_v20  ;;  %9280 = vst [vmem:[#allocation84_spill] sm:$0xff] %v6176_v37  ;;  %v1036_v46 = vcombine.low %v1028_v48, %v1035_v11  ;;  %v1142_v28 = vrot.slane %v1134_v0, %v5607_v44  ;;  %v6188_v53 = vrot.slane %v6064_v16, %v5739_v34  ;;  %945 = vrot.lane.b32.xlu0 %v944_v6, %s8998_s19  ;;  %s9006_s19 = smov 80  }
  0x5b   : > { %9281 = vst [vmem:[#allocation85_spill] sm:$0xff] %v6180_v7  ;;  %9282 = vst [vmem:[#allocation86_spill] sm:$0xff] %v6183_v5  ;;  %v1149_v61 = vrot.slane %v1135_v63, %v5607_v44  ;;  %v1263_v13 = vmul.bf16 %v1261_v50, %v1239_v27  ;;  %v6195_v55 = vrot.slane %v6076_v9, %v5739_v34 }
  0x5c   : > { %9283 = vst [vmem:[#allocation87_spill] sm:$0xff] %v6188_v53  ;;  %991 = vrot.lane.b32.xlu1 %v990_v36, %s9000_s18  ;;  %v6199_v38 = vrot.slane %v5559_v22, %v5739_v34  ;;  %v6203_v16 = vrot.slane %v5561_v23, %v5739_v34  ;;  %v6207_v36 = vrot.slane %v5563_v24, %v5739_v34  ;;  %s9004_s18 = smov 74  }
  0x5d   : > { %9284 = vst [vmem:[#allocation88_spill] sm:$0xff] %v6195_v55  ;;  %v6211_v6 = vrot.slane %v5570_v25, %v5739_v34  ;;  %v1150_v9 = vcombine.low %v1142_v28, %v1149_v61  ;;  %v2561_v42 = vrot.slane %v1263_v13, %v5607_v44  ;;  %v2554_v30 = vcombine.high %v1263_v13, %v1263_v13 }
  0x5e   : > { %9285 = vst [vmem:[#allocation89_spill] sm:$0xff] %v6199_v38  ;;  %9286 = vst [vmem:[#allocation90_spill] sm:$0xff] %v6203_v16  ;;  %1037 = vrot.lane.b32.xlu0 %v1036_v46, %s9004_s18  ;;  %v6224_v28 = vrot.slane %v5559_v22, %v5614_v47  ;;  %v6228_v11 = vrot.slane %v5561_v23, %v5614_v47  ;;  %v6232_v0 = vrot.slane %v5563_v24, %v5614_v47  ;;  %s5430_s18 = smov 63  }
  0x5f   : > { %9287 = vst [vmem:[#allocation91_spill] sm:$0xff] %v6207_v36  ;;  %9288 = vst [vmem:[#allocation92_spill] sm:$0xff] %v6211_v6  ;;  %v2569_v59 = vcombine.low %v2561_v42, %v2561_v42  ;;  %v2568_v48 = vrot.slane %v2554_v30, %v5607_v44  ;;  %v6236_v63 = vrot.slane %v5570_v25, %v5614_v47  ;;  %v287_v25 = vld [vmem:[%s8920_s1 + $0x30] sm:$0x33] }
  0x60   : > { %1083 = vrot.lane.b32.xlu1 %v1082_v3, %s9006_s19  ;;  %9289 = vst [vmem:[#allocation93_spill] sm:$0xff] %v6224_v28  ;;  %9290 = vst [vmem:[#allocation94_spill] sm:$0xff] %v6228_v11  ;;  %v1298_v50 = vcombine.low %v6224_v28, %v6228_v11  ;;  %v1350_v22 = vcombine.low %v6139_v14, %v6142_v15  ;;  %v1351_v23 = vcombine.low %v6148_v26, %v6152_v39  ;;  %s9079_s19 = smov 62  }
  0x61   : > { %v2570_v34 = vcombine.low %v2568_v48, %v2568_v48  ;;  %9291 = vst [vmem:[#allocation95_spill] sm:$0xff] %v6232_v0  ;;  %9292 = vst [vmem:[#allocation96_spill] sm:$0xff] %v6236_v63  ;;  %v1299_v27 = vcombine.low %v6232_v0, %v6236_v63  ;;  %v1402_v24 = vcombine.low %v6161_v29, %v6167_v2 }
  0x62   : > { %1151 = vrot.lane.b32.xlu0 %v1150_v9, %s5428_s17  ;;  %v1403_v3 = vcombine.low %v6171_v20, %v6176_v37  ;;  %v1306_v46 = vrot.slane %v1298_v50, %v5607_v44  ;;  %v1358_v13 = vrot.slane %v1350_v22, %v5607_v44  ;;  %v1365_v9 = vrot.slane %v1351_v23, %v5607_v44 }
  0x63   : > { %v1313_v61 = vrot.slane %v1299_v27, %v5607_v44  ;;  %v5121_v50 = vcombine.low %v287_v25, %v287_v25  ;;  %v5122_v22 = vcombine.high %v287_v25, %v287_v25  ;;  %v1506_v19 = vcombine.low %v6199_v38, %v6203_v16 }
  0x64   : > { %2573 = vrot.lane.b32.xlu1 %v2561_v42, %s5428_s17  ;;  %v288_v42 = vld [vmem:[%s8920_s1 + $0x38] sm:$0x33]  ;;  %v1366_v12 = vcombine.low %v1358_v13, %v1365_v9 }
  0x65   : > { %v1314_v1 = vcombine.low %v1306_v46, %v1313_v61  ;;  %v5123_v23 = vcombine.low %v288_v42, %v288_v42  ;;  %v5124_v43 = vcombine.high %v288_v42, %v288_v42  ;;  %v6267_v52 = vpack.i.b16 %v5121_v50, %v5121_v50 }
  0x66   : > { %2571 = vrot.lane.b32.xlu0 %v2569_v59, %s5428_s17  ;;  %v1606_v9 = vshrl.u32 %v5122_v22, 16 }
  0x68   : > { %2577 = vrot.lane.b32.xlu1 %v2568_v48, %s5428_s17  ;;  %v1410_v48 = vrot.slane %v1402_v24, %v5607_v44 }
  0x6a   : > { %2575 = vrot.lane.b32.xlu0 %v2570_v34, %s5428_s17  ;;  %v1417_v34 = vrot.slane %v1403_v3, %v5607_v44 }
  0x6c   : > { %v1418_v3 = vcombine.low %v1410_v48, %v1417_v34  ;;  %v1620_v34 = vshrl.u32 %v5124_v43, 16 }
  0x92   : > { %v1283_v30 = vpop.permute.xlu1 %1282  ;;  %v1281_v59 = vpop.permute.xlu0 %1280 }
  0x93   : > { %v1285_v21 = vrot.slane %v1283_v30, 2  ;;  %v1287_v27 = vrot.slane %v1283_v30, 4  ;;  %v1284_v49 = vrot.slane %v1281_v59, 2  ;;  %v1286_v8 = vrot.slane %v1281_v59, 4 }
  0x94   : > { %v1454_v30 = vcombine.low %v6180_v7, %v6183_v5 }
  0x95   : > { %v1288_v45 = vsel %vm1238_vm2, %v1284_v49, %v1285_v21  ;;  %v1290_v35 = vsel %vm1289_vm3, %v1286_v8, %v1287_v27  ;;  %v6271_v49 = vpack.i.b16 %v5122_v22, %v5122_v22  ;;  %v6273_v8 = vpack.i.b16 %v5123_v23, %v5123_v23 }
  0x96   : > { %v1334_v10 = vpop.permute.xlu1 %1333  ;;  %v1336_v58 = vpop.permute.xlu0 %1335  ;;  %v1292_v24 = vsel %vm1291_vm4, %v1288_v45, %v1290_v35  ;;  %v1599_v21 = vshrl.u32 %v5121_v50, 16  ;;  %v6277_v45 = vpack.i.b16 %v5124_v43, %v5124_v43  ;;  %v1455_v22 = vcombine.low %v6188_v53, %v6195_v55 }
  0x97   : > { %v1337_v46 = vrot.slane %v1334_v10, 2  ;;  %v1339_v61 = vrot.slane %v1334_v10, 4  ;;  %v1338_v25 = vrot.slane %v1336_v58, 2  ;;  %v1340_v59 = vrot.slane %v1336_v58, 4 }
  0x98   : > { %v6269_v54 = vmul.bf16 %v1314_v1, %v1292_v24  ;;  %v1613_v1 = vshrl.u32 %v5123_v23, 16  ;;  %v1469_v4 = vrot.slane %v1455_v22, %v5607_v44 }
  0x99   : > { %v1341_v13 = vsel %vm1238_vm2, %v1337_v46, %v1338_v25  ;;  %v1342_v35 = vsel %vm1289_vm3, %v1339_v61, %v1340_v59  ;;  %v6292_v61 = vrot.slane %v6267_v52, %v5556_v17  ;;  %v1600_v25 = vpack.i.b16 %v1599_v21, %v1599_v21 }
  0x9a   : > { %v1386_v42 = vpop.permute.xlu1 %1385  ;;  %v1388_v48 = vpop.permute.xlu0 %1387  ;;  %v6281_v10 = vrot.slane %v6269_v54, %v5607_v44  ;;  %v1344_v58 = vsel %vm1343_vm5, %v1341_v13, %v1342_v35  ;;  %v6298_v59 = vrot.slane %v6271_v49, %v5556_v17 }
  0x9b   : > { %v1389_v27 = vrot.slane %v1386_v42, 2  ;;  %v1391_v24 = vrot.slane %v1386_v42, 4  ;;  %v1390_v50 = vrot.slane %v1388_v48, 2  ;;  %v1392_v51 = vrot.slane %v1388_v48, 4  ;;  %9293 = vst [vmem:[#allocation97_spill] sm:$0xff] %v6292_v61 }
  0x9c   : > { %2606 = vrot.lane.b32.xlu1 %v6281_v10, %s5428_s17  ;;  %v6286_v46 = vmul.bf16 %v1366_v12, %v1344_v58  ;;  %9294 = vst [vmem:[#allocation98_spill] sm:$0xff] %v6298_v59  ;;  %v6302_v12 = vrot.slane %v6273_v8, %v5556_v17  ;;  %v1607_v48 = vpack.i.b16 %v1606_v9, %v1606_v9 }
  0x9d   : > { %v1393_v23 = vsel %vm1238_vm2, %v1389_v27, %v1390_v50  ;;  %v1394_v43 = vsel %vm1289_vm3, %v1391_v24, %v1392_v51  ;;  %v6313_v51 = vrot.slane %v6277_v45, %v5556_v17  ;;  %v1614_v27 = vpack.i.b16 %v1613_v1, %v1613_v1 }
  0x9e   : > { %9295 = vst [vmem:[#allocation99_spill] sm:$0xff] %v6302_v12  ;;  %v6304_v13 = vpop.permute.xlu0 %1209  ;;  %v6308_v35 = vrot.slane %v6286_v46, %v5607_v44  ;;  %v1438_v42 = vpop.permute.xlu1 %1437  ;;  %v1396_v21 = vsel %vm1395_vm6, %v1393_v23, %v1394_v43  ;;  %v1621_v24 = vpack.i.b16 %v1620_v34, %v1620_v34  ;;  %v1462_v50 = vrot.slane %v1454_v30, %v5607_v44 }
  0x9f   : > { %9296 = vst [vmem:[#allocation100_spill] sm:$0xff] %v6313_v51  ;;  %v6315_v58 = vmul.bf16 %v1418_v3, %v1396_v21  ;;  %v1507_v23 = vcombine.low %v6207_v36, %v6211_v6  ;;  %v1441_v43 = vrot.slane %v1438_v42, 2  ;;  %v1443_v18 = vrot.slane %v1438_v42, 4 }
  0xa0   : > { %2629 = vrot.lane.b32.xlu0 %v6308_v35, %s5428_s17  ;;  %v1580_v30 = vcombine.low %v6292_v61, %v6298_v59  ;;  %v1581_v34 = vcombine.low %v6302_v12, %v6313_v51  ;;  %v6334_v22 = vrot.slane %v1600_v25, %v5556_v17  ;;  %v6337_v21 = vrot.slane %v1607_v48, %v5556_v17 }
  0xa1   : > { %v6327_v3 = vrot.slane %v6315_v58, %v5607_v44  ;;  %v6340_v6 = vrot.slane %v1614_v27, %v5556_v17  ;;  %v6343_v53 = vrot.slane %v1621_v24, %v5556_v17  ;;  %v1470_v59 = vcombine.low %v1462_v50, %v1469_v4 }
  0xa2   : > { %v1440_v9 = vpop.permute.xlu0 %1439  ;;  %v1490_v1 = vpop.permute.xlu1 %1489  ;;  %9297 = vst [vmem:[#allocation101_spill] sm:$0xff] %v6334_v22  ;;  %9298 = vst [vmem:[#allocation102_spill] sm:$0xff] %v6337_v21  ;;  %v1514_v51 = vrot.slane %v1506_v19, %v5607_v44  ;;  %v1521_v25 = vrot.slane %v1507_v23, %v5607_v44  ;;  %v1588_v24 = vrot.slane %v1580_v30, %v5607_v44 }
  0xa3   : > { %v1442_v42 = vrot.slane %v1440_v9, 2  ;;  %v1444_v55 = vrot.slane %v1440_v9, 4  ;;  %9299 = vst [vmem:[#allocation103_spill] sm:$0xff] %v6340_v6  ;;  %9300 = vst [vmem:[#allocation104_spill] sm:$0xff] %v6343_v53  ;;  %v1493_v61 = vrot.slane %v1490_v1, 2  ;;  %v1495_v9 = vrot.slane %v1490_v1, 4 }
  0xa4   : > { %2662 = vrot.lane.b32.xlu0 %v6327_v3, %s5428_s17  ;;  %v1595_v36 = vrot.slane %v1581_v34, %v5607_v44  ;;  %v1644_v19 = vcombine.low %v6334_v22, %v6337_v21  ;;  %v1645_v23 = vcombine.low %v6340_v6, %v6343_v53 }
  0xa5   : > { %v1445_v12 = vsel %vm1238_vm2, %v1441_v43, %v1442_v42  ;;  %v1446_v48 = vsel %vm1289_vm3, %v1443_v18, %v1444_v55  ;;  %v1522_v55 = vcombine.low %v1514_v51, %v1521_v25 }
  0xa6   : > { %v1492_v5 = vpop.permute.xlu0 %1491  ;;  %v1564_v27 = vpop.permute.xlu1 %1563  ;;  %v1448_v7 = vsel %vm9124_vm7, %v1445_v12, %v1446_v48  ;;  %v1596_v21 = vcombine.low %v1588_v24, %v1595_v36  ;;  %v2583_v36 = vcombine.low %v6269_v54, %v6269_v54 }
  0xa7   : > { %v1494_v4 = vrot.slane %v1492_v5, 2  ;;  %v1496_v50 = vrot.slane %v1492_v5, 4  ;;  %v1472_v18 = vmul.bf16 %v1470_v59, %v1448_v7  ;;  %v1567_v12 = vrot.slane %v1564_v27, 2 }
  0xa8   : > { %v1569_v42 = vrot.slane %v1564_v27, 4  ;;  %v1652_v7 = vrot.slane %v1644_v19, %v5607_v44  ;;  %v1659_v59 = vrot.slane %v1645_v23, %v5607_v44 }
  0xa9   : > { %v1497_v43 = vsel %vm1238_vm2, %v1493_v61, %v1494_v4  ;;  %v1498_v1 = vsel %vm1289_vm3, %v1495_v9, %v1496_v50  ;;  %v6361_v30 = vrot.slane %v1472_v18, %v5607_v44 }
  0xaa   : > { %v1566_v48 = vpop.permute.xlu0 %1565  ;;  %v1628_v34 = vpop.permute.xlu1 %1627  ;;  %v1500_v5 = vsel %vm9111_vm8, %v1497_v43, %v1498_v1 }
  0xab   : > { %v1568_v22 = vrot.slane %v1566_v48, 2  ;;  %v1570_v16 = vrot.slane %v1566_v48, 4  ;;  %2689 = vrot.lane.b32.xlu1 %v6361_v30, %s5428_s17  ;;  %v1524_v61 = vmul.bf16 %v1522_v55, %v1500_v5  ;;  %v1631_v9 = vrot.slane %v1628_v34, 2 }
  0xac   : > { %v1633_v27 = vrot.slane %v1628_v34, 4  ;;  %v1660_v55 = vcombine.low %v1652_v7, %v1659_v59  ;;  %v2627_v48 = vcombine.high %v6308_v35, %v6308_v35  ;;  %v2599_v34 = vcombine.low %v6281_v10, %v6281_v10 }
  0xad   : > { %v1571_v51 = vsel %vm1238_vm2, %v1567_v12, %v1568_v22  ;;  %v1572_v25 = vsel %vm1289_vm3, %v1569_v42, %v1570_v16  ;;  %v6371_v50 = vrot.slane %v1524_v61, %v5607_v44  ;;  %v6382_v12 = vrot.slane %v2583_v36, %v5607_v44 }
  0xae   : > { %v1630_v4 = vpop.permute.xlu0 %1629  ;;  %v1574_v24 = vsel %vm1573_vm9, %v1571_v51, %v1572_v25  ;;  %v2612_v5 = vcombine.high %v6286_v46, %v6286_v46  ;;  %v2657_v7 = vcombine.high %v6327_v3, %v6327_v3  ;;  %v2670_v59 = vcombine.high %v1472_v18, %v1472_v18 }
  0xaf   : > { %v1632_v19 = vrot.slane %v1630_v4, 2  ;;  %v1634_v23 = vrot.slane %v1630_v4, 4  ;;  %v1598_v43 = vmul.bf16 %v1596_v21, %v1574_v24  ;;  %2722 = vrot.lane.b32.xlu1 %v6371_v50, %s5428_s17  ;;  %v2641_v51 = vcombine.low %v6315_v58, %v6315_v58 }
  0xb0   : > { %v2626_v35 = vrot.slane %v2612_v5, %v5607_v44  ;;  %v6405_v25 = vrot.slane %v2670_v59, %v5607_v44  ;;  %v2699_v10 = vcombine.low %v1524_v61, %v1524_v61  ;;  %v6412_v46 = vrot.slane %v6267_v52, %v5614_v47 }
  0xb1   : > { %v1635_v16 = vsel %vm1238_vm2, %v1631_v9, %v1632_v19  ;;  %v1636_v22 = vsel %vm1289_vm3, %v1633_v27, %v1634_v23  ;;  %v2735_v1 = vrot.slane %v1598_v43, %v5607_v44  ;;  %v6416_v3 = vrot.slane %v6271_v49, %v5614_v47  ;;  %v1680_v27 = vpop.permute.xlu1 %1679 }
  0xb2   : > { %v1638_v54 = vsel %vm9110_vm10, %v1635_v16, %v1636_v22  ;;  %9301 = vst [vmem:[#allocation105_spill] sm:$0xff] %v6412_v46  ;;  %v6420_v58 = vrot.slane %v6273_v8, %v5614_v47  ;;  %v6424_v18 = vrot.slane %v6277_v45, %v5614_v47  ;;  %v2648_v61 = vrot.slane %v2641_v51, %v5607_v44  ;;  %v1682_v52 = vpop.permute.xlu0 %1681 }
  0xb3   : > { %2745 = vrot.lane.b32.xlu0 %v2735_v1, %s5428_s17  ;;  %v1662_v42 = vmul.bf16 %v1660_v55, %v1638_v54  ;;  %2602 = vrot.lane.b32.xlu1 %v6382_v12, %s5428_s17  ;;  %9302 = vst [vmem:[#allocation106_spill] sm:$0xff] %v6416_v3  ;;  %v6428_v9 = vrot.slane %v2699_v10, %v5607_v44  ;;  %v1683_v45 = vrot.slane %v1680_v27, 2  ;;  %v1685_v36 = vrot.slane %v1680_v27, 4 }
  0xb4   : > { %9303 = vst [vmem:[#allocation107_spill] sm:$0xff] %v6420_v58  ;;  %9304 = vst [vmem:[#allocation108_spill] sm:$0xff] %v6424_v18  ;;  %v1696_v49 = vcombine.low %v6412_v46, %v6416_v3  ;;  %v1697_v8 = vcombine.low %v6420_v58, %v6424_v18  ;;  %v2685_v47 = vcombine.low %v6361_v30, %v6361_v30  ;;  %v1684_v24 = vrot.slane %v1682_v52, 2 }
  0xb5   : > { %v2771_v21 = vrot.slane %v1662_v42, %v5607_v44  ;;  %v2743_v4 = vcombine.high %v2735_v1, %v2735_v1  ;;  %v1686_v19 = vrot.slane %v1682_v52, 4  ;;  %v2715_v16 = vcombine.low %v6371_v50, %v6371_v50 }
  0xb6   : > { %v1704_v23 = vrot.slane %v1696_v49, %v5607_v44  ;;  %v1711_v55 = vrot.slane %v1697_v8, %v5607_v44  ;;  %v2728_v22 = vcombine.high %v1598_v43, %v1598_v43  ;;  %v1211_v30 = vrot.slane %v6304_v13, 6 }
  0xb7   : > { %2778 = vrot.lane.b32.xlu0 %v2771_v21, %s5428_s17  ;;  %2631 = vrot.lane.b32.xlu1 %v2627_v48, %s5428_s17  ;;  %v2773_v54 = vcombine.high %v2771_v21, %v2771_v21  ;;  %v1687_v1 = vsel %vm1238_vm2, %v1683_v45, %v1684_v24  ;;  %v1688_v48 = vsel %vm1289_vm3, %v1685_v36, %v1686_v19  ;;  %v452_v36 = vpop.permute.xlu0 %451 }
  0xb8   : > { %v2742_v5 = vrot.slane %v2728_v22, %v5607_v44  ;;  %v1690_v50 = vsel %vm9123_vm11, %v1687_v1, %v1688_v48  ;;  %v1213_v43 = vsel %vm9053_vm12, %v1211_v30, %v6304_v13  ;;  %v2628_v59 = vcombine.high %v2626_v35, %v2626_v35 }
  0xb9   : > { %v1216_v51 = vmul.bf16 %v1213_v43, %v5596_v41  ;;  %v1217_v10 = vmul.bf16 %v1211_v30, %v5594_v40  ;;  %v2656_v52 = vcombine.high %v2648_v61, %v2648_v61  ;;  %v2686_v24 = vcombine.low %v6405_v25, %v6405_v25 }
  0xba   : > { %v2744_v8 = vcombine.high %v2742_v5, %v2742_v5  ;;  %v2714_v22 = vcombine.low %v6428_v9, %v6428_v9  ;;  %vm9058_vm12 = vcmask 531456  }
  0xbb   : > { %2604 = vrot.lane.b32.xlu0 %v2599_v34, %s5428_s17  ;;  %2664 = vrot.lane.b32.xlu1 %v2657_v7, %s5428_s17  ;;  %v1712_v34 = vcombine.low %v1704_v23, %v1711_v55  ;;  %v2757_v7 = vcombine.low %v1662_v42, %v1662_v42  ;;  %v2528_v13 = vrot.slane %v1216_v51, %v5607_v44  ;;  %v6480_v30 = vpop.permute.xlu0 %543 }
  0xbc   : > { %v2514_v55 = vcombine.low %v1216_v51, %v1216_v51 }
  0xbd   : > { %v1714_v21 = vmul.bf16 %v1712_v34, %v1690_v50  ;;  %v2764_v27 = vrot.slane %v2757_v7, %v5607_v44  ;;  %v2530_v19 = vcombine.high %v2528_v13, %v2528_v13 }
  0xbe   : > { %v2521_v1 = vrot.slane %v2514_v55, %v5607_v44 }
  0xbf   : > { %2633 = vrot.lane.b32.xlu0 %v2626_v35, %s5428_s17  ;;  %2693 = vrot.lane.b32.xlu1 %v6405_v25, %s5428_s17  ;;  %v2793_v42 = vrot.slane %v1714_v21, %v5607_v44  ;;  %v2531_v35 = vcombine.low %v1217_v10, %v1217_v10  ;;  %v2772_v45 = vcombine.high %v2764_v27, %v2764_v27 }
  0xc0   : > { %v2529_v7 = vcombine.high %v2521_v1, %v2521_v1 }
  0xc1   : > { %v2538_v49 = vrot.slane %v2531_v35, %v5607_v44  ;;  %v2801_v48 = vcombine.low %v2793_v42, %v2793_v42 }
  0xc3   : > { %2658 = vrot.lane.b32.xlu0 %v2648_v61, %s5428_s17  ;;  %2718 = vrot.lane.b32.xlu1 %v6428_v9, %s5428_s17  ;;  %v2598_v61 = vcombine.low %v6382_v12, %v6382_v12  ;;  %v6489_v9 = vpop.permute.xlu0 %635 }
  0xc7   : > { %2687 = vrot.lane.b32.xlu0 %v2685_v47, %s5428_s17  ;;  %2747 = vrot.lane.b32.xlu1 %v2743_v4, %s5428_s17  ;;  %v406_v47 = vpop.permute.xlu1 %405 }
  0xc8   : > { %v407_v4 = vrot.slane %v406_v47, 6 }
  0xca   : > { %v409_v23 = vsel %vm9041_vm13, %v407_v4, %v406_v47  ;;  %vm9083_vm13 = vcmask 130048  }
  0xcb   : > { %2720 = vrot.lane.b32.xlu0 %v2715_v16, %s5428_s17  ;;  %2780 = vrot.lane.b32.xlu1 %v2773_v54, %s5428_s17  ;;  %v498_v12 = vpop.permute.xlu1 %497  ;;  %v412_v16 = vmul.bf16 %v409_v23, %v5596_v41  ;;  %v2786_v54 = vcombine.high %v1714_v21, %v1714_v21  ;;  %v413_v21 = vmul.bf16 %v407_v4, %v5594_v40 }
  0xcc   : > { %v499_v47 = vrot.slane %v498_v12, 6 }
  0xcd   : > { %v1735_v25 = vcombine.low %v412_v16, %v412_v16  ;;  %v2800_v34 = vrot.slane %v2786_v54, %v5607_v44  ;;  %v1752_v35 = vcombine.low %v413_v21, %v413_v21 }
  0xcf   : > { %2749 = vrot.lane.b32.xlu0 %v2742_v5, %s5428_s17  ;;  %2635 = vrot.lane.b32.xlu1 %v2628_v59, %s5428_s17  ;;  %v453_v5 = vrot.slane %v452_v36, 6  ;;  %v6486_v50 = vpop.permute.xlu1 %589  ;;  %v2802_v43 = vcombine.low %v2800_v34, %v2800_v34  ;;  %v1742_v59 = vrot.slane %v1735_v25, %v5607_v44  ;;  %v505_v25 = vmul.bf16 %v499_v47, %v5594_v40 }
  0xd0   : > { %v591_v21 = vrot.slane %v6486_v50, 6 }
  0xd1   : > { %v455_v51 = vsel %vm454_vm14, %v453_v5, %v452_v36  ;;  %v459_v36 = vmul.bf16 %v453_v5, %v5594_v40  ;;  %v1834_v5 = vcombine.low %v505_v25, %v505_v25 }
  0xd3   : > { %2774 = vrot.lane.b32.xlu0 %v2764_v27, %s5428_s17  ;;  %2660 = vrot.lane.b32.xlu1 %v2656_v52, %s5428_s17  ;;  %v6497_v10 = vpop.permute.xlu1 %681  ;;  %v458_v27 = vmul.bf16 %v455_v51, %v5596_v41  ;;  %v1749_v52 = vrot.slane %v412_v16, %v5607_v44 }
  0xd5   : > { %v1783_v23 = vrot.slane %v458_v27, %v5607_v44 }
  0xd7   : > { %2543 = vrot.lane.b32.xlu0 %v2528_v13, %s9116_s9  ;;  %2805 = vrot.lane.b32.xlu1 %v2793_v42, %s5428_s17  ;;  %v1750_v42 = vcombine.high %v1742_v59, %v1742_v59  ;;  %v6501_v13 = vpop.permute.xlu0 %749 }
  0xdb   : > { %2547 = vrot.lane.b32.xlu0 %v2538_v49, %s9116_s9  ;;  %2751 = vrot.lane.b32.xlu1 %v2744_v8, %s5428_s17  ;;  %v1751_v49 = vcombine.high %v1749_v52, %v1749_v52  ;;  %v1776_v8 = vcombine.high %v458_v27, %v458_v27  ;;  %v6509_v4 = vpop.permute.xlu0 %853 }
  0xdf   : > { %2600 = vrot.lane.b32.xlu0 %v2598_v61, %s5428_s17  ;;  %2776 = vrot.lane.b32.xlu1 %v2772_v45, %s5428_s17  ;;  %v6505_v61 = vpop.permute.xlu1 %807  ;;  %v1759_v45 = vrot.slane %v1752_v35, %v5607_v44 }
  0xe3   : > { %2691 = vrot.lane.b32.xlu0 %v2686_v24, %s5428_s17  ;;  %2545 = vrot.lane.b32.xlu1 %v2530_v19, %s9116_s9  ;;  %v1790_v24 = vrot.slane %v1776_v8, %v5607_v44  ;;  %v501_v19 = vsel %vm9045_vm15, %v499_v47, %v498_v12  ;;  %v6517_v55 = vpop.permute.xlu1 %899  ;;  %v593_v8 = vsel %vm9042_vm1, %v591_v21, %v6486_v50  ;;  %vm9043_vm1 = vcmask 138240  }
  0xe4   : > { %v504_v16 = vmul.bf16 %v501_v19, %v5596_v41  ;;  %vm810_vm15 = vcmask 523264  }
  0xe5   : > { %v1792_v54 = vcombine.low %v1790_v24, %v1790_v24 }
  0xe7   : > { %2716 = vrot.lane.b32.xlu0 %v2714_v22, %s5428_s17  ;;  %2539 = vrot.lane.b32.xlu1 %v2521_v1, %s9116_s9  ;;  %v6521_v22 = vpop.permute.xlu0 %945  ;;  %v1799_v1 = vrot.slane %v459_v36, %v5607_v44 }
  0xe9   : > { %v1800_v12 = vcombine.low %v1799_v1, %v1799_v1 }
  0xeb   : > { %2803 = vrot.lane.b32.xlu0 %v2801_v48, %s5428_s17  ;;  %2541 = vrot.lane.b32.xlu1 %v2529_v7, %s9116_s9  ;;  %v545_v48 = vrot.slane %v6480_v30, 6  ;;  %v6528_v7 = vpop.permute.xlu1 %991  ;;  %v6534_v27 = vpop.permute.xlu0 %1037 }
  0xed   : > { %v547_v51 = vsel %vm546_vm0, %v545_v48, %v6480_v30 }
  0xef   : > { %2807 = vrot.lane.b32.xlu0 %v2802_v43, %s5428_s17  ;;  %2809 = vrot.lane.b32.xlu1 %v2800_v34, %s5428_s17  ;;  %v1817_v34 = vcombine.low %v504_v16, %v504_v16  ;;  %v1791_v43 = vcombine.low %v1783_v23, %v1783_v23  ;;  %v6544_v30 = vpop.permute.xlu1 %1083  ;;  %v6547_v47 = vpop.permute.xlu0 %1151 }
  0xf3   : > { %1762 = vrot.lane.b32.xlu0 %v1750_v42, %s9116_s9  ;;  %1764 = vrot.lane.b32.xlu1 %v1749_v52, %s9116_s9  ;;  %v1824_v52 = vrot.slane %v1817_v34, %v5607_v44  ;;  %v550_v42 = vmul.bf16 %v547_v51, %v5596_v41  ;;  %v6556_v25 = vpop.permute.xlu0 %2571  ;;  %v637_v34 = vrot.slane %v6489_v9, 6  ;;  %v597_v51 = vmul.bf16 %v591_v21, %v5594_v40 }
  0xf5   : > { %v1859_v36 = vcombine.high %v550_v42, %v550_v42  ;;  %v1866_v19 = vrot.slane %v550_v42, %v5607_v44 }
  0xf7   : > { %1766 = vrot.lane.b32.xlu0 %v1751_v49, %s9116_s9  ;;  %1768 = vrot.lane.b32.xlu1 %v1759_v45, %s9116_s9  ;;  %v1841_v49 = vrot.slane %v1834_v5, %v5607_v44  ;;  %v596_v45 = vmul.bf16 %v593_v8, %v5596_v41  ;;  %v1873_v1 = vrot.slane %v1859_v36, %v5607_v44 }
  0xf8   : > { %v1916_v36 = vcombine.low %v597_v51, %v597_v51 }
  0xf9   : > { %v1899_v50 = vcombine.low %v596_v45, %v596_v45  ;;  %v1875_v5 = vcombine.high %v1873_v1, %v1873_v1 }
  0xfb   : > { %1760 = vrot.lane.b32.xlu0 %v1742_v59, %s9116_s9  ;;  %1803 = vrot.lane.b32.xlu1 %v1783_v23, %s5405_s13  ;;  %v1831_v59 = vrot.slane %v504_v16, %v5607_v44  ;;  %v1832_v23 = vcombine.low %v1824_v52, %v1824_v52  ;;  %v6553_v16 = vpop.permute.xlu1 %2573  ;;  %s9372_s9 = smov 17  }
  0xfd   : > { %v1833_v35 = vcombine.low %v1831_v59, %v1831_v59 }
  0xff   : > { %1805 = vrot.lane.b32.xlu0 %v1792_v54, %s5405_s13  ;;  %1807 = vrot.lane.b32.xlu1 %v1790_v24, %s5405_s13  ;;  %v1842_v24 = vcombine.low %v1841_v49, %v1841_v49  ;;  %v1874_v54 = vcombine.high %v1866_v19, %v1866_v19  ;;  %v1913_v49 = vrot.slane %v596_v45, %v5607_v44  ;;  %v683_v45 = vrot.slane %v6497_v10, 6 }
 0x101   : > { %v1915_v21 = vcombine.high %v1913_v49, %v1913_v49  ;;  %v685_v51 = vsel %vm9043_vm1, %v683_v45, %v6497_v10  ;;  %v751_v10 = vrot.slane %v6501_v13, 6  ;;  %vm9067_vm1 = vcmask 146432  }
 0x103   : > { %1809 = vrot.lane.b32.xlu0 %v1800_v12, %s5405_s13  ;;  %1801 = vrot.lane.b32.xlu1 %v1791_v43, %s5405_s13  ;;  %v551_v12 = vmul.bf16 %v545_v48, %v5594_v40  ;;  %v1906_v43 = vrot.slane %v1899_v50, %v5607_v44  ;;  %v639_v48 = vsel %vm9083_vm13, %v637_v34, %v6489_v9  ;;  %vm9091_vm13 = vcmask 654336  }
 0x104   : > { %v642_v8 = vmul.bf16 %v639_v48, %v5596_v41  ;;  %v1923_v50 = vrot.slane %v1916_v36, %v5607_v44  ;;  %v689_v36 = vmul.bf16 %v683_v45, %v5594_v40  ;;  %v753_v18 = vsel %vm9067_vm1, %v751_v10, %v6501_v13 }
 0x105   : > { %v1882_v42 = vrot.slane %v551_v12, %v5607_v44  ;;  %vm994_vm1 = vcmask 596992  }
 0x106   : > { %v1940_v9 = vcombine.high %v642_v8, %v642_v8 }
 0x107   : > { %1845 = vrot.lane.b32.xlu0 %v1824_v52, %s9114_s14  ;;  %1847 = vrot.lane.b32.xlu1 %v1833_v35, %s9114_s14  ;;  %v6568_v52 = vpop.permute.xlu0 %2575  ;;  %v1914_v35 = vcombine.high %v1906_v43, %v1906_v43 }
 0x10b   : > { %1849 = vrot.lane.b32.xlu0 %v1831_v59, %s9114_s14  ;;  %1851 = vrot.lane.b32.xlu1 %v1842_v24, %s9114_s14  ;;  %v6564_v59 = vpop.permute.xlu1 %2577 }
 0x10f   : > { %1843 = vrot.lane.b32.xlu0 %v1832_v23, %s9114_s14  ;;  %1885 = vrot.lane.b32.xlu1 %v1874_v54, %s5408_s16  ;;  %v6577_v24 = vpop.permute.xlu1 %2606  ;;  %s9366_s14 = smov 9  }
 0x112   : > { %v6579_v23 = vpop.permute.xlu0 %2629 }
 0x113   : > { %1887 = vrot.lane.b32.xlu0 %v1873_v1, %s5408_s16  ;;  %1889 = vrot.lane.b32.xlu1 %v1875_v5, %s5408_s16  ;;  %v643_v1 = vmul.bf16 %v637_v34, %v5594_v40  ;;  %v1954_v5 = vrot.slane %v1940_v9, %v5607_v44 }
 0x116   : > { %v6590_v12 = vpop.permute.xlu0 %2662 }
 0x117   : > { %1891 = vrot.lane.b32.xlu0 %v1882_v42, %s5408_s16  ;;  %1926 = vrot.lane.b32.xlu1 %v1914_v35, %s9112_s21  ;;  %v1947_v42 = vrot.slane %v642_v8, %v5607_v44  ;;  %v688_v35 = vmul.bf16 %v685_v51, %v5596_v41 }
 0x119   : > { %v1981_v8 = vcombine.low %v688_v35, %v688_v35  ;;  %v1995_v45 = vrot.slane %v688_v35, %v5607_v44 }
 0x11b   : > { %1928 = vrot.lane.b32.xlu0 %v1913_v49, %s9112_s21  ;;  %1930 = vrot.lane.b32.xlu1 %v1915_v21, %s9112_s21  ;;  %v1956_v49 = vcombine.low %v1954_v5, %v1954_v5  ;;  %v1988_v35 = vrot.slane %v1981_v8, %v5607_v44 }
 0x11d   : > { %v6585_v54 = vpop.permute.xlu1 %2689 }
 0x11f   : > { %1932 = vrot.lane.b32.xlu0 %v1923_v50, %s9112_s21  ;;  %1883 = vrot.lane.b32.xlu1 %v1866_v19, %s5408_s16  ;;  %v1963_v19 = vrot.slane %v643_v1, %v5607_v44  ;;  %v1998_v1 = vcombine.low %v689_v36, %v689_v36  ;;  %v756_v36 = vmul.bf16 %v753_v18, %v5596_v41 }
 0x121   : > { %v6596_v48 = vpop.permute.xlu1 %2722  ;;  %v1964_v50 = vcombine.low %v1963_v19, %v1963_v19  ;;  %v2030_v8 = vrot.slane %v756_v36, %v5607_v44 }
 0x122   : > { %9305 = vst [vmem:[#allocation109_spill] sm:$0xff] %v6596_v48 }
 0x123   : > { %1924 = vrot.lane.b32.xlu0 %v1906_v43, %s9112_s21  ;;  %1967 = vrot.lane.b32.xlu1 %v1947_v42, %s9120_s22  ;;  %v9047_v43 = vmov 0   ;;  %v2038_v38 = vcombine.high %v2030_v8, %v2030_v8  ;;  %s9362_s21 = smov 10  }
 0x124   : > { %3028 = vmatprep.mubr.bf16.mxu0 %v9047_v43  ;;  %5283 = vset.pattern.permute.xlu1 %v9047_v43 }
 0x125   : > { %v6602_v34 = vpop.permute.xlu0 %2745  ;;  %v6605_v21 = vpop.permute.xlu1 %2602  ;;  %3069 = vmatprep.mubr.bf16.mxu1 %v9047_v43  ;;  %5284 = vset.pattern.permute.xlu0 %v9047_v43  ;;  %v2005_v43 = vrot.slane %v1998_v1, %v5607_v44 }
 0x126   : > { %9306 = vst [vmem:[#allocation110_spill] sm:$0xff] %v6602_v34 }
 0x127   : > { %1969 = vrot.lane.b32.xlu0 %v1956_v49, %s9120_s22  ;;  %1971 = vrot.lane.b32.xlu1 %v1954_v5, %s9120_s22  ;;  %v1955_v49 = vcombine.low %v1947_v42, %v1947_v42  ;;  %v809_v5 = vrot.slane %v6505_v61, 6  ;;  %v1997_v42 = vcombine.low %v1995_v45, %v1995_v45  ;;  %v2006_v46 = vcombine.low %v2005_v43, %v2005_v43 }
 0x129   : > { %v6611_v9 = vpop.permute.xlu0 %2778  ;;  %v6616_v51 = vpop.permute.xlu1 %2631  ;;  %v811_v3 = vsel %vm810_vm15, %v809_v5, %v6505_v61  ;;  %v1996_v61 = vcombine.low %v1988_v35, %v1988_v35 }
 0x12a   : > { %9307 = vst [vmem:[#allocation111_spill] sm:$0xff] %v6611_v9 }
 0x12b   : > { %1973 = vrot.lane.b32.xlu0 %v1964_v50, %s9120_s22  ;;  %1965 = vrot.lane.b32.xlu1 %v1955_v49, %s9120_s22  ;;  %v814_v50 = vmul.bf16 %v811_v3, %v5596_v41  ;;  %v2023_v49 = vcombine.high %v756_v36, %v756_v36  ;;  %v757_v3 = vmul.bf16 %v751_v10, %v5594_v40  ;;  %s9382_s22 = smov 18  }
 0x12d   : > { %v6624_v19 = vpop.permute.xlu0 %2604  ;;  %v6628_v58 = vpop.permute.xlu1 %2664  ;;  %v2063_v53 = vcombine.low %v814_v50, %v814_v50  ;;  %v2077_v10 = vrot.slane %v814_v50, %v5607_v44 }
 0x12e   : > { %9308 = vst [vmem:[#allocation112_spill] sm:$0xff] %v6628_v58 }
 0x12f   : > { %2009 = vrot.lane.b32.xlu0 %v1988_v35, %s9106_s23  ;;  %2011 = vrot.lane.b32.xlu1 %v1997_v42, %s9106_s23  ;;  %v2037_v42 = vrot.slane %v2023_v49, %v5607_v44  ;;  %v815_v49 = vmul.bf16 %v809_v5, %v5594_v40 }
 0x131   : > { %v6635_v13 = vpop.permute.xlu0 %2633  ;;  %v6639_v18 = vpop.permute.xlu1 %2693  ;;  %v2039_v35 = vcombine.high %v2037_v42, %v2037_v42 }
 0x133   : > { %2013 = vrot.lane.b32.xlu0 %v1995_v45, %s9106_s23  ;;  %2015 = vrot.lane.b32.xlu1 %v2006_v46, %s9106_s23  ;;  %v2070_v45 = vrot.slane %v2063_v53, %v5607_v44  ;;  %v855_v46 = vrot.slane %v6509_v4, 6 }
 0x135   : > { %v6643_v1 = vpop.permute.xlu0 %2658  ;;  %v6646_v6 = vpop.permute.xlu1 %2718  ;;  %v857_v53 = vsel %vm9058_vm12, %v855_v46, %v6509_v4  ;;  %v2078_v37 = vcombine.high %v2070_v45, %v2070_v45  ;;  %vm9062_vm12 = vcmask 539648  }
 0x137   : > { %2007 = vrot.lane.b32.xlu0 %v1996_v61, %s9106_s23  ;;  %2049 = vrot.lane.b32.xlu1 %v2038_v38, %s9118_s29  ;;  %v2046_v38 = vrot.slane %v757_v3, %v5607_v44  ;;  %v2079_v3 = vcombine.high %v2077_v10, %v2077_v10  ;;  %s9342_s23 = smov 82  }
 0x139   : > { %v6651_v43 = vpop.permute.xlu0 %2687  ;;  %v6655_v36 = vpop.permute.xlu1 %2747 }
 0x13a   : > { %9309 = vst [vmem:[#allocation113_spill] sm:$0xff] %v6655_v36 }
 0x13b   : > { %2051 = vrot.lane.b32.xlu0 %v2037_v42, %s9118_s29  ;;  %2053 = vrot.lane.b32.xlu1 %v2039_v35, %s9118_s29  ;;  %v2080_v42 = vcombine.low %v815_v49, %v815_v49  ;;  %v860_v35 = vmul.bf16 %v857_v53, %v5596_v41  ;;  %v861_v49 = vmul.bf16 %v855_v46, %v5594_v40 }
 0x13d   : > { %v6660_v61 = vpop.permute.xlu0 %2720  ;;  %v6666_v39 = vpop.permute.xlu1 %2780  ;;  %v2104_v4 = vcombine.high %v860_v35, %v860_v35  ;;  %v2087_v15 = vrot.slane %v2080_v42, %v5607_v44  ;;  %v2111_v42 = vrot.slane %v860_v35, %v5607_v44  ;;  %v2127_v46 = vrot.slane %v861_v49, %v5607_v44 }
 0x13e   : > { %9310 = vst [vmem:[#allocation114_spill] sm:$0xff] %v6660_v61  ;;  %9311 = vst [vmem:[#allocation115_spill] sm:$0xff] %v6666_v39  ;;  %v993_v49 = vrot.slane %v6528_v7, 6 }
 0x13f   : > { %2055 = vrot.lane.b32.xlu0 %v2046_v38, %s9118_s29  ;;  %2090 = vrot.lane.b32.xlu1 %v2078_v37, %s9312_s15  ;;  %v901_v38 = vrot.slane %v6517_v55, 6  ;;  %v2119_v11 = vcombine.low %v2111_v42, %v2111_v42 }
 0x141   : > { %v6671_v5 = vpop.permute.xlu0 %2749  ;;  %v6673_v26 = vpop.permute.xlu1 %2635 }
 0x142   : > { %9313 = vst [vmem:[#allocation116_spill] sm:$0xff] %v6671_v5 }
 0x143   : > { %2092 = vrot.lane.b32.xlu0 %v2077_v10, %s9312_s15  ;;  %2094 = vrot.lane.b32.xlu1 %v2079_v3, %s9312_s15  ;;  %v2118_v10 = vrot.slane %v2104_v4, %v5607_v44  ;;  %v903_v3 = vsel %vm9062_vm12, %v901_v38, %v6517_v55  ;;  %v947_v55 = vrot.slane %v6521_v22, 6  ;;  %vm9073_vm12 = vcmask 588800  }
 0x145   : > { %v6677_v50 = vpop.permute.xlu0 %2774  ;;  %v6681_v37 = vpop.permute.xlu1 %2660  ;;  %v2120_v4 = vcombine.low %v2118_v10, %v2118_v10  ;;  %v949_v63 = vsel %vm9073_vm12, %v947_v55, %v6521_v22  ;;  %vm9082_vm12 = vcmask 605184  }
 0x146   : > { %9314 = vst [vmem:[#allocation117_spill] sm:$0xff] %v6677_v50 }
 0x147   : > { %2096 = vrot.lane.b32.xlu0 %v2087_v15, %s9312_s15  ;;  %2047 = vrot.lane.b32.xlu1 %v2030_v8, %s9118_s29  ;;  %v906_v15 = vmul.bf16 %v903_v3, %v5596_v41  ;;  %v907_v8 = vmul.bf16 %v901_v38, %v5594_v40  ;;  %v2128_v3 = vcombine.low %v2127_v46, %v2127_v46  ;;  %s9376_s29 = smov 16  }
 0x149   : > { %v6686_v53 = vpop.permute.xlu0 %2543  ;;  %v6692_v14 = vpop.permute.xlu1 %2805  ;;  %v2163_v35 = vcombine.low %v907_v8, %v907_v8  ;;  %v2160_v38 = vrot.slane %v906_v15, %v5607_v44 }
 0x14a   : > { %9315 = vst [vmem:[#allocation118_spill] sm:$0xff] %v6692_v14 }
 0x14b   : > { %2088 = vrot.lane.b32.xlu0 %v2070_v45, %s9312_s15  ;;  %2131 = vrot.lane.b32.xlu1 %v2111_v42, %s5430_s18  ;;  %v2146_v45 = vcombine.low %v906_v15, %v906_v15  ;;  %v995_v15 = vsel %vm994_vm1, %v993_v49, %v6528_v7  ;;  %v2162_v22 = vcombine.low %v2160_v38, %v2160_v38 }
 0x14c   : > { %v2170_v28 = vrot.slane %v2163_v35, %v5607_v44 }
 0x14d   : > { %v6699_v20 = vpop.permute.xlu0 %2547  ;;  %v6702_v2 = vpop.permute.xlu1 %2751  ;;  %v2153_v46 = vrot.slane %v2146_v45, %v5607_v44 }
 0x14e   : > { %9316 = vst [vmem:[#allocation119_spill] sm:$0xff] %v6702_v2  ;;  %v2171_v7 = vcombine.low %v2170_v28, %v2170_v28  ;;  %v6746_v28 = vrot.slane %v5650_v57, %v5556_v17 }
 0x14f   : > { %2133 = vrot.lane.b32.xlu0 %v2120_v4, %s5430_s18  ;;  %2135 = vrot.lane.b32.xlu1 %v2118_v10, %s5430_s18  ;;  %v952_v10 = vmul.bf16 %v949_v63, %v5596_v41  ;;  %v2161_v31 = vcombine.low %v2153_v46, %v2153_v46 }
 0x150   : > { %9320 = vst [vmem:[#allocation123_spill] sm:$0xff] %v6746_v28 }
 0x151   : > { %v6706_v29 = vpop.permute.xlu0 %2600  ;;  %v6712_v0 = vpop.permute.xlu1 %2776  ;;  %v2189_v63 = vcombine.high %v952_v10, %v952_v10  ;;  %v2196_v42 = vrot.slane %v952_v10, %v5607_v44  ;;  %v6742_v10 = vrot.slane %v5648_v56, %v5556_v17  ;;  %v953_v56 = vmul.bf16 %v947_v55, %v5594_v40 }
 0x152   : > { %9317 = vst [vmem:[#allocation120_spill] sm:$0xff] %v6712_v0 }
 0x153   : > { %2137 = vrot.lane.b32.xlu0 %v2128_v3, %s5430_s18  ;;  %2129 = vrot.lane.b32.xlu1 %v2119_v11, %s5430_s18  ;;  %v998_v11 = vmul.bf16 %v995_v15, %v5596_v41  ;;  %v2203_v33 = vrot.slane %v2189_v63, %v5607_v44  ;;  %9319 = vst [vmem:[#allocation122_spill] sm:$0xff] %v6742_v10 }
 0x154   : > { %v6754_v63 = vrot.slane %v5663_v62, %v5556_v17  ;;  %v999_v62 = vmul.bf16 %v993_v49, %v5594_v40 }
 0x155   : > { %v6717_v8 = vpop.permute.xlu0 %2691  ;;  %v6722_v4 = vpop.permute.xlu1 %2545  ;;  %v2230_v35 = vcombine.low %v998_v11, %v998_v11  ;;  %v2244_v55 = vrot.slane %v998_v11, %v5607_v44 }
 0x156   : > { %9322 = vst [vmem:[#allocation125_spill] sm:$0xff] %v6754_v63 }
 0x157   : > { %2174 = vrot.lane.b32.xlu0 %v2153_v46, %s9079_s19  ;;  %2176 = vrot.lane.b32.xlu1 %v2162_v22, %s9079_s19  ;;  %v2204_v22 = vcombine.high %v2196_v42, %v2196_v42  ;;  %v1039_v46 = vrot.slane %v6534_v27, 6  ;;  %v2237_v57 = vrot.slane %v2230_v35, %v5607_v44  ;;  %v2212_v35 = vrot.slane %v953_v56, %v5607_v44 }
 0x158   : > { %v9085_v56 = vrot.slane %v6547_v47, 6 }
 0x159   : > { %v6729_v3 = vpop.permute.xlu0 %2716  ;;  %v6731_v45 = vpop.permute.xlu1 %2539 }
 0x15b   : > { %2178 = vrot.lane.b32.xlu0 %v2160_v38, %s9079_s19  ;;  %2180 = vrot.lane.b32.xlu1 %v2171_v7, %s9079_s19  ;;  %v6750_v38 = vrot.slane %v5658_v60, %v5556_v17  ;;  %v2205_v60 = vcombine.high %v2203_v33, %v2203_v33  ;;  %v337_v17 = vcombine.low %v6742_v10, %v6746_v28 }
 0x15c   : > { %v2245_v28 = vcombine.high %v2237_v57, %v2237_v57 }
 0x15d   : > { %v6736_v32 = vpop.permute.xlu0 %2803  ;;  %v6738_v15 = vpop.permute.xlu1 %2541  ;;  %9321 = vst [vmem:[#allocation124_spill] sm:$0xff] %v6750_v38 }
 0x15e   : > { %9318 = vst [vmem:[#allocation121_spill] sm:$0xff] %v6736_v32 }
 0x15f   : > { %2172 = vrot.lane.b32.xlu0 %v2161_v31, %s9079_s19  ;;  %2215 = vrot.lane.b32.xlu1 %v2204_v22, %s9088_s20  ;;  %v338_v31 = vcombine.low %v6750_v38, %v6754_v63  ;;  %v345_v38 = vrot.slane %v337_v17, %v5607_v44  ;;  %s9102_s19 = smov 55   ;;  %v1085_v17 = vrot.slane %v6544_v30, 6 }
 0x161   : > { %v6760_v7 = vpop.permute.xlu0 %2807  ;;  %v6763_v39 = vpop.permute.xlu1 %2809  ;;  %v352_v63 = vrot.slane %v338_v31, %v5607_v44 }
 0x162   : > { %9323 = vst [vmem:[#allocation126_spill] sm:$0xff] %v6760_v7  ;;  %9324 = vst [vmem:[#allocation127_spill] sm:$0xff] %v6763_v39  ;;  %v1041_v39 = vsel %vm9082_vm12, %v1039_v46, %v6534_v27  ;;  %v2246_v7 = vcombine.high %v2244_v55, %v2244_v55  ;;  %vm1154_vm12 = vcmask 662528  }
 0x163   : > { %2217 = vrot.lane.b32.xlu0 %v2203_v33, %s9088_s20  ;;  %2219 = vrot.lane.b32.xlu1 %v2205_v60, %s9088_s20  ;;  %v2247_v33 = vcombine.low %v999_v62, %v999_v62  ;;  %v1044_v49 = vmul.bf16 %v1041_v39, %v5596_v41  ;;  %v353_v27 = vcombine.low %v345_v38, %v352_v63 }
 0x164   : > { %v1155_v39 = vsel %vm1154_vm12, %v9085_v56, %v6547_v47  ;;  %v1087_v63 = vsel %vm9091_vm13, %v1085_v17, %v6544_v30  ;;  %v1091_v30 = vmul.bf16 %v1085_v17, %v5594_v40  ;;  %vm2355_vm13 = vcmask 1041408  }
 0x165   : > { %v6773_v22 = vpop.permute.xlu0 %1762  ;;  %v1765_v10 = vpop.permute.xlu1 %1764  ;;  %v2272_v31 = vcombine.high %v1044_v49, %v1044_v49  ;;  %v355_v38 = vmul.bf16 %v353_v27, %v5596_v41  ;;  %v2279_v56 = vrot.slane %v1044_v49, %v5607_v44 }
 0x166   : > { %v2331_v36 = vcombine.low %v1091_v30, %v1091_v30 }
 0x167   : > { %2221 = vrot.lane.b32.xlu0 %v2212_v35, %s9088_s20  ;;  %2257 = vrot.lane.b32.xlu1 %v2245_v28, %s9102_s19  ;;  %v2254_v28 = vrot.slane %v2247_v33, %v5607_v44  ;;  %v2286_v5 = vrot.slane %v2272_v31, %v5607_v44  ;;  %v1716_v2 = vcombine.high %v355_v38, %v355_v38 }
 0x168   : > { %v6806_v9 = vrot.slane %v355_v38, %v5607_v44  ;;  %v2287_v50 = vcombine.low %v2279_v56, %v2279_v56 }
 0x169   : > { %v1767_v11 = vpop.permute.xlu0 %1766  ;;  %v1769_v60 = vpop.permute.xlu1 %1768  ;;  %v1730_v34 = vrot.slane %v1716_v2, %v5607_v44 }
 0x16a   : > { %v1731_v38 = vcombine.high %v6806_v9, %v6806_v9  ;;  %v1772_v48 = vsel %vm1291_vm4, %v1765_v10, %v1767_v11  ;;  %v1773_v61 = vsel %vm1291_vm4, %v1767_v11, %v1769_v60  ;;  %v2550_v11 = vsel %vm1291_vm4, %v6738_v15, %v6686_v53 }
 0x16b   : > { %2259 = vrot.lane.b32.xlu0 %v2244_v55, %s9102_s19  ;;  %2261 = vrot.lane.b32.xlu1 %v2246_v7, %s9102_s19  ;;  %v1045_v7 = vmul.bf16 %v1039_v46, %v5594_v40  ;;  %v1158_v55 = vmul.bf16 %v1155_v39, %v5596_v41  ;;  %v2288_v39 = vcombine.low %v2286_v5, %v2286_v5 }
 0x16d   : > { %v6787_v35 = vpop.permute.xlu0 %1760  ;;  %v6794_v62 = vpop.permute.xlu1 %1803  ;;  %v2295_v46 = vrot.slane %v1045_v7, %v5607_v44  ;;  %v6821_v17 = vrot.slane %v1158_v55, %v5607_v44 }
 0x16f   : > { %2263 = vrot.lane.b32.xlu0 %v2254_v28, %s9102_s19  ;;  %2213 = vrot.lane.b32.xlu1 %v2196_v42, %s9088_s20  ;;  %v1090_v42 = vmul.bf16 %v1087_v63, %v5596_v41  ;;  %s9100_s20 = smov 54   ;;  %v2488_v28 = vcombine.high %v1158_v55, %v1158_v55  ;;  %v2296_v14 = vcombine.low %v2295_v46, %v2295_v46 }
 0x170   : > { %v1732_v55 = vcombine.high %v1730_v34, %v1730_v34  ;;  %v2503_v30 = vcombine.high %v6821_v17, %v6821_v17 }
 0x171   : > { %v1806_v33 = vpop.permute.xlu0 %1805  ;;  %v1808_v27 = vpop.permute.xlu1 %1807  ;;  %v2328_v41 = vrot.slane %v1090_v42, %v5607_v44  ;;  %v2314_v7 = vcombine.low %v1090_v42, %v1090_v42  ;;  %v2502_v2 = vrot.slane %v2488_v28, %v5607_v44 }
 0x172   : > { %v1812_v63 = vsel %vm1343_vm5, %v6794_v62, %v1806_v33  ;;  %v1813_v58 = vsel %vm1343_vm5, %v1806_v33, %v1808_v27  ;;  %v2338_v33 = vrot.slane %v2331_v36, %v5607_v44  ;;  %v2367_v28 = vsel %vm2355_vm13, %v1732_v55, %v1773_v61 }
 0x173   : > { %2255 = vrot.lane.b32.xlu0 %v2237_v57, %s9102_s19  ;;  %2299 = vrot.lane.b32.xlu1 %v2279_v56, %s9100_s20  ;;  %v1771_v57 = vsel %vm1291_vm4, %v6773_v22, %v1765_v10  ;;  %v2330_v46 = vcombine.low %v2328_v41, %v2328_v41  ;;  %v2321_v60 = vrot.slane %v2314_v7, %v5607_v44  ;;  %s9108_s19 = smov 47  }
 0x174   : > { %v2361_v0 = vsel %vm2355_vm13, %v1731_v38, %v1771_v57  ;;  %v2552_v7 = vsel %vm1291_vm4, %v6722_v4, %v6699_v20 }
 0x175   : > { %v1810_v31 = vpop.permute.xlu0 %1809  ;;  %v1802_v49 = vpop.permute.xlu1 %1801  ;;  %v2372_v42 = vsel %vm1289_vm3, %v2361_v0, %v1812_v63  ;;  %v2364_v0 = vsel %vm2355_vm13, %v1730_v34, %v1772_v48 }
 0x176   : > { %v1814_v10 = vsel %vm1343_vm5, %v1808_v27, %v1810_v31  ;;  %v1770_v27 = vsel %vm1291_vm4, %v6787_v35, %v6773_v22  ;;  %v2374_v38 = vsel %vm1289_vm3, %v2364_v0, %v1813_v58  ;;  %v1811_v57 = vsel %vm1343_vm5, %v1802_v49, %v6794_v62 }
 0x177   : > { %2301 = vrot.lane.b32.xlu0 %v2288_v39, %s9100_s20  ;;  %2303 = vrot.lane.b32.xlu1 %v2286_v5, %s9100_s20  ;;  %v2376_v34 = vsel %vm1289_vm3, %v2367_v28, %v1814_v10  ;;  %v9325_v22 = vrot.slane %v6547_v47, 6  ;;  %v2551_v35 = vsel %vm1291_vm4, %v6686_v53, %v6722_v4  ;;  %v2819_v62 = vsel %vm2355_vm13, %v2503_v30, %v2550_v11 }
 0x178   : > { %v2358_v49 = vsel %vm2355_vm13, %v6806_v9, %v1770_v27  ;;  %v2579_v53 = vsel %vm1154_vm12, %v6556_v25, %v6553_v16  ;;  %v2329_v10 = vcombine.low %v2321_v60, %v2321_v60  ;;  %v2610_v27 = vsel %vm1154_vm12, %v6624_v19, %v6577_v24 }
 0x179   : > { %v1846_v32 = vpop.permute.xlu0 %1845  ;;  %v1848_v39 = vpop.permute.xlu1 %1847  ;;  %v1159_v58 = vmul.bf16 %v9325_v22, %v5594_v40  ;;  %v2339_v40 = vcombine.low %v2338_v33, %v2338_v33  ;;  %v2370_v55 = vsel %vm1289_vm3, %v2358_v49, %v1811_v57  ;;  %v2666_v28 = vsel %vm1154_vm12, %v6643_v1, %v6681_v37 }
 0x17a   : > { %v1854_v5 = vsel %vm1395_vm6, %v1846_v32, %v1848_v39  ;;  %v2696_v57 = vsel %vm1154_vm12, %v6585_v54, %v6717_v8  ;;  %v2724_v22 = vsel %vm1154_vm12, %v6729_v3, %v6646_v6 }
 0x17b   : > { %2305 = vrot.lane.b32.xlu0 %v2296_v14, %s9100_s20  ;;  %2297 = vrot.lane.b32.xlu1 %v2287_v50, %s9100_s20  ;;  %v2382_v56 = vsel %vm1238_vm2, %v2372_v42, %v1854_v5  ;;  %s9104_s20 = smov 48   ;;  %v2504_v5 = vcombine.high %v2502_v2, %v2502_v2  ;;  %v2822_v42 = vsel %vm2355_vm13, %v2502_v2, %v2551_v35  ;;  %v9326_v35 = vld [vmem:[#allocation112_spill] sm:$0xff] }
 0x17c   : > { %2996 = vmatprep.subr.bf16.mxu0 %v2382_v56  ;;  %v2511_v56 = vrot.slane %v1159_v58, %v5607_v44  ;;  %v2608_v2 = vsel %vm1154_vm12, %v6706_v29, %v6605_v21  ;;  %v2695_v58 = vsel %vm1154_vm12, %v6651_v43, %v6585_v54  ;;  %v9327_v54 = vld [vmem:[#allocation114_spill] sm:$0xff] }
 0x17d   : > { %v1850_v14 = vpop.permute.xlu0 %1849  ;;  %v1852_v50 = vpop.permute.xlu1 %1851  ;;  %v2825_v4 = vsel %vm2355_vm13, %v2504_v5, %v2552_v7  ;;  %v2725_v7 = vsel %vm1154_vm12, %v6646_v6, %v9327_v54 }
 0x17e   : > { %v1855_v31 = vsel %vm1395_vm6, %v1848_v39, %v1850_v14  ;;  %v1856_v48 = vsel %vm1395_vm6, %v1850_v14, %v1852_v50  ;;  %v2581_v14 = vsel %vm1154_vm12, %v6568_v52, %v6564_v59  ;;  %v2828_v0 = vsel %vm2355_vm13, %v2511_v56, %v6699_v20 }
 0x17f   : > { %2342 = vrot.lane.b32.xlu0 %v2321_v60, %s9104_s20  ;;  %v2385_v36 = vsel %vm1238_vm2, %v2374_v38, %v1855_v31  ;;  %2344 = vrot.lane.b32.xlu1 %v2330_v46, %s9104_s20  ;;  %v2388_v61 = vsel %vm1238_vm2, %v2376_v34, %v1856_v48  ;;  %v2549_v46 = vsel %vm1291_vm4, %v6731_v45, %v6738_v15 }
 0x180   : > { %3037 = vmatprep.subr.bf16.mxu1 %v2388_v61  ;;  %v2836_v45 = vsel %vm1289_vm3, %v2825_v4, %v2581_v14  ;;  %v2609_v15 = vsel %vm1154_vm12, %v6605_v21, %v6624_v19  ;;  %v2667_v31 = vsel %vm1154_vm12, %v6681_v37, %v6590_v12  ;;  %v2637_v38 = vsel %vm1154_vm12, %v6579_v23, %v6616_v51  ;;  %v9332_v4 = vld [vmem:[#allocation121_spill] sm:$0xff] }
 0x181   : > { %v1844_v63 = vpop.permute.xlu0 %1843  ;;  %v6871_v39 = vpop.permute.xlu1 %1885  ;;  %3038 = vmatpush1.bf16.msra.mxu1 %v2385_v36  ;;  %v2846_v21 = vsel %vm1238_vm2, %v2836_v45, %v2610_v27  ;;  %v2854_v37 = vsel %vm2355_vm13, %v2637_v38, %v2666_v28  ;;  %v2639_v36 = vsel %vm1154_vm12, %v6635_v13, %v6673_v26  ;;  %v9337_v27 = vld [vmem:[#allocation116_spill] sm:$0xff]  ;;  %v9338_v28 = vld [vmem:[#allocation126_spill] sm:$0xff] }
 0x182   : > { %v1853_v47 = vsel %vm1395_vm6, %v1844_v63, %v1846_v32  ;;  %v2832_v32 = vsel %vm1289_vm3, %v2819_v62, %v2579_v53  ;;  %v2668_v62 = vsel %vm1154_vm12, %v6590_v12, %v9326_v35  ;;  %v2867_v63 = vsel %vm1289_vm3, %v2854_v37, %v2695_v58  ;;  %v9329_v53 = vld [vmem:[#allocation117_spill] sm:$0xff] }
 0x183   : > { %2346 = vrot.lane.b32.xlu0 %v2328_v41, %s9104_s20  ;;  %v2379_v9 = vsel %vm1238_vm2, %v2370_v55, %v1853_v47  ;;  %2348 = vrot.lane.b32.xlu1 %v2339_v40, %s9104_s20  ;;  %v2580_v41 = vsel %vm1154_vm12, %v6553_v16, %v6568_v52  ;;  %v2842_v60 = vsel %vm1238_vm2, %v2832_v32, %v2608_v2  ;;  %v9331_v32 = vld [vmem:[#allocation118_spill] sm:$0xff] }
 0x184   : > { %2997 = vmatpush1.bf16.msra.mxu0 %v2379_v9  ;;  %v2834_v16 = vsel %vm1289_vm3, %v2822_v42, %v2580_v41  ;;  %v2816_v52 = vsel %vm2355_vm13, %v6821_v17, %v2549_v46  ;;  %v2838_v17 = vsel %vm1289_vm3, %v2828_v0, %v6564_v59  ;;  %v2638_v59 = vsel %vm1154_vm12, %v6616_v51, %v6635_v13  ;;  %v9330_v9 = vld [vmem:[#allocation109_spill] sm:$0xff]  ;;  %v9334_v2 = vld [vmem:[#allocation110_spill] sm:$0xff] }
 0x185   : > { %v6884_v30 = vpop.permute.xlu0 %1887  ;;  %v6896_v11 = vpop.permute.xlu1 %1889  ;;  %v2844_v20 = vsel %vm1238_vm2, %v2834_v16, %v2609_v15  ;;  %v2830_v19 = vsel %vm1289_vm3, %v2816_v52, %v6556_v25  ;;  %v2848_v25 = vsel %vm1238_vm2, %v2838_v17, %v6577_v24  ;;  %v2857_v61 = vsel %vm2355_vm13, %v2638_v59, %v2667_v31  ;;  %v9333_v41 = vld [vmem:[#allocation113_spill] sm:$0xff]  ;;  %v9335_v16 = vld [vmem:[#allocation111_spill] sm:$0xff] }
 0x186   : > { %v2840_v51 = vsel %vm1238_vm2, %v2830_v19, %v6706_v29  ;;  %v2697_v24 = vsel %vm1154_vm12, %v6717_v8, %v6639_v18  ;;  %v2869_v13 = vsel %vm1289_vm3, %v2857_v61, %v2696_v57  ;;  %v2863_v29 = vsel %vm2355_vm13, %v6673_v26, %v9326_v35  ;;  %v9328_v26 = vld [vmem:[#allocation120_spill] sm:$0xff]  ;;  %v9336_v52 = vld [vmem:[#allocation119_spill] sm:$0xff] }
 0x187   : > { %2340 = vrot.lane.b32.xlu0 %v2329_v10, %s9104_s20  ;;  %2933 = vrot.lane.b32.xlu1 %v2842_v60, %s9108_s19  ;;  %v2860_v8 = vsel %vm2355_vm13, %v2639_v36, %v2668_v62  ;;  %v2877_v40 = vsel %vm1238_vm2, %v2867_v63, %v2724_v22  ;;  %v2879_v55 = vsel %vm1238_vm2, %v2869_v13, %v2725_v7  ;;  %v9340_v57 = vld [vmem:[#allocation115_spill] sm:$0xff]  ;;  %s9347_s20 = smov 1  }
 0x188   : > { %v2871_v12 = vsel %vm1289_vm3, %v2860_v8, %v2697_v24  ;;  %v2782_v5 = vsel %vm1154_vm12, %v9329_v53, %v9328_v26  ;;  %v2873_v6 = vsel %vm1289_vm3, %v2863_v29, %v6639_v18  ;;  %v2726_v42 = vsel %vm1154_vm12, %v9327_v54, %v9330_v9 }
 0x189   : > { %v6913_v33 = vpop.permute.xlu0 %1891  ;;  %v6918_v50 = vpop.permute.xlu1 %1926  ;;  %v2811_v10 = vsel %vm1154_vm12, %v9332_v4, %v9331_v32  ;;  %v2753_v46 = vsel %vm1154_vm12, %v9334_v2, %v9333_v41  ;;  %v2881_v60 = vsel %vm1238_vm2, %v2871_v12, %v2726_v42  ;;  %v2783_v18 = vsel %vm1154_vm12, %v9328_v26, %v9335_v16 }
 0x18a   : > { %v2889_v0 = vsel %vm2355_vm13, %v2753_v46, %v2782_v5  ;;  %v2883_v45 = vsel %vm1238_vm2, %v2873_v6, %v9330_v9  ;;  %v2851_v15 = vsel %vm2355_vm13, %v6579_v23, %v6643_v1  ;;  %v2754_v19 = vsel %vm1154_vm12, %v9333_v41, %v9337_v27  ;;  %v9339_v23 = vld [vmem:[#allocation127_spill] sm:$0xff] }
 0x18b   : > { %2935 = vrot.lane.b32.xlu0 %v2844_v20, %s9108_s19  ;;  %2937 = vrot.lane.b32.xlu1 %v2846_v21, %s9108_s19  ;;  %v2755_v20 = vsel %vm1154_vm12, %v9337_v27, %v9336_v52  ;;  %v2812_v21 = vsel %vm1154_vm12, %v9331_v32, %v9338_v28  ;;  %v2902_v17 = vsel %vm1289_vm3, %v2889_v0, %v2811_v10  ;;  %v9341_v0 = vmov 0  }
 0x18c   : > { %v2865_v31 = vsel %vm1289_vm3, %v2851_v15, %v6651_v43  ;;  %v2813_v1 = vsel %vm1154_vm12, %v9338_v28, %v9339_v23  ;;  %v2784_v59 = vsel %vm1154_vm12, %v9335_v16, %v9340_v57  ;;  %v2892_v37 = vsel %vm2355_vm13, %v2754_v19, %v2783_v18  ;;  %v9345_v19 = vld [vmem:[#allocation7_spill] sm:$0xff] }
 0x18d   : > { %v6940_v48 = vpop.permute.xlu0 %1928  ;;  %v6946_v34 = vpop.permute.xlu1 %1930  ;;  %v2875_v36 = vsel %vm1238_vm2, %v2865_v31, %v6729_v3  ;;  %v2895_v43 = vsel %vm2355_vm13, %v2755_v20, %v2784_v59  ;;  %v2911_v61 = vsel %vm1238_vm2, %v2902_v17, 0  ;;  %v2904_v22 = vsel %vm1289_vm3, %v2892_v37, %v2812_v21  ;;  %v9343_v17 = vld [vmem:[#allocation5_spill] sm:$0xff]  ;;  %v9349_v59 = vld [vmem:[#allocation94_spill] sm:$0xff] }
 0x18e   : > { %v2886_v24 = vsel %vm2355_vm13, %v9334_v2, %v9329_v53  ;;  %v2898_v3 = vsel %vm2355_vm13, %v9336_v52, %v9340_v57  ;;  %v2912_v35 = vsel %vm1238_vm2, %v2904_v22, 0  ;;  %v1935_v63 = vsel %vm9111_vm8, %v6918_v50, %v6940_v48  ;;  %v2990_v2 = vld [vmem:[%s8922_s3] sm:$0xff]  ;;  %v9348_v57 = vld [vmem:[#allocation93_spill] sm:$0xff] }
 0x18f   : > { %2939 = vrot.lane.b32.xlu0 %v2848_v25, %s9108_s19  ;;  %2931 = vrot.lane.b32.xlu1 %v2840_v51, %s9108_s19  ;;  %v2906_v51 = vsel %vm1289_vm3, %v2895_v43, %v2813_v1  ;;  %v2900_v62 = vsel %vm1289_vm3, %v2886_v24, %v9332_v4  ;;  %v2908_v29 = vsel %vm1289_vm3, %v2898_v3, %v9339_v23  ;;  %v9346_v23 = vld [vmem:[#allocation8_spill] sm:$0xff] }
 0x190   : > { %v2913_v54 = vsel %vm1238_vm2, %v2906_v51, 0  ;;  %v1894_v8 = vsel %vm9124_vm7, %v6871_v39, %v6884_v30  ;;  %v2910_v53 = vsel %vm1238_vm2, %v2900_v62, 0  ;;  %v2914_v5 = vsel %vm1238_vm2, %v2908_v29, 0  ;;  %v9351_v43 = vld [vmem:[#allocation96_spill] sm:$0xff]  ;;  %v9353_v51 = vld [vmem:[#allocation81_spill] sm:$0xff] }
 0x191   : > { %v1933_v49 = vpop.permute.xlu0 %1932  ;;  %v6979_v47 = vpop.permute.xlu1 %1883  ;;  %v2395_v12 = vsel %vm2355_vm13, %v1894_v8, %v1935_v63  ;;  %v9358_v63 = vld [vmem:[#allocation78_spill] sm:$0xff] }
 0x192   : > { %v1937_v6 = vsel %vm9111_vm8, %v6946_v34, %v1933_v49 }
 0x193   : > { %2943 = vrot.lane.b32.xlu0 %v2877_v40, %s9108_s19  ;;  %2945 = vrot.lane.b32.xlu1 %v2879_v55, %s9108_s19  ;;  %v1936_v55 = vsel %vm9111_vm8, %v6940_v48, %v6946_v34  ;;  %v1895_v48 = vsel %vm9124_vm7, %v6884_v30, %v6896_v11  ;;  %v1896_v34 = vsel %vm9124_vm7, %v6896_v11, %v6913_v33 }
 0x194   : > { %v2398_v49 = vsel %vm2355_vm13, %v1895_v48, %v1936_v55  ;;  %v2401_v30 = vsel %vm2355_vm13, %v1896_v34, %v1937_v6  ;;  %v9360_v55 = vld [vmem:[#allocation84_spill] sm:$0xff]  ;;  %v9363_v34 = vld [vmem:[#allocation89_spill] sm:$0xff] }
 0x195   : > { %v1925_v56 = vpop.permute.xlu0 %1924  ;;  %v7000_v14 = vpop.permute.xlu1 %1967 }
 0x196   : > { %v1934_v46 = vsel %vm9111_vm8, %v1925_v56, %v6918_v50  ;;  %v1893_v50 = vsel %vm9124_vm7, %v6979_v47, %v6871_v39  ;;  %v9344_v39 = vld [vmem:[#allocation6_spill] sm:$0xff]  ;;  %vm9122_vm8 = vcmask 506880   ;;  %vm2223_vm7 = vcmask 457728  }
 0x197   : > { %2947 = vrot.lane.b32.xlu0 %v2881_v60, %s9108_s19  ;;  %2949 = vrot.lane.b32.xlu1 %v2883_v45, %s9108_s19  ;;  %v2392_v52 = vsel %vm2355_vm13, %v1893_v50, %v1934_v46 }
 0x199   : > { %v1970_v38 = vpop.permute.xlu0 %1969  ;;  %v1972_v25 = vpop.permute.xlu1 %1971 }
 0x19a   : > { %v1976_v7 = vsel %vm1573_vm9, %v7000_v14, %v1970_v38  ;;  %v1977_v9 = vsel %vm1573_vm9, %v1970_v38, %v1972_v25 }
 0x19b   : > { %2941 = vrot.lane.b32.xlu0 %v2875_v36, %s9108_s19  ;;  %2953 = vrot.lane.b32.xlu1 %v2911_v61, %s9108_s19  ;;  %v2405_v32 = vsel %vm1289_vm3, %v2395_v12, %v1976_v7  ;;  %v2407_v18 = vsel %vm1289_vm3, %v2398_v49, %v1977_v9  ;;  %v9350_v36 = vld [vmem:[#allocation95_spill] sm:$0xff] }
 0x19d   : > { %v1974_v58 = vpop.permute.xlu0 %1973  ;;  %v1966_v13 = vpop.permute.xlu1 %1965 }
 0x19e   : > { %v1978_v4 = vsel %vm1573_vm9, %v1972_v25, %v1974_v58  ;;  %v1975_v11 = vsel %vm1573_vm9, %v1966_v13, %v7000_v14  ;;  %v9354_v58 = vld [vmem:[#allocation82_spill] sm:$0xff]  ;;  %v9355_v13 = vld [vmem:[#allocation83_spill] sm:$0xff] }
 0x19f   : > { %2955 = vrot.lane.b32.xlu0 %v2912_v35, %s9108_s19  ;;  %2957 = vrot.lane.b32.xlu1 %v2913_v54, %s9108_s19  ;;  %v2409_v45 = vsel %vm1289_vm3, %v2401_v30, %v1978_v4  ;;  %v2403_v28 = vsel %vm1289_vm3, %v2392_v52, %v1975_v11  ;;  %v9357_v35 = vld [vmem:[#allocation77_spill] sm:$0xff]  ;;  %v9359_v54 = vld [vmem:[#allocation79_spill] sm:$0xff]  ;;  %v9364_v30 = vld [vmem:[#allocation90_spill] sm:$0xff] }
 0x1a1   : > { %v2010_v40 = vpop.permute.xlu0 %2009  ;;  %v2012_v26 = vpop.permute.xlu1 %2011 }
 0x1a2   : > { %v2018_v42 = vsel %vm9110_vm10, %v2010_v40, %v2012_v26 }
 0x1a3   : > { %2959 = vrot.lane.b32.xlu0 %v2914_v5, %s9108_s19  ;;  %2951 = vrot.lane.b32.xlu1 %v2910_v53, %s9108_s19  ;;  %v2414_v10 = vsel %vm1238_vm2, %v2405_v32, %v2018_v42 }
 0x1a4   : > { %2998 = vmatprep.subr.bf16.mxu0 %v2414_v10 }
 0x1a5   : > { %v2014_v41 = vpop.permute.xlu0 %2013  ;;  %v2016_v60 = vpop.permute.xlu1 %2015 }
 0x1a6   : > { %v2019_v16 = vsel %vm9110_vm10, %v2012_v26, %v2014_v41  ;;  %v2020_v33 = vsel %vm9110_vm10, %v2014_v41, %v2016_v60  ;;  %v9361_v26 = vld [vmem:[#allocation80_spill] sm:$0xff] }
 0x1a7   : > { %2961 = vrot.lane.b32.xlu0 %v9341_v0, %s9108_s19  ;;  %v2417_v15 = vsel %vm1238_vm2, %v2407_v18, %v2019_v16  ;;  %v2420_v56 = vsel %vm1238_vm2, %v2409_v45, %v2020_v33  ;;  %2993 = vperm.xlu1 %5283, %v2990_v2   ;;  %s9352_s19 = smov 8  }
 0x1a8   : > { %3039 = vmatprep.subr.bf16.mxu1 %v2420_v56 }
 0x1a9   : > { %v2008_v14 = vpop.permute.xlu0 %2007  ;;  %v7105_v27 = vpop.permute.xlu1 %2049  ;;  %3040 = vmatpush1.bf16.msra.mxu1 %v2417_v15 }
 0x1aa   : > { %v2017_v20 = vsel %vm9110_vm10, %v2008_v14, %v2010_v40  ;;  %vm9125_vm10 = vcmask 515072   ;;  %v9365_v14 = vld [vmem:[#allocation91_spill] sm:$0xff] }
 0x1ab   : > { %v2411_v21 = vsel %vm1238_vm2, %v2403_v28, %v2017_v20  ;;  %3459 = vrot.lane.b32.xlu0 %v9343_v17, %s9342_s23  ;;  %3461 = vrot.lane.b32.xlu1 %v9344_v39, %s9342_s23 }
 0x1ac   : > { %2999 = vmatpush1.bf16.msra.mxu0 %v2411_v21  ;;  %v9367_v21 = vld [vmem:[#allocation85_spill] sm:$0xff] }
 0x1ad   : > { %v2052_v47 = vpop.permute.xlu0 %2051  ;;  %v2054_v31 = vpop.permute.xlu1 %2053 }
 0x1ae   : > { %v2058_v53 = vsel %vm9123_vm11, %v7105_v27, %v2052_v47  ;;  %v2059_v49 = vsel %vm9123_vm11, %v2052_v47, %v2054_v31 }
 0x1af   : > { %3463 = vrot.lane.b32.xlu0 %v9345_v19, %s9342_s23  ;;  %3465 = vrot.lane.b32.xlu1 %v9346_v23, %s9342_s23  ;;  %s9356_s23 = smov 2  }
 0x1b1   : > { %v2056_v1 = vpop.permute.xlu0 %2055  ;;  %v2091_v38 = vpop.permute.xlu1 %2090 }
 0x1b2   : > { %v2060_v46 = vsel %vm9123_vm11, %v2054_v31, %v2056_v1  ;;  %v9369_v1 = vld [vmem:[#allocation87_spill] sm:$0xff] }
 0x1b3   : > { %3484 = vrot.lane.b32.xlu0 %v9348_v57, %s9347_s20  ;;  %3486 = vrot.lane.b32.xlu1 %v9349_v59, %s9347_s20  ;;  %v9370_v59 = vld [vmem:[#allocation92_spill] sm:$0xff] }
 0x1b5   : > { %v2093_v37 = vpop.permute.xlu0 %2092  ;;  %v2095_v25 = vpop.permute.xlu1 %2094 }
 0x1b6   : > { %v2099_v40 = vsel %vm810_vm15, %v2091_v38, %v2093_v37  ;;  %v2100_v6 = vsel %vm810_vm15, %v2093_v37, %v2095_v25  ;;  %v9371_v37 = vld [vmem:[#allocation88_spill] sm:$0xff] }
 0x1b7   : > { %3488 = vrot.lane.b32.xlu0 %v9350_v36, %s9347_s20  ;;  %3490 = vrot.lane.b32.xlu1 %v9351_v43, %s9347_s20  ;;  %v2427_v9 = vsel %vm2355_vm13, %v2058_v53, %v2099_v40  ;;  %v2430_v60 = vsel %vm2355_vm13, %v2059_v49, %v2100_v6  ;;  %v9373_v43 = vld [vmem:[#allocation101_spill] sm:$0xff]  ;;  %v9385_v6 = vld [vmem:[#allocation107_spill] sm:$0xff] }
 0x1b9   : > { %v2097_v61 = vpop.permute.xlu0 %2096  ;;  %v2048_v22 = vpop.permute.xlu1 %2047 }
 0x1ba   : > { %v2101_v32 = vsel %vm810_vm15, %v2095_v25, %v2097_v61  ;;  %v2057_v20 = vsel %vm9123_vm11, %v2048_v22, %v7105_v27  ;;  %v9368_v27 = vld [vmem:[#allocation86_spill] sm:$0xff]  ;;  %vm9126_vm11 = vcmask 441344  }
 0x1bb   : > { %3526 = vrot.lane.b32.xlu0 %v9353_v51, %s9352_s19  ;;  %3528 = vrot.lane.b32.xlu1 %v9354_v58, %s9352_s19  ;;  %v2433_v18 = vsel %vm2355_vm13, %v2060_v46, %v2101_v32  ;;  %v9374_v61 = vld [vmem:[#allocation102_spill] sm:$0xff]  ;;  %v9375_v58 = vld [vmem:[#allocation103_spill] sm:$0xff]  ;;  %v9387_v46 = vld [vmem:[#allocation9_spill] sm:$0xff] }
 0x1bd   : > { %v2089_v24 = vpop.permute.xlu0 %2088  ;;  %v2132_v3 = vpop.permute.xlu1 %2131 }
 0x1be   : > { %v2098_v11 = vsel %vm810_vm15, %v2089_v24, %v2091_v38  ;;  %v9377_v24 = vld [vmem:[#allocation97_spill] sm:$0xff] }
 0x1bf   : > { %3530 = vrot.lane.b32.xlu0 %v9355_v13, %s9352_s19  ;;  %3505 = vrot.lane.b32.xlu1 %v9357_v35, %s9356_s23  ;;  %v2424_v17 = vsel %vm2355_vm13, %v2057_v20, %v2098_v11  ;;  %v9378_v35 = vld [vmem:[#allocation98_spill] sm:$0xff] }
 0x1c0   : > { %v9388_v11 = vld [vmem:[#allocation10_spill] sm:$0xff] }
 0x1c1   : > { %v2134_v62 = vpop.permute.xlu0 %2133  ;;  %v2136_v29 = vpop.permute.xlu1 %2135 }
 0x1c2   : > { %v2141_v12 = vsel %vm9125_vm10, %v2132_v3, %v2134_v62  ;;  %v2142_v48 = vsel %vm9125_vm10, %v2134_v62, %v2136_v29  ;;  %v9379_v62 = vld [vmem:[#allocation99_spill] sm:$0xff] }
 0x1c3   : > { %3507 = vrot.lane.b32.xlu0 %v9358_v63, %s9356_s23  ;;  %3509 = vrot.lane.b32.xlu1 %v9359_v54, %s9356_s23  ;;  %v2437_v10 = vsel %vm1289_vm3, %v2427_v9, %v2141_v12  ;;  %v2439_v45 = vsel %vm1289_vm3, %v2430_v60, %v2142_v48  ;;  %v9380_v54 = vld [vmem:[#allocation104_spill] sm:$0xff]  ;;  %v9384_v12 = vld [vmem:[#allocation106_spill] sm:$0xff] }
 0x1c5   : > { %v2138_v7 = vpop.permute.xlu0 %2137  ;;  %v2130_v8 = vpop.permute.xlu1 %2129 }
 0x1c6   : > { %v2143_v41 = vsel %vm9125_vm10, %v2136_v29, %v2138_v7  ;;  %v2140_v15 = vsel %vm9125_vm10, %v2130_v8, %v2132_v3  ;;  %v9381_v7 = vld [vmem:[#allocation100_spill] sm:$0xff]  ;;  %vm9152_vm10 = vcmask 392192  }
 0x1c7   : > { %3532 = vrot.lane.b32.xlu0 %v9360_v55, %s9352_s19  ;;  %3511 = vrot.lane.b32.xlu1 %v9361_v26, %s9356_s23  ;;  %v2441_v56 = vsel %vm1289_vm3, %v2433_v18, %v2143_v41  ;;  %v2435_v19 = vsel %vm1289_vm3, %v2424_v17, %v2140_v15  ;;  %v9383_v55 = vld [vmem:[#allocation105_spill] sm:$0xff] }
 0x1c9   : > { %v2175_v5 = vpop.permute.xlu0 %2174  ;;  %v2177_v42 = vpop.permute.xlu1 %2176 }
 0x1ca   : > { %v2184_v4 = vsel %vm9122_vm8, %v2175_v5, %v2177_v42 }
 0x1cb   : > { %3568 = vrot.lane.b32.xlu0 %v9363_v34, %s9362_s21  ;;  %v2446_v2 = vsel %vm1238_vm2, %v2437_v10, %v2184_v4  ;;  %3570 = vrot.lane.b32.xlu1 %v9364_v30, %s9362_s21 }
 0x1cc   : > { %3000 = vmatprep.subr.bf16.mxu0 %v2446_v2 }
 0x1cd   : > { %v2179_v16 = vpop.permute.xlu0 %2178  ;;  %v2181_v33 = vpop.permute.xlu1 %2180 }
 0x1ce   : > { %v2185_v0 = vsel %vm9122_vm8, %v2177_v42, %v2179_v16  ;;  %v2186_v50 = vsel %vm9122_vm8, %v2179_v16, %v2181_v33  ;;  %v9386_v42 = vld [vmem:[#allocation108_spill] sm:$0xff] }
 0x1cf   : > { %v2449_v52 = vsel %vm1238_vm2, %v2439_v45, %v2185_v0  ;;  %3572 = vrot.lane.b32.xlu0 %v9365_v14, %s9362_s21  ;;  %v2452_v28 = vsel %vm1238_vm2, %v2441_v56, %v2186_v50  ;;  %3547 = vrot.lane.b32.xlu1 %v9367_v21, %s9366_s14 }
 0x1d0   : > { %3041 = vmatprep.subr.bf16.mxu1 %v2452_v28 }
 0x1d1   : > { %v2173_v39 = vpop.permute.xlu0 %2172  ;;  %v7177_v47 = vpop.permute.xlu1 %2215  ;;  %3042 = vmatpush1.bf16.msra.mxu1 %v2449_v52 }
 0x1d2   : > { %v2183_v31 = vsel %vm9122_vm8, %v2173_v39, %v2175_v5  ;;  %vm9154_vm8 = vcmask 449536   ;;  %v9389_v39 = vld [vmem:[#allocation11_spill] sm:$0xff] }
 0x1d3   : > { %v2443_v23 = vsel %vm1238_vm2, %v2435_v19, %v2183_v31  ;;  %3549 = vrot.lane.b32.xlu0 %v9368_v27, %s9366_s14  ;;  %3551 = vrot.lane.b32.xlu1 %v9369_v1, %s9366_s14 }
 0x1d4   : > { %3001 = vmatpush1.bf16.msra.mxu0 %v2443_v23  ;;  %v9390_v23 = vld [vmem:[#allocation12_spill] sm:$0xff] }
 0x1d5   : > { %v2218_v38 = vpop.permute.xlu0 %2217  ;;  %v2220_v57 = vpop.permute.xlu1 %2219 }
 0x1d6   : > { %v2225_v32 = vsel %vm2223_vm7, %v7177_v47, %v2218_v38  ;;  %v2226_v60 = vsel %vm2223_vm7, %v2218_v38, %v2220_v57 }
 0x1d7   : > { %3574 = vrot.lane.b32.xlu0 %v9370_v59, %s9362_s21  ;;  %3553 = vrot.lane.b32.xlu1 %v9371_v37, %s9366_s14 }
 0x1d9   : > { %v2222_v25 = vpop.permute.xlu0 %2221  ;;  %v2258_v36 = vpop.permute.xlu1 %2257 }
 0x1da   : > { %v2227_v33 = vsel %vm2223_vm7, %v2220_v57, %v2222_v25  ;;  %v9392_v25 = vld [vmem:[#allocation14_spill] sm:$0xff] }
 0x1db   : > { %3610 = vrot.lane.b32.xlu0 %v9373_v43, %s9372_s9  ;;  %3612 = vrot.lane.b32.xlu1 %v9374_v61, %s9372_s9 }
 0x1dd   : > { %v2260_v22 = vpop.permute.xlu0 %2259  ;;  %v2262_v51 = vpop.permute.xlu1 %2261 }
 0x1de   : > { %v2267_v5 = vsel %vm9154_vm8, %v2258_v36, %v2260_v22  ;;  %v2268_v4 = vsel %vm9154_vm8, %v2260_v22, %v2262_v51  ;;  %v9393_v22 = vld [vmem:[#allocation15_spill] sm:$0xff] }
 0x1df   : > { %3614 = vrot.lane.b32.xlu0 %v9375_v58, %s9372_s9  ;;  %3589 = vrot.lane.b32.xlu1 %v9377_v24, %s9376_s29  ;;  %v2459_v10 = vsel %vm2355_vm13, %v2225_v32, %v2267_v5  ;;  %v2462_v0 = vsel %vm2355_vm13, %v2226_v60, %v2268_v4  ;;  %v9399_v5 = vld [vmem:[#allocation21_spill] sm:$0xff] }
 0x1e1   : > { %v2264_v3 = vpop.permute.xlu0 %2263  ;;  %v2214_v13 = vpop.permute.xlu1 %2213 }
 0x1e2   : > { %v2269_v49 = vsel %vm9154_vm8, %v2262_v51, %v2264_v3  ;;  %v2224_v31 = vsel %vm2223_vm7, %v2214_v13, %v7177_v47  ;;  %v9391_v47 = vld [vmem:[#allocation13_spill] sm:$0xff] }
 0x1e3   : > { %3591 = vrot.lane.b32.xlu0 %v9378_v35, %s9376_s29  ;;  %3593 = vrot.lane.b32.xlu1 %v9379_v62, %s9376_s29  ;;  %v2465_v15 = vsel %vm2355_vm13, %v2227_v33, %v2269_v49  ;;  %v9394_v51 = vld [vmem:[#allocation17_spill] sm:$0xff]  ;;  %v9395_v62 = vld [vmem:[#allocation18_spill] sm:$0xff] }
 0x1e5   : > { %v2256_v29 = vpop.permute.xlu0 %2255  ;;  %v2300_v63 = vpop.permute.xlu1 %2299 }
 0x1e6   : > { %v2266_v50 = vsel %vm9154_vm8, %v2256_v29, %v2258_v36 }
 0x1e7   : > { %3616 = vrot.lane.b32.xlu0 %v9380_v54, %s9372_s9  ;;  %3595 = vrot.lane.b32.xlu1 %v9381_v7, %s9376_s29  ;;  %v2456_v27 = vsel %vm2355_vm13, %v2224_v31, %v2266_v50  ;;  %v9409_v50 = vld [vmem:[#allocation30_spill] sm:$0xff] }
 0x1e9   : > { %v2302_v8 = vpop.permute.xlu0 %2301  ;;  %v2304_v40 = vpop.permute.xlu1 %2303 }
 0x1ea   : > { %v2309_v9 = vsel %vm9126_vm11, %v2300_v63, %v2302_v8  ;;  %v2310_v41 = vsel %vm9126_vm11, %v2302_v8, %v2304_v40  ;;  %v9397_v8 = vld [vmem:[#allocation16_spill] sm:$0xff] }
 0x1eb   : > { %3631 = vrot.lane.b32.xlu0 %v9383_v55, %s9382_s22  ;;  %3633 = vrot.lane.b32.xlu1 %v9384_v12, %s9382_s22  ;;  %v2469_v30 = vsel %vm1289_vm3, %v2459_v10, %v2309_v9  ;;  %v2471_v14 = vsel %vm1289_vm3, %v2462_v0, %v2310_v41  ;;  %v9398_v55 = vld [vmem:[#allocation20_spill] sm:$0xff]  ;;  %v9400_v9 = vld [vmem:[#allocation22_spill] sm:$0xff]  ;;  %v9402_v10 = vld [vmem:[#allocation25_spill] sm:$0xff] }
 0x1ec   : > { %v9403_v41 = vld [vmem:[#allocation26_spill] sm:$0xff]  ;;  %v9407_v0 = vld [vmem:[#allocation28_spill] sm:$0xff] }
 0x1ed   : > { %v2306_v26 = vpop.permute.xlu0 %2305  ;;  %v2298_v53 = vpop.permute.xlu1 %2297 }
 0x1ee   : > { %v2311_v16 = vsel %vm9126_vm11, %v2304_v40, %v2306_v26  ;;  %v2308_v20 = vsel %vm9126_vm11, %v2298_v53, %v2300_v63  ;;  %vm9150_vm11 = vcmask 384000   ;;  %v9396_v63 = vld [vmem:[#allocation19_spill] sm:$0xff] }
 0x1ef   : > { %3635 = vrot.lane.b32.xlu0 %v9385_v6, %s9382_s22  ;;  %3637 = vrot.lane.b32.xlu1 %v9386_v42, %s9382_s22  ;;  %v2473_v21 = vsel %vm1289_vm3, %v2465_v15, %v2311_v16  ;;  %v2467_v59 = vsel %vm1289_vm3, %v2456_v27, %v2308_v20  ;;  %v2989_v15 = vld [vmem:[%s8921_s2] sm:$0xf] }
 0x1f0   : > { %v9413_v20 = vld [vmem:[#allocation35_spill] sm:$0xff] }
 0x1f1   : > { %v2343_v48 = vpop.permute.xlu0 %2342  ;;  %v2345_v34 = vpop.permute.xlu1 %2344 }
 0x1f2   : > { %v2352_v2 = vsel %vm9152_vm10, %v2343_v48, %v2345_v34 }
 0x1f3   : > { %3123 = vrot.lane.b32.xlu0 %v9387_v46, %s9347_s20  ;;  %v2478_v18 = vsel %vm1238_vm2, %v2469_v30, %v2352_v2  ;;  %3125 = vrot.lane.b32.xlu1 %v9388_v11, %s9347_s20  ;;  %v9404_v30 = vld [vmem:[#allocation27_spill] sm:$0xff]  ;;  %v9405_v11 = vld [vmem:[#allocation24_spill] sm:$0xff] }
 0x1f4   : > { %3002 = vmatprep.subr.bf16.mxu0 %v2478_v18 }
 0x1f5   : > { %v2347_v45 = vpop.permute.xlu0 %2346  ;;  %v2349_v56 = vpop.permute.xlu1 %2348 }
 0x1f6   : > { %v2353_v52 = vsel %vm9152_vm10, %v2345_v34, %v2347_v45  ;;  %v2354_v28 = vsel %vm9152_vm10, %v2347_v45, %v2349_v56  ;;  %v9408_v45 = vld [vmem:[#allocation29_spill] sm:$0xff]  ;;  %v9410_v56 = vld [vmem:[#allocation31_spill] sm:$0xff] }
 0x1f7   : > { %v2481_v17 = vsel %vm1238_vm2, %v2471_v14, %v2353_v52  ;;  %3127 = vrot.lane.b32.xlu0 %v9389_v39, %s9347_s20  ;;  %v2484_v19 = vsel %vm1238_vm2, %v2473_v21, %v2354_v28  ;;  %3129 = vrot.lane.b32.xlu1 %v9390_v23, %s9347_s20  ;;  %v9411_v52 = vld [vmem:[#allocation33_spill] sm:$0xff]  ;;  %v9412_v14 = vld [vmem:[#allocation34_spill] sm:$0xff]  ;;  %v9416_v39 = vld [vmem:[#allocation36_spill] sm:$0xff]  ;;  %s9453_s20 = smov 74  }
 0x1f8   : > { %3043 = vmatprep.subr.bf16.mxu1 %v2484_v19  ;;  %v9418_v19 = vld [vmem:[#allocation38_spill] sm:$0xff]  ;;  %v9419_v23 = vld [vmem:[#allocation39_spill] sm:$0xff] }
 0x1f9   : > { %v2341_v1 = vpop.permute.xlu0 %2340  ;;  %v2934_v38 = vpop.permute.xlu1 %2933  ;;  %3044 = vmatpush1.bf16.msra.mxu1 %v2481_v17  ;;  %v9415_v17 = vld [vmem:[#allocation32_spill] sm:$0xff] }
 0x1fa   : > { %v2351_v57 = vsel %vm9152_vm10, %v2341_v1, %v2343_v48  ;;  %v9401_v48 = vld [vmem:[#allocation23_spill] sm:$0xff] }
 0x1fb   : > { %v2475_v37 = vsel %vm1238_vm2, %v2467_v59, %v2351_v57  ;;  %3165 = vrot.lane.b32.xlu0 %v9391_v47, %s9352_s19  ;;  %3167 = vrot.lane.b32.xlu1 %v9392_v25, %s9352_s19  ;;  %v9421_v57 = vld [vmem:[#allocation37_spill] sm:$0xff]  ;;  %v9423_v47 = vld [vmem:[#allocation40_spill] sm:$0xff]  ;;  %v9424_v25 = vld [vmem:[#allocation43_spill] sm:$0xff] }
 0x1fc   : > { %3003 = vmatpush1.bf16.msra.mxu0 %v2475_v37 }
 0x1fd   : > { %v2936_v36 = vpop.permute.xlu0 %2935  ;;  %v2938_v43 = vpop.permute.xlu1 %2937 }
 0x1fe   : > { %v2965_v61 = vsel %vm9150_vm11, %v2934_v38, %v2936_v36  ;;  %v2966_v35 = vsel %vm9150_vm11, %v2936_v36, %v2938_v43 }
 0x1ff   : > { %3004 = vmatprep.subr.bf16.mxu0 %v2965_v61  ;;  %3169 = vrot.lane.b32.xlu0 %v9393_v22, %s9352_s19  ;;  %v9426_v61 = vld [vmem:[#allocation44_spill] sm:$0xff] }
 0x200   : > { %3144 = vrot.lane.b32.xlu1 %v9394_v51, %s9356_s23 }
 0x201   : > { %v2940_v58 = vpop.permute.xlu0 %2939  ;;  %v2932_v24 = vpop.permute.xlu1 %2931 }
 0x202   : > { %v2967_v3 = vsel %vm9150_vm11, %v2938_v43, %v2940_v58  ;;  %v2964_v13 = vsel %vm9150_vm11, %v2932_v24, %v2934_v38  ;;  %v9420_v38 = vld [vmem:[#allocation41_spill] sm:$0xff]  ;;  %v9425_v43 = vld [vmem:[#allocation42_spill] sm:$0xff] }
 0x203   : > { %3045 = vmatprep.subr.bf16.mxu1 %v2967_v3  ;;  %3146 = vrot.lane.b32.xlu0 %v9395_v62, %s9356_s23  ;;  %v9428_v58 = vld [vmem:[#allocation45_spill] sm:$0xff]  ;;  %v9429_v24 = vld [vmem:[#allocation46_spill] sm:$0xff] }
 0x204   : > { %3005 = vmatpush1.bf16.msra.mxu0 %v2964_v13  ;;  %3046 = vmatpush1.bf16.msra.mxu1 %v2966_v35  ;;  %v9431_v35 = vld [vmem:[#allocation47_spill] sm:$0xff]  ;;  %v9433_v62 = vld [vmem:[#allocation49_spill] sm:$0xff] }
 0x205   : > { %v2944_v29 = vpop.permute.xlu0 %2943  ;;  %3148 = vrot.lane.b32.xlu1 %v9396_v63, %s9356_s23  ;;  %v2946_v54 = vpop.permute.xlu1 %2945  ;;  %v9434_v63 = vld [vmem:[#allocation50_spill] sm:$0xff] }
 0x206   : > { %v2969_v7 = vsel %vm9150_vm11, %v2944_v29, %v2946_v54 }
 0x207   : > { %3171 = vrot.lane.b32.xlu0 %v9397_v8, %s9352_s19  ;;  %3006 = vmatprep.subr.bf16.mxu0 %v2969_v7 }
 0x209   : > { %v2948_v40 = vpop.permute.xlu0 %2947  ;;  %3150 = vrot.lane.b32.xlu1 %v9398_v55, %s9356_s23  ;;  %v2950_v12 = vpop.permute.xlu1 %2949  ;;  %v9437_v55 = vld [vmem:[#allocation52_spill] sm:$0xff]  ;;  %s9449_s23 = smov 80  }
 0x20a   : > { %v2970_v26 = vsel %vm9150_vm11, %v2946_v54, %v2948_v40  ;;  %v2971_v53 = vsel %vm9150_vm11, %v2948_v40, %v2950_v12  ;;  %v9435_v54 = vld [vmem:[#allocation51_spill] sm:$0xff]  ;;  %v9436_v40 = vld [vmem:[#allocation48_spill] sm:$0xff] }
 0x20b   : > { %3207 = vrot.lane.b32.xlu0 %v9399_v5, %s9362_s21  ;;  %3047 = vmatprep.subr.bf16.mxu1 %v2971_v53  ;;  %v9439_v53 = vld [vmem:[#allocation53_spill] sm:$0xff]  ;;  %v9440_v5 = vld [vmem:[#allocation54_spill] sm:$0xff] }
 0x20c   : > { %3048 = vmatpush1.bf16.msra.mxu1 %v2970_v26 }
 0x20d   : > { %v2942_v6 = vpop.permute.xlu0 %2941  ;;  %3209 = vrot.lane.b32.xlu1 %v9400_v9, %s9362_s21  ;;  %v2954_v42 = vpop.permute.xlu1 %2953  ;;  %v9441_v9 = vld [vmem:[#allocation55_spill] sm:$0xff] }
 0x20e   : > { %v2968_v32 = vsel %vm9150_vm11, %v2942_v6, %v2944_v29 }
 0x20f   : > { %3007 = vmatpush1.bf16.msra.mxu0 %v2968_v32  ;;  %3211 = vrot.lane.b32.xlu0 %v9401_v48, %s9362_s21 }
 0x211   : > { %v2956_v4 = vpop.permute.xlu0 %2955  ;;  %3186 = vrot.lane.b32.xlu1 %v9402_v10, %s9366_s14  ;;  %v2958_v34 = vpop.permute.xlu1 %2957  ;;  %v9445_v10 = vld [vmem:[#allocation59_spill] sm:$0xff] }
 0x212   : > { %v2973_v49 = vsel %vm9150_vm11, %v2954_v42, %v2956_v4  ;;  %v2974_v18 = vsel %vm9150_vm11, %v2956_v4, %v2958_v34  ;;  %v9444_v4 = vld [vmem:[#allocation58_spill] sm:$0xff] }
 0x213   : > { %3008 = vmatprep.subr.bf16.mxu0 %v2973_v49  ;;  %3188 = vrot.lane.b32.xlu0 %v9403_v41, %s9366_s14  ;;  %v9447_v41 = vld [vmem:[#allocation56_spill] sm:$0xff] }
 0x215   : > { %v2960_v2 = vpop.permute.xlu0 %2959  ;;  %3190 = vrot.lane.b32.xlu1 %v9404_v30, %s9366_s14  ;;  %v2952_v46 = vpop.permute.xlu1 %2951 }
 0x216   : > { %v2975_v60 = vsel %vm9150_vm11, %v2958_v34, %v2960_v2  ;;  %v2972_v16 = vsel %vm9150_vm11, %v2952_v46, %v2954_v42  ;;  %v9443_v42 = vld [vmem:[#allocation57_spill] sm:$0xff]  ;;  %v9448_v2 = vld [vmem:[#allocation60_spill] sm:$0xff] }
 0x217   : > { %3049 = vmatprep.subr.bf16.mxu1 %v2975_v60  ;;  %3213 = vrot.lane.b32.xlu0 %v9405_v11, %s9362_s21  ;;  %v9450_v46 = vld [vmem:[#allocation61_spill] sm:$0xff]  ;;  %v9451_v60 = vld [vmem:[#allocation62_spill] sm:$0xff]  ;;  %v9452_v11 = vld [vmem:[#allocation63_spill] sm:$0xff]  ;;  %s5437_s21 = smov 79  }
 0x218   : > { %3009 = vmatpush1.bf16.msra.mxu0 %v2972_v16  ;;  %3050 = vmatpush1.bf16.msra.mxu1 %v2974_v18 }
 0x219   : > { %v7294_v33 = vpop.permute.xlu0 %2961  ;;  %3192 = vrot.lane.b32.xlu1 %v9407_v0, %s9366_s14  ;;  %s9432_s14 = smov 65   ;;  %v9454_v0 = vld [vmem:[#allocation65_spill] sm:$0xff] }
 0x21a   : > { %9406 = vst [vmem:[#allocation112_spill] sm:$0xff] %v7294_v33  ;;  %3010 = vmatprep.subr.bf16.mxu0 %v7294_v33  ;;  %3051 = vmatprep.subr.bf16.mxu1 %v7294_v33 }
 0x21b   : > { %3249 = vrot.lane.b32.xlu0 %v9408_v45, %s9372_s9 }
 0x21c   : > { %3011 = vmatpush1.bf16.msra.mxu0 %v7294_v33  ;;  %3052 = vmatpush1.bf16.msra.mxu1 %v7294_v33 }
 0x21d   : > { %3251 = vrot.lane.b32.xlu1 %v9409_v50, %s9372_s9  ;;  %v7319_v21 = vpop.permute.xlu0 %3459  ;;  %v9455_v50 = vld [vmem:[#allocation66_spill] sm:$0xff] }
 0x21e   : > { %9414 = vst [vmem:[#allocation114_spill] sm:$0xff] %v7319_v21 }
 0x21f   : > { %3029 = vmatmul.mubr.bf16.vlgmr.msra.gmra.mrb[0].mxu0 %v2989_v15  ;;  %3070 = vmatmul.mubr.bf16.vlgmr.msra.gmra.mrb[0].mxu1 %v2989_v15 }
 0x220   : > { %3253 = vrot.lane.b32.xlu0 %v9410_v56, %s9372_s9  ;;  %v9456_v56 = vld [vmem:[#allocation67_spill] sm:$0xff] }
 0x221   : > { %3228 = vrot.lane.b32.xlu1 %v9411_v52, %s9376_s29  ;;  %v7331_v27 = vpop.permute.xlu0 %3463 }
 0x224   : > { %3230 = vrot.lane.b32.xlu0 %v9412_v14, %s9376_s29  ;;  %v9457_v14 = vld [vmem:[#allocation64_spill] sm:$0xff] }
 0x225   : > { %3232 = vrot.lane.b32.xlu1 %v9413_v20, %s9376_s29  ;;  %v7341_v37 = vpop.permute.xlu0 %3484  ;;  %v9458_v20 = vld [vmem:[#allocation68_spill] sm:$0xff] }
 0x226   : > { %v7317_v28 = vpop.permute.xlu1 %2993  ;;  %9422 = vst [vmem:[#allocation117_spill] sm:$0xff] %v7341_v37 }
 0x228   : > { %3255 = vrot.lane.b32.xlu0 %v9415_v17, %s9372_s9  ;;  %s9427_s9 = smov 66  }
 0x229   : > { %3234 = vrot.lane.b32.xlu1 %v9416_v39, %s9376_s29  ;;  %v7353_v22 = vpop.permute.xlu0 %3488  ;;  %s9442_s29 = smov 72  }
 0x22a   : > { %v7325_v31 = vpop.permute.xlu1 %3461 }
 0x22b   : > { %9417 = vst [vmem:[#allocation120_spill] sm:$0xff] %v7325_v31 }
 0x22c   : > { %3291 = vrot.lane.b32.xlu0 %v9418_v19, %s9312_s15  ;;  %v9460_v19 = vld [vmem:[#allocation73_spill] sm:$0xff] }
 0x22d   : > { %3293 = vrot.lane.b32.xlu1 %v9419_v23, %s9312_s15  ;;  %v7363_v13 = vpop.permute.xlu0 %3526 }
 0x22e   : > { %v7333_v1 = vpop.permute.xlu1 %3465  ;;  %9430 = vst [vmem:[#allocation109_spill] sm:$0xff] %v7363_v13 }
 0x230   : > { %3295 = vrot.lane.b32.xlu0 %v9420_v38, %s9312_s15  ;;  %v9461_v38 = vld [vmem:[#allocation74_spill] sm:$0xff] }
 0x231   : > { %3270 = vrot.lane.b32.xlu1 %v9421_v57, %s9382_s22  ;;  %v7375_v7 = vpop.permute.xlu0 %3530 }
 0x232   : > { %v7339_v59 = vpop.permute.xlu1 %3486 }
 0x234   : > { %3272 = vrot.lane.b32.xlu0 %v9423_v47, %s9382_s22 }
 0x235   : > { %3274 = vrot.lane.b32.xlu1 %v9424_v25, %s9382_s22  ;;  %v7385_v26 = vpop.permute.xlu0 %3507  ;;  %v9463_v25 = vld [vmem:[#allocation75_spill] sm:$0xff] }
 0x236   : > { %v7347_v36 = vpop.permute.xlu1 %3490 }
 0x237   : > { %v3504_v23 = vmul.bf16 0, %v7347_v36 }
 0x238   : > { %3297 = vrot.lane.b32.xlu0 %v9425_v43, %s9312_s15 }
 0x239   : > { %3276 = vrot.lane.b32.xlu1 %v9426_v61, %s9382_s22  ;;  %s9438_s22 = smov 73   ;;  %v7397_v32 = vpop.permute.xlu0 %3532  ;;  %v4153_v43 = vrot.slane %v3504_v23, 4  ;;  %v9464_v61 = vld [vmem:[#allocation76_spill] sm:$0xff] }
 0x23a   : > { %v7355_v51 = vpop.permute.xlu1 %3528  ;;  %v5338_v23 = vld.sshfl [vmem:[%s5568_s8 + $0x8] sm:$0x33 pattern:$0x76325410] }
 0x23c   : > { %3333 = vrot.lane.b32.xlu0 %v9428_v58, %s9427_s9  ;;  %v5336_v58 = vld [vmem:[%s5568_s8] sm:$0xff]  ;;  %s9523_s8 = smov 112  }
 0x23d   : > { %3335 = vrot.lane.b32.xlu1 %v9429_v24, %s9427_s9  ;;  %v7407_v49 = vpop.permute.xlu0 %3568  ;;  %v4327_v24 = vrot.slane %v5336_v58, %v5607_v44 }
 0x23e   : > { %v7361_v3 = vpop.permute.xlu1 %3505  ;;  %9446 = vst [vmem:[#allocation118_spill] sm:$0xff] %v7407_v49 }
 0x240   : > { %3337 = vrot.lane.b32.xlu0 %v9431_v35, %s9427_s9  ;;  %v4320_v35 = vcombine.high %v5336_v58, %v5336_v58 }
 0x241   : > { %3312 = vrot.lane.b32.xlu1 %v9433_v62, %s9432_s14  ;;  %v7419_v16 = vpop.permute.xlu0 %3572 }
 0x242   : > { %v7369_v29 = vpop.permute.xlu1 %3509 }
 0x244   : > { %3314 = vrot.lane.b32.xlu0 %v9434_v63, %s9432_s14 }
 0x245   : > { %3316 = vrot.lane.b32.xlu1 %v9435_v54, %s9432_s14  ;;  %v7429_v15 = vpop.permute.xlu0 %3549  ;;  %v3546_v54 = vmul.bf16 0, %v7397_v32 }
 0x246   : > { %v7377_v8 = vpop.permute.xlu1 %3511 }
 0x247   : > { %v3525_v63 = vmul.bf16 0, %v7377_v8 }
 0x248   : > { %3339 = vrot.lane.b32.xlu0 %v9436_v40, %s9427_s9  ;;  %s5438_s9 = smov 71  }
 0x249   : > { %3318 = vrot.lane.b32.xlu1 %v9437_v55, %s9432_s14  ;;  %v7441_v17 = vpop.permute.xlu0 %3574  ;;  %v4334_v55 = vrot.slane %v4320_v35, %v5607_v44 }
 0x24a   : > { %v7383_v12 = vpop.permute.xlu1 %3570  ;;  %9459 = vst [vmem:[#allocation121_spill] sm:$0xff] %v7441_v17 }
 0x24c   : > { %3375 = vrot.lane.b32.xlu0 %v9439_v53, %s9438_s22 }
 0x24d   : > { %3377 = vrot.lane.b32.xlu1 %v9440_v5, %s9438_s22  ;;  %v7452_v47 = vpop.permute.xlu0 %3610  ;;  %v4197_v5 = vrot.slane %v3546_v54, 4 }
 0x24e   : > { %v7391_v6 = vpop.permute.xlu1 %3547  ;;  %9462 = vst [vmem:[#allocation113_spill] sm:$0xff] %v7452_v47 }
 0x250   : > { %3379 = vrot.lane.b32.xlu0 %v9441_v9, %s9438_s22 }
 0x251   : > { %3354 = vrot.lane.b32.xlu1 %v9443_v42, %s9442_s29  ;;  %v7466_v40 = vpop.permute.xlu0 %3614 }
 0x252   : > { %v7399_v48 = vpop.permute.xlu1 %3551 }
 0x254   : > { %3356 = vrot.lane.b32.xlu0 %v9444_v4, %s9442_s29 }
 0x255   : > { %3358 = vrot.lane.b32.xlu1 %v9445_v10, %s9442_s29  ;;  %v7473_v9 = vpop.permute.xlu0 %3591  ;;  %v3588_v10 = vmul.bf16 0, %v7441_v17 }
 0x256   : > { %v7405_v34 = vpop.permute.xlu1 %3553 }
 0x257   : > { %v3567_v42 = vmul.bf16 0, %v7405_v34 }
 0x258   : > { %3381 = vrot.lane.b32.xlu0 %v9447_v41, %s9438_s22  ;;  %v4240_v41 = vrot.slane %v3588_v10, 4 }
 0x259   : > { %3360 = vrot.lane.b32.xlu1 %v9448_v2, %s9442_s29  ;;  %v7481_v44 = vpop.permute.xlu0 %3616 }
 0x25a   : > { %v7413_v30 = vpop.permute.xlu1 %3612  ;;  %9467 = vst [vmem:[#allocation119_spill] sm:$0xff] %v7481_v44 }
 0x25c   : > { %3417 = vrot.lane.b32.xlu0 %v9450_v46, %s9449_s23 }
 0x25d   : > { %3419 = vrot.lane.b32.xlu1 %v9451_v60, %s9449_s23  ;;  %v3630_v60 = vmul.bf16 0, %v7481_v44 }
 0x25e   : > { %v7421_v18 = vpop.permute.xlu1 %3589 }
 0x260   : > { %3421 = vrot.lane.b32.xlu0 %v9452_v11, %s9449_s23 }
 0x261   : > { %3396 = vrot.lane.b32.xlu1 %v9454_v0, %s9453_s20  ;;  %v4284_v0 = vrot.slane %v3630_v60, 4 }
 0x262   : > { %v7427_v45 = vpop.permute.xlu1 %3593 }
 0x264   : > { %3398 = vrot.lane.b32.xlu0 %v9455_v50, %s9453_s20  ;;  %v4335_v50 = vcombine.low %v4327_v24, %v4327_v24 }
 0x265   : > { %3400 = vrot.lane.b32.xlu1 %v9456_v56, %s9453_s20 }
 0x266   : > { %v7435_v52 = vpop.permute.xlu1 %3595 }
 0x267   : > { %v3609_v46 = vmul.bf16 0, %v7435_v52 }
 0x268   : > { %3423 = vrot.lane.b32.xlu0 %v9457_v14, %s9449_s23  ;;  %v4336_v14 = vcombine.low %v4334_v55, %v4334_v55 }
 0x269   : > { %3402 = vrot.lane.b32.xlu1 %v9458_v20, %s9453_s20  ;;  %s9532_s20 = smov 127  }
 0x26a   : > { %v7443_v39 = vpop.permute.xlu1 %3633 }
 0x26c   : > { %3438 = vrot.lane.b32.xlu0 %v9460_v19, %s5428_s17 }
 0x26d   : > { %3440 = vrot.lane.b32.xlu1 %v9461_v38, %s5428_s17  ;;  %v7500_v38 = vpop.permute.xlu0 %3631 }
 0x26e   : > { %v7450_v57 = vpop.permute.xlu1 %3637 }
 0x26f   : > { %v3651_v20 = vmul.bf16 0, %v7450_v57 }
 0x270   : > { %3442 = vrot.lane.b32.xlu0 %v9463_v25, %s5428_s17  ;;  %v4344_v25 = vcombine.low %v5338_v23, %v5338_v23 }
 0x271   : > { %3444 = vrot.lane.b32.xlu1 %v9464_v61, %s5428_s17  ;;  %v7505_v61 = vpop.permute.xlu0 %3635 }
 0x272   : > { %v7460_v62 = vpop.permute.xlu1 %3125 }
 0x273   : > { %9465 = vst [vmem:[#allocation110_spill] sm:$0xff] %v7460_v62 }
 0x274   : > { %4347 = vrot.lane.b32.xlu0 %v4327_v24, %s9352_s19 }
 0x275   : > { %4162 = vrot.lane.b32.xlu1 %v4153_v43, %s9449_s23  ;;  %v7510_v24 = vpop.permute.xlu0 %3123 }
 0x276   : > { %v7469_v53 = vpop.permute.xlu1 %3129  ;;  %9469 = vst [vmem:[#allocation126_spill] sm:$0xff] %v7510_v24 }
 0x278   : > { %4351 = vrot.lane.b32.xlu0 %v4334_v55, %s9352_s19 }
 0x279   : > { %4181 = vrot.lane.b32.xlu1 %v3525_v63, %s5437_s21  ;;  %v7514_v63 = vpop.permute.xlu0 %3127 }
 0x27a   : > { %v7476_v4 = vpop.permute.xlu1 %3167 }
 0x27b   : > { %9466 = vst [vmem:[#allocation111_spill] sm:$0xff] %v7476_v4 }
 0x27d   : > { %4206 = vrot.lane.b32.xlu1 %v4197_v5, %s9438_s22  ;;  %v7518_v55 = vpop.permute.xlu0 %3165 }
 0x27e   : > { %v7483_v2 = vpop.permute.xlu1 %3144  ;;  %9471 = vst [vmem:[#allocation115_spill] sm:$0xff] %v7518_v55 }
 0x281   : > { %4225 = vrot.lane.b32.xlu1 %v3567_v42, %s9442_s29  ;;  %v7522_v42 = vpop.permute.xlu0 %3169 }
 0x282   : > { %v7488_v11 = vpop.permute.xlu1 %3148  ;;  %9472 = vst [vmem:[#allocation5_spill] sm:$0xff] %v7522_v42 }
 0x285   : > { %4249 = vrot.lane.b32.xlu1 %v4240_v41, %s5438_s9  ;;  %v7526_v41 = vpop.permute.xlu0 %3146 }
 0x286   : > { %v7492_v56 = vpop.permute.xlu1 %3150  ;;  %9473 = vst [vmem:[#allocation6_spill] sm:$0xff] %v7526_v41 }
 0x289   : > { %4269 = vrot.lane.b32.xlu1 %v3609_v46, %s9432_s14  ;;  %v7530_v60 = vpop.permute.xlu0 %3171 }
 0x28a   : > { %v7496_v19 = vpop.permute.xlu1 %3209  ;;  %9474 = vst [vmem:[#allocation7_spill] sm:$0xff] %v7530_v60 }
 0x28b   : > { %9468 = vst [vmem:[#allocation116_spill] sm:$0xff] %v7496_v19 }
 0x28d   : > { %4293 = vrot.lane.b32.xlu1 %v4284_v0, %s9312_s15 }
 0x28e   : > { %v7503_v43 = vpop.permute.xlu1 %3186 }
 0x291   : > { %4345 = vrot.lane.b32.xlu1 %v4335_v50, %s9352_s19  ;;  %v7534_v50 = vpop.permute.xlu0 %3207 }
 0x292   : > { %v7508_v58 = vpop.permute.xlu1 %3190  ;;  %9476 = vst [vmem:[#allocation93_spill] sm:$0xff] %v7534_v50 }
 0x295   : > { %4349 = vrot.lane.b32.xlu1 %v4336_v14, %s9352_s19 }
 0x296   : > { %v7512_v35 = vpop.permute.xlu1 %3192 }
 0x299   : > { %4312 = vrot.lane.b32.xlu1 %v3651_v20, %s5430_s18  ;;  %v7538_v20 = vpop.permute.xlu0 %3211 }
 0x29a   : > { %v7516_v54 = vpop.permute.xlu1 %3251  ;;  %9477 = vst [vmem:[#allocation94_spill] sm:$0xff] %v7538_v20 }
 0x29b   : > { %9470 = vst [vmem:[#allocation127_spill] sm:$0xff] %v7516_v54 }
 0x29d   : > { %4353 = vrot.lane.b32.xlu1 %v4344_v25, %s9352_s19  ;;  %v7542_v25 = vpop.permute.xlu0 %3188  ;;  %s9526_s19 = smov 110  }
 0x29e   : > { %v7520_v5 = vpop.permute.xlu1 %3228  ;;  %9478 = vst [vmem:[#allocation95_spill] sm:$0xff] %v7542_v25 }
 0x2a1   : > { %v7546_v54 = vpop.permute.xlu0 %3213 }
 0x2a2   : > { %v7524_v10 = vpop.permute.xlu1 %3232  ;;  %9479 = vst [vmem:[#allocation96_spill] sm:$0xff] %v7546_v54 }
 0x2a5   : > { %v7550_v4 = vpop.permute.xlu0 %3249 }
 0x2a6   : > { %v7528_v46 = vpop.permute.xlu1 %3234  ;;  %9481 = vst [vmem:[#allocation82_spill] sm:$0xff] %v7550_v4 }
 0x2aa   : > { %v7532_v0 = vpop.permute.xlu1 %3293 }
 0x2ab   : > { %9475 = vst [vmem:[#allocation8_spill] sm:$0xff] %v7532_v0  ;;  %v7554_v0 = vpop.permute.xlu0 %3253 }
 0x2ac   : > { %9483 = vst [vmem:[#allocation77_spill] sm:$0xff] %v7554_v0 }
 0x2ae   : > { %v7536_v14 = vpop.permute.xlu1 %3270 }
 0x2af   : > { %v7558_v62 = vpop.permute.xlu0 %3230 }
 0x2b0   : > { %9485 = vst [vmem:[#allocation79_spill] sm:$0xff] %v7558_v62 }
 0x2b2   : > { %v7540_v23 = vpop.permute.xlu1 %3274 }
 0x2b3   : > { %v7562_v24 = vpop.permute.xlu0 %3255 }
 0x2b4   : > { %9487 = vst [vmem:[#allocation80_spill] sm:$0xff] %v7562_v24 }
 0x2b6   : > { %v7544_v33 = vpop.permute.xlu1 %3276 }
 0x2b7   : > { %v7570_v42 = vpop.permute.xlu0 %3291 }
 0x2ba   : > { %v7548_v19 = vpop.permute.xlu1 %3335 }
 0x2bb   : > { %9480 = vst [vmem:[#allocation81_spill] sm:$0xff] %v7548_v19  ;;  %v7576_v17 = vpop.permute.xlu0 %3295 }
 0x2be   : > { %v7552_v55 = vpop.permute.xlu1 %3312 }
 0x2bf   : > { %9482 = vst [vmem:[#allocation83_spill] sm:$0xff] %v7552_v55 }
 0x2c2   : > { %v7556_v50 = vpop.permute.xlu1 %3316 }
 0x2c3   : > { %9484 = vst [vmem:[#allocation78_spill] sm:$0xff] %v7556_v50 }
 0x2c6   : > { %v7560_v47 = vpop.permute.xlu1 %3318 }
 0x2c7   : > { %9486 = vst [vmem:[#allocation84_spill] sm:$0xff] %v7560_v47 }
 0x2ca   : > { %v7568_v50 = vpop.permute.xlu1 %3377 }
 0x2cb   : > { %9488 = vst [vmem:[#allocation89_spill] sm:$0xff] %v7568_v50 }
 0x2ce   : > { %v7573_v50 = vpop.permute.xlu1 %3354 }
 0x2cf   : > { %9489 = vst [vmem:[#allocation90_spill] sm:$0xff] %v7573_v50 }
 0x2f2   : > { %v3030_v49 = vpop.f32.mrb[0].mxu0  ;;  %v3071_v13 = vpop.f32.mrb[0].mxu1 }
 0x2f3   : > { %v3031_v37 = vadd.f32 %v3030_v49, %v7317_v28  ;;  %v3032_v31 = vpop.f32.mrb[1].mxu0  ;;  %v3072_v19 = vadd.f32 %v3071_v13, %v7317_v28  ;;  %v3073_v4 = vpop.f32.mrb[1].mxu1 }
 0x2f4   : > { %v3033_v55 = vadd.f32 %v3032_v31, %v7317_v28  ;;  %v3074_v21 = vadd.f32 %v3073_v4, %v7317_v28  ;;  %v3075_v0 = vpop.f32.mrb[2].mxu1  ;;  %v3034_v25 = vpop.f32.mrb[2].mxu0 }
 0x2f5   : > { %v3082_v62 = vmul.f32 0.01, %v3031_v37  ;;  %vm3080_vm13 = vcmp.gt.f32.partialorder %v3072_v19, 0.0  ;;  %v3084_v47 = vmul.f32 0.01, %v3072_v19  ;;  %vm3078_vm11 = vcmp.gt.f32.partialorder %v3031_v37, 0.0 }
 0x2f6   : > { %v3083_v24 = vmul.f32 0.01, %v3033_v55  ;;  %vm3081_vm10 = vcmp.gt.f32.partialorder %v3074_v21, 0.0  ;;  %v3085_v20 = vmul.f32 0.01, %v3074_v21  ;;  %vm3079_vm8 = vcmp.gt.f32.partialorder %v3033_v55, 0.0 }
 0x2f7   : > { %v3088_v49 = vsel %vm3080_vm13, %v3072_v19, %v3084_v47  ;;  %v3076_v54 = vpop.f32.mrb[3].mxu1  ;;  %v3035_v31 = vpop.f32.mrb[3].mxu0  ;;  %v3086_v28 = vsel %vm3078_vm11, %v3031_v37, %v3082_v62  ;;  %vm9525_vm13 = vcmask 146432  }
 0x2f8   : > { %v3092_v13 = vpack.c.bf16 %v3088_v49, %v3088_v49  ;;  %v3089_v44 = vsel %vm3081_vm10, %v3074_v21, %v3085_v20  ;;  %v3087_v0 = vsel %vm3079_vm8, %v3033_v55, %v3083_v24  ;;  %v3090_v60 = vpack.c.bf16 %v3086_v28, %v3086_v28  ;;  %v7580_v21 = vpop.permute.xlu1 %3358  ;;  %v7582_v47 = vpop.permute.xlu0 %3272 }
 0x2f9   : > { %v3093_v4 = vpack.c.bf16 %v3089_v44, %v3089_v44  ;;  %v3091_v41 = vpack.c.bf16 %v3087_v0, %v3087_v0  ;;  %9490 = vst [vmem:[#allocation91_spill] sm:$0xff] %v7580_v21  ;;  %vm9521_vm8 = vcmask 130048  }
 0x2fa   : > { %3102 = vrot.lane.b32.xlu0 %v3092_v13, %s9438_s22  ;;  %vm9522_vm10 = vmmov %vm9521_vm8 }
 0x2fb   : > { %3104 = vrot.lane.b32.xlu1 %v3093_v4, %s9438_s22  ;;  %vm9524_vm11 = vmmov %vm9521_vm8 }
 0x2fc   : > { %v7584_v37 = vpop.permute.xlu1 %3360  ;;  %v7586_v62 = vpop.permute.xlu0 %3297 }
 0x2fd   : > { %9491 = vst [vmem:[#allocation85_spill] sm:$0xff] %v7584_v37 }
 0x2fe   : > { %3098 = vrot.lane.b32.xlu0 %v3090_v60, %s9438_s22 }
 0x2ff   : > { %3100 = vrot.lane.b32.xlu1 %v3091_v41, %s9438_s22 }
 0x300   : > { %v7588_v44 = vpop.permute.xlu1 %3419  ;;  %v7590_v19 = vpop.permute.xlu0 %3333 }
 0x301   : > { %9492 = vst [vmem:[#allocation86_spill] sm:$0xff] %v7588_v44 }
 0x304   : > { %v7592_v24 = vpop.permute.xlu1 %3396  ;;  %v7594_v54 = vpop.permute.xlu0 %3337 }
 0x305   : > { %9493 = vst [vmem:[#allocation87_spill] sm:$0xff] %v7592_v24 }
 0x308   : > { %v7596_v55 = vpop.permute.xlu1 %3400  ;;  %v7598_v60 = vpop.permute.xlu0 %3314 }
 0x309   : > { %9494 = vst [vmem:[#allocation92_spill] sm:$0xff] %v7596_v55 }
 0x30c   : > { %v7600_v41 = vpop.permute.xlu1 %3402  ;;  %v7602_v20 = vpop.permute.xlu0 %3339 }
 0x30d   : > { %9495 = vst [vmem:[#allocation88_spill] sm:$0xff] %v7600_v41 }
 0x310   : > { %v7604_v25 = vpop.permute.xlu1 %3440  ;;  %v7606_v49 = vpop.permute.xlu0 %3375 }
 0x311   : > { %9496 = vst [vmem:[#allocation101_spill] sm:$0xff] %v7604_v25 }
 0x314   : > { %v7608_v13 = vpop.permute.xlu1 %3444  ;;  %v7610_v31 = vpop.permute.xlu0 %3379 }
 0x315   : > { %9497 = vst [vmem:[#allocation102_spill] sm:$0xff] %v7608_v13  ;;  %9498 = vst [vmem:[#allocation103_spill] sm:$0xff] %v7610_v31 }
 0x318   : > { %v7612_v28 = vpop.permute.xlu1 %4162  ;;  %v7614_v4 = vpop.permute.xlu0 %3356 }
 0x319   : > { %9499 = vst [vmem:[#allocation97_spill] sm:$0xff] %v7612_v28 }
 0x31c   : > { %v7616_v0 = vpop.permute.xlu1 %4181  ;;  %v7620_v24 = vpop.permute.xlu0 %3381 }
 0x31d   : > { %9500 = vst [vmem:[#allocation98_spill] sm:$0xff] %v7616_v0  ;;  %9502 = vst [vmem:[#allocation104_spill] sm:$0xff] %v7620_v24 }
 0x320   : > { %v7618_v55 = vpop.permute.xlu1 %4206  ;;  %v7624_v44 = vpop.permute.xlu0 %3417 }
 0x321   : > { %9501 = vst [vmem:[#allocation99_spill] sm:$0xff] %v7618_v55  ;;  %9504 = vst [vmem:[#allocation105_spill] sm:$0xff] %v7624_v44 }
 0x324   : > { %v7622_v41 = vpop.permute.xlu1 %4225  ;;  %v7628_v21 = vpop.permute.xlu0 %3421 }
 0x325   : > { %9503 = vst [vmem:[#allocation100_spill] sm:$0xff] %v7622_v41  ;;  %9506 = vst [vmem:[#allocation107_spill] sm:$0xff] %v7628_v21 }
 0x328   : > { %v7626_v25 = vpop.permute.xlu1 %4249  ;;  %v7632_v31 = vpop.permute.xlu0 %3398 }
 0x329   : > { %9505 = vst [vmem:[#allocation106_spill] sm:$0xff] %v7626_v25  ;;  %9508 = vst [vmem:[#allocation9_spill] sm:$0xff] %v7632_v31 }
 0x32c   : > { %v7630_v13 = vpop.permute.xlu1 %4269  ;;  %v7636_v37 = vpop.permute.xlu0 %3423 }
 0x32d   : > { %9507 = vst [vmem:[#allocation108_spill] sm:$0xff] %v7630_v13  ;;  %9510 = vst [vmem:[#allocation11_spill] sm:$0xff] %v7636_v37  ;;  %v9520_v37 = vld [vmem:[#allocation72_spill] sm:$0xff] }
 0x330   : > { %v7634_v28 = vpop.permute.xlu1 %4293  ;;  %v7640_v55 = vpop.permute.xlu0 %3438 }
 0x331   : > { %9509 = vst [vmem:[#allocation10_spill] sm:$0xff] %v7634_v28  ;;  %9512 = vst [vmem:[#allocation13_spill] sm:$0xff] %v7640_v55 }
 0x334   : > { %v7638_v0 = vpop.permute.xlu1 %4345  ;;  %v7644_v41 = vpop.permute.xlu0 %3442 }
 0x335   : > { %9511 = vst [vmem:[#allocation12_spill] sm:$0xff] %v7638_v0  ;;  %9514 = vst [vmem:[#allocation15_spill] sm:$0xff] %v7644_v41  ;;  %v3514_v0 = vsel %vm454_vm14, %v7385_v26, %v7369_v29 }
 0x338   : > { %v7642_v24 = vpop.permute.xlu1 %4349  ;;  %v7646_v44 = vpop.permute.xlu0 %4347 }
 0x339   : > { %9513 = vst [vmem:[#allocation14_spill] sm:$0xff] %v7642_v24  ;;  %9515 = vst [vmem:[#allocation17_spill] sm:$0xff] %v7646_v44  ;;  %v9519_v44 = vld [vmem:[#allocation71_spill] sm:$0xff] }
 0x33c   : > { %v7648_v25 = vpop.permute.xlu1 %4312  ;;  %v7652_v13 = vpop.permute.xlu0 %4351 }
 0x33d   : > { %9516 = vst [vmem:[#allocation18_spill] sm:$0xff] %v7648_v25  ;;  %9518 = vst [vmem:[#allocation16_spill] sm:$0xff] %v7652_v13  ;;  %v3515_v13 = vsel %vm454_vm14, %v7369_v29, %v7377_v8  ;;  %v3557_v8 = vsel %vm546_vm0, %v7399_v48, %v7405_v34 }
 0x340   : > { %v7650_v21 = vpop.permute.xlu1 %4353 }
 0x341   : > { %9517 = vst [vmem:[#allocation19_spill] sm:$0xff] %v7650_v21 }
 0x36c   : > { %v7654_v31 = vpop.permute.xlu0 %3102 }
 0x36d   : > { %v3105_v28 = vpop.permute.xlu1 %3104 }
 0x36e   : > { %v7661_v24 = vsel %vm994_vm1, %v7654_v31, %v3105_v28  ;;  %v7667_v21 = vsel %vm994_vm1, %v3105_v28, 0 }
 0x36f   : > { %v3523_v55 = vmul.bf16 %v3514_v0, %v7661_v24  ;;  %v3482_v25 = vmul.bf16 %v7661_v24, %v9519_v44  ;;  %v3524_v41 = vmul.bf16 %v3515_v13, %v7667_v21  ;;  %v3483_v50 = vmul.bf16 %v7667_v21, %v9520_v37 }
 0x370   : > { %v3154_v44 = vsel %vm454_vm14, %v7488_v11, %v7492_v56  ;;  %v3566_v37 = vmul.bf16 %v3557_v8, %v7667_v21  ;;  %v3598_v13 = vsel %vm9521_vm8, %v7473_v9, %v7427_v45  ;;  %v3099_v0 = vpop.permute.xlu0 %3098  ;;  %vm9527_vm8 = vmmov %vm9525_vm13 }
 0x371   : > { %4177 = vrot.lane.b32.xlu0 %v3523_v55, %s5437_s21  ;;  %4137 = vrot.lane.b32.xlu1 %v3482_v25, %s5428_s17  ;;  %v3556_v55 = vsel %vm546_vm0, %v7429_v15, %v7399_v48  ;;  %v3163_v29 = vmul.bf16 %v3154_v44, %v7661_v24  ;;  %v3238_v48 = vsel %vm9522_vm10, %v7524_v10, %v7528_v46  ;;  %v7718_v8 = vsel %vm994_vm1, 0, %v3099_v0  ;;  %vm9528_vm10 = vmmov %vm9527_vm8 }
 0x372   : > { %v3565_v25 = vmul.bf16 %v3556_v55, %v7661_v24  ;;  %v3607_v34 = vmul.bf16 %v3598_v13, %v7661_v24  ;;  %v3247_v28 = vmul.bf16 %v3238_v48, %v7661_v24  ;;  %v3599_v44 = vsel %vm9524_vm11, %v7427_v45, %v7435_v52 }
 0x373   : > { %v3280_v55 = vsel %vm9525_vm13, %v7540_v23, %v7544_v33  ;;  %v3160_v52 = vmul.bf16 %v7483_v2, %v7718_v8  ;;  %v3202_v13 = vmul.bf16 %v7503_v43, %v7718_v8  ;;  %v3164_v48 = vmul.bf16 %v7492_v56, %v7667_v21 }
 0x374   : > { %v3248_v56 = vmul.bf16 %v7528_v46, %v7667_v21  ;;  %vm9530_vm11 = vcmask 670720   ;;  %vm9531_vm13 = vcmask 64512   ;;  %v3513_v46 = vsel %vm454_vm14, %v7361_v3, %v7385_v26 }
 0x375   : > { %4179 = vrot.lane.b32.xlu0 %v3524_v41, %s5437_s21  ;;  %4139 = vrot.lane.b32.xlu1 %v3483_v50, %s5428_s17  ;;  %v3196_v50 = vsel %vm546_vm0, %v7508_v58, %v7512_v35  ;;  %v3555_v26 = vsel %vm546_vm0, %v7391_v6, %v7429_v15 }
 0x376   : > { %v3205_v41 = vmul.bf16 %v3196_v50, %v7661_v24  ;;  %v3640_v50 = vsel %vm9527_vm8, %v7443_v39, %v7505_v61  ;;  %vm9533_vm8 = vcmask 80896  }
 0x377   : > { %v3649_v45 = vmul.bf16 %v3640_v50, %v7661_v24 }
 0x379   : > { %4221 = vrot.lane.b32.xlu0 %v3565_v25, %s9442_s29  ;;  %3687 = vrot.lane.b32.xlu1 %v3163_v29, %s5405_s13  ;;  %v3608_v25 = vmul.bf16 %v3599_v44, %v7667_v21  ;;  %v3289_v29 = vmul.bf16 %v3280_v55, %v7661_v24  ;;  %v9529_v55 = vld [vmem:[#allocation69_spill] sm:$0xff] }
 0x37d   : > { %4223 = vrot.lane.b32.xlu0 %v3566_v37, %s9442_s29  ;;  %3730 = vrot.lane.b32.xlu1 %v3205_v41, %s5408_s16  ;;  %v3641_v37 = vsel %vm9528_vm10, %v7505_v61, %v7450_v57  ;;  %v3206_v57 = vmul.bf16 %v7512_v35, %v7667_v21  ;;  %v3286_v61 = vmul.bf16 %v7536_v14, %v7718_v8  ;;  %vm9534_vm10 = vcmask 7168  }
 0x37e   : > { %v3650_v41 = vmul.bf16 %v3641_v37, %v7667_v21  ;;  %v3469_v35 = vsel %vm9530_vm11, %v7331_v27, %v7333_v1  ;;  %vm9536_vm11 = vmmov %vm9534_vm10 }
 0x37f   : > { %v3494_v15 = vsel %vm9536_vm11, %v7353_v22, %v7347_v36  ;;  %vm9540_vm11 = vcmask 146432  }
 0x381   : > { %4265 = vrot.lane.b32.xlu0 %v3607_v34, %s9432_s14  ;;  %3773 = vrot.lane.b32.xlu1 %v3247_v28, %s9523_s8  ;;  %v3244_v34 = vmul.bf16 %v7520_v5, %v7718_v8  ;;  %v3101_v28 = vpop.permute.xlu1 %3100 }
 0x382   : > { %v7749_v44 = vsel %vm994_vm1, %v3099_v0, %v3101_v28  ;;  %v3535_v0 = vsel %vm9531_vm13, %v7355_v51, %v7375_v7  ;;  %vm9537_vm13 = vcmask 138240  }
 0x385   : > { %4267 = vrot.lane.b32.xlu0 %v3608_v25, %s9432_s14  ;;  %3816 = vrot.lane.b32.xlu1 %v3289_v29, %s9526_s19  ;;  %v3480_v25 = vmul.bf16 %v7749_v44, %v9529_v55  ;;  %v7759_v29 = vsel %vm994_vm1, %v3101_v28, %v7654_v31  ;;  %v3290_v31 = vmul.bf16 %v7544_v33, %v7667_v21 }
 0x386   : > { %v3522_v50 = vmul.bf16 %v3513_v46, %v7759_v29  ;;  %v3577_v33 = vsel %vm9533_vm8, %v7383_v12, %v7419_v16  ;;  %vm9538_vm8 = vcmask 130048  }
 0x387   : > { %v3586_v28 = vmul.bf16 %v3577_v33, %v7661_v24 }
 0x389   : > { %4308 = vrot.lane.b32.xlu0 %v3649_v45, %s5430_s18  ;;  %3681 = vrot.lane.b32.xlu1 %v3160_v52, %s5405_s13  ;;  %v3478_v45 = vmul.bf16 %v3469_v35, %v7661_v24  ;;  %v3544_v52 = vmul.bf16 %v3535_v0, %v7661_v24  ;;  %v3597_v35 = vsel %vm9538_vm8, %v7421_v18, %v7473_v9  ;;  %vm9543_vm8 = vcmask 80896  }
 0x38a   : > { %v3606_v46 = vmul.bf16 %v3597_v35, %v7759_v29 }
 0x38b   : > { %v4113_v37 = vrot.slane %v3478_v45, 4  ;;  %v3639_v45 = vsel %vm9540_vm11, %v7500_v38, %v7443_v39  ;;  %v9542_v39 = vld [vmem:[#allocation121_spill] sm:$0xff]  ;;  %vm9549_vm11 = vcmask 138240  }
 0x38d   : > { %4310 = vrot.lane.b32.xlu0 %v3650_v41, %s5430_s18  ;;  %3724 = vrot.lane.b32.xlu1 %v3202_v13, %s5408_s16  ;;  %v4195_v41 = vrot.slane %v3544_v52, 4  ;;  %v3479_v13 = vmul.bf16 %v7333_v1, %v7667_v21  ;;  %v3493_v1 = vsel %vm9534_vm10, %v7339_v59, %v7353_v22  ;;  %vm9539_vm10 = vcmask 64512  }
 0x38e   : > { %v3502_v55 = vmul.bf16 %v3493_v1, %v7661_v24  ;;  %v3536_v9 = vsel %vm9539_vm10, %v7375_v7, %v7397_v32 }
 0x390   : > { %v4151_v0 = vrot.slane %v3502_v55, 4 }
 0x391   : > { %3689 = vrot.lane.b32.xlu0 %v3164_v48, %s5405_s13  ;;  %3767 = vrot.lane.b32.xlu1 %v3244_v34, %s9523_s8  ;;  %v4114_v48 = vrot.slane %v3479_v13, 4  ;;  %v3564_v34 = vmul.bf16 %v3555_v26, %v7759_v29  ;;  %v3545_v13 = vmul.bf16 %v3536_v9, %v7667_v21  ;;  %v9544_v26 = vld [vmem:[#allocation6_spill] sm:$0xff] }
 0x393   : > { %v4196_v7 = vrot.slane %v3545_v13, 4  ;;  %v3647_v13 = vmul.bf16 %v7500_v38, %v7749_v44  ;;  %v3153_v38 = vsel %vm454_vm14, %v9544_v26, %v7488_v11 }
 0x395   : > { %3732 = vrot.lane.b32.xlu0 %v3206_v57, %s5408_s16  ;;  %3810 = vrot.lane.b32.xlu1 %v3286_v61, %s9526_s19  ;;  %v9535_v57 = vld [vmem:[#allocation70_spill] sm:$0xff] }
 0x396   : > { %v3481_v61 = vmul.bf16 %v7759_v29, %v9535_v57  ;;  %v3563_v57 = vmul.bf16 %v7391_v6, %v7749_v44 }
 0x399   : > { %3775 = vrot.lane.b32.xlu0 %v3248_v56, %s9523_s8  ;;  %4133 = vrot.lane.b32.xlu1 %v3480_v25, %s5428_s17  ;;  %v4238_v56 = vrot.slane %v3586_v28, 4  ;;  %v3619_v25 = vsel %vm9537_vm13, %v7413_v30, %v7466_v40  ;;  %vm9541_vm13 = vcmask 7168   ;;  %v9546_v28 = vld [vmem:[#allocation5_spill] sm:$0xff] }
 0x39a   : > { %v3133_v52 = vsel %vm9541_vm13, %v7514_v63, %v7469_v53  ;;  %vm9553_vm13 = vmmov %vm9543_vm8 }
 0x39b   : > { %v3142_v33 = vmul.bf16 %v3133_v52, %v7661_v24  ;;  %v9557_v52 = vld [vmem:[#allocation80_spill] sm:$0xff] }
 0x39d   : > { %3818 = vrot.lane.b32.xlu0 %v3290_v31, %s9526_s19  ;;  %4175 = vrot.lane.b32.xlu1 %v3522_v50, %s5437_s21  ;;  %v3503_v31 = vmul.bf16 %v3494_v15, %v7667_v21  ;;  %v3628_v50 = vmul.bf16 %v3619_v25, %v7661_v24  ;;  %v3660_v32 = vrot.slane %v3142_v33, 4  ;;  %v9550_v25 = vld [vmem:[#allocation95_spill] sm:$0xff] }
 0x39e   : > { %v3194_v35 = vsel %vm546_vm0, %v7503_v43, %v9550_v25  ;;  %v9555_v43 = vld [vmem:[#allocation79_spill] sm:$0xff] }
 0x39f   : > { %v4152_v36 = vrot.slane %v3503_v31, 4  ;;  %v4282_v22 = vrot.slane %v3628_v50, 4  ;;  %v3605_v50 = vmul.bf16 %v7421_v18, %v7749_v44 }
 0x3a1   : > { %4121 = vrot.lane.b32.xlu0 %v4113_v37, %s9532_s20  ;;  %4202 = vrot.lane.b32.xlu1 %v4195_v41, %s9438_s22  ;;  %v3521_v37 = vmul.bf16 %v7361_v3, %v7749_v44  ;;  %v3648_v41 = vmul.bf16 %v3639_v45, %v7759_v29  ;;  %v3578_v3 = vsel %vm9543_vm8, %v7419_v16, %v9542_v39  ;;  %vm9556_vm8 = vcmask 130048  }
 0x3a2   : > { %v3236_v18 = vsel %vm9556_vm8, %v7520_v5, %v9555_v43 }
 0x3a3   : > { %v3245_v33 = vmul.bf16 %v3236_v18, %v7749_v44 }
 0x3a5   : > { %4123 = vrot.lane.b32.xlu0 %v4114_v48, %s9532_s20  ;;  %4219 = vrot.lane.b32.xlu1 %v3564_v34, %s9442_s29  ;;  %v3152_v48 = vsel %vm454_vm14, %v7483_v2, %v9544_v26  ;;  %v9545_v34 = vld [vmem:[#allocation7_spill] sm:$0xff]  ;;  %vm9564_vm14 = vcmask 670720  }
 0x3a6   : > { %v3175_v1 = vsel %vm9539_vm10, %v9546_v28, %v9545_v34  ;;  %v9548_v2 = vld [vmem:[#allocation119_spill] sm:$0xff]  ;;  %vm9559_vm10 = vmmov %vm9549_vm11 }
 0x3a7   : > { %v3184_v55 = vmul.bf16 %v3175_v1, %v7661_v24  ;;  %v3620_v6 = vsel %vm9549_vm11, %v7466_v40, %v9548_v2  ;;  %vm9561_vm11 = vcmask 146432  }
 0x3a9   : > { %4135 = vrot.lane.b32.xlu0 %v3481_v61, %s5428_s17  ;;  %4245 = vrot.lane.b32.xlu1 %v4238_v56, %s5438_s9  ;;  %v3161_v61 = vmul.bf16 %v3152_v48, %v7749_v44  ;;  %v3587_v56 = vmul.bf16 %v3578_v3, %v7667_v21  ;;  %v3703_v15 = vrot.slane %v3184_v55, 4  ;;  %s9547_s17 = smov 120   ;;  %v3301_v3 = vsel %vm810_vm15, %v7576_v17, %v7586_v62  ;;  %v9563_v55 = vld [vmem:[#allocation120_spill] sm:$0xff] }
 0x3aa   : > { %v3162_v48 = vmul.bf16 %v3153_v38, %v7759_v29 }
 0x3ab   : > { %v4239_v16 = vrot.slane %v3587_v56, 4 }
 0x3ad   : > { %4158 = vrot.lane.b32.xlu0 %v4151_v0, %s9449_s23  ;;  %4263 = vrot.lane.b32.xlu1 %v3606_v46, %s9432_s14  ;;  %v9551_v0 = vld [vmem:[#allocation96_spill] sm:$0xff]  ;;  %v9552_v46 = vld [vmem:[#allocation94_spill] sm:$0xff] }
 0x3ae   : > { %v3217_v31 = vsel %vm9553_vm13, %v9552_v46, %v9551_v0  ;;  %vm9566_vm13 = vcmask 7168  }
 0x3af   : > { %v3226_v9 = vmul.bf16 %v3217_v31, %v7661_v24  ;;  %v9565_v31 = vld [vmem:[#allocation117_spill] sm:$0xff] }
 0x3b1   : > { %4160 = vrot.lane.b32.xlu0 %v4152_v36, %s9449_s23  ;;  %4289 = vrot.lane.b32.xlu1 %v4282_v22, %s9312_s15  ;;  %v3203_v36 = vmul.bf16 %v3194_v35, %v7749_v44  ;;  %v3629_v22 = vmul.bf16 %v3620_v6, %v7667_v21  ;;  %v3746_v45 = vrot.slane %v3226_v9, 4  ;;  %v3227_v6 = vmul.bf16 %v9551_v0, %v7667_v21 }
 0x3b3   : > { %v4283_v40 = vrot.slane %v3629_v22, 4 }
 0x3b5   : > { %4173 = vrot.lane.b32.xlu0 %v3521_v37, %s5437_s21  ;;  %4306 = vrot.lane.b32.xlu1 %v3648_v41, %s5430_s18  ;;  %v9558_v37 = vld [vmem:[#allocation77_spill] sm:$0xff]  ;;  %s5160_s21 = sshll.u32 %s5501_s28, 7 }
 0x3b6   : > { %v3259_v41 = vsel %vm9559_vm10, %v9558_v37, %v9557_v52  ;;  %vm9574_vm10 = vmmov %vm9566_vm13 }
 0x3b9   : > { %4204 = vrot.lane.b32.xlu0 %v4196_v7, %s9438_s22  ;;  %3668 = vrot.lane.b32.xlu1 %v3660_v32, %s9532_s20  ;;  %v3143_v7 = vmul.bf16 %v7469_v53, %v7667_v21  ;;  %v3268_v32 = vmul.bf16 %v3259_v41, %v7661_v24  ;;  %v3278_v53 = vsel %vm9561_vm11, %v7536_v14, %v7582_v47  ;;  %v9562_v14 = vld [vmem:[#allocation114_spill] sm:$0xff] }
 0x3ba   : > { %v3287_v1 = vmul.bf16 %v3278_v53, %v7749_v44  ;;  %v3475_v56 = vmul.bf16 %v9562_v14, %v7718_v8  ;;  %v9571_v53 = vld [vmem:[#allocation126_spill] sm:$0xff] }
 0x3bb   : > { %v3661_v39 = vrot.slane %v3143_v7, 4  ;;  %v3789_v5 = vrot.slane %v3268_v32, 4 }
 0x3bc   : > { %v4110_v2 = vrot.slane %v3475_v56, 4  ;;  %v9576_v56 = vld [vmem:[#allocation115_spill] sm:$0xff] }
 0x3bd   : > { %4217 = vrot.lane.b32.xlu0 %v3563_v57, %s9442_s29  ;;  %3683 = vrot.lane.b32.xlu1 %v3161_v61, %s5405_s13  ;;  %s9554_s29 = smov 118   ;;  %v3185_v57 = vmul.bf16 %v9545_v34, %v7667_v21  ;;  %v3310_v61 = vmul.bf16 %v3301_v3, %v7661_v24  ;;  %v3195_v34 = vsel %vm546_vm0, %v9550_v25, %v7508_v58  ;;  %vm9567_vm0 = vmmov %vm9556_vm8 }
 0x3be   : > { %v3237_v25 = vsel %vm9567_vm0, %v9555_v43, %v7524_v10  ;;  %vm9570_vm8 = vmmov %vm9561_vm11  ;;  %v3139_v3 = vmul.bf16 %v9571_v53, %v7718_v8  ;;  %vm9578_vm11 = vcmask 64512   ;;  %vm9588_vm0 = vcmask 670720  }
 0x3bf   : > { %v3704_v11 = vrot.slane %v3185_v57, 4  ;;  %v3832_v26 = vrot.slane %v3310_v61, 4  ;;  %v3246_v9 = vmul.bf16 %v3237_v25, %v7759_v29  ;;  %v9573_v57 = vld [vmem:[#allocation110_spill] sm:$0xff]  ;;  %v9581_v25 = vld [vmem:[#allocation116_spill] sm:$0xff] }
 0x3c1   : > { %4247 = vrot.lane.b32.xlu0 %v4239_v16, %s5438_s9  ;;  %3711 = vrot.lane.b32.xlu1 %v3703_v15, %s9547_s17  ;;  %v3468_v16 = vsel %vm9564_vm14, %v9563_v55, %v7331_v27  ;;  %v3204_v15 = vmul.bf16 %v3195_v34, %v7759_v29  ;;  %v3492_v27 = vsel %vm9566_vm13, %v9565_v31, %v7339_v59  ;;  %vm9582_vm14 = vcmask 80896  }
 0x3c2   : > { %v3477_v35 = vmul.bf16 %v3468_v16, %v7759_v29  ;;  %v3501_v58 = vmul.bf16 %v3492_v27, %v7759_v29  ;;  %v3269_v59 = vmul.bf16 %v9557_v52, %v7667_v21  ;;  %v3279_v52 = vsel %vm9570_vm8, %v7582_v47, %v7540_v23  ;;  %vm9592_vm8 = vmmov %vm9578_vm11 }
 0x3c3   : > { %v3132_v23 = vsel %vm9574_vm10, %v9573_v57, %v7514_v63  ;;  %v3181_v16 = vmul.bf16 %v9576_v56, %v7718_v8  ;;  %vm9586_vm13 = vcmask 138240   ;;  %vm9594_vm10 = vcmask 539648  }
 0x3c4   : > { %v3790_v43 = vrot.slane %v3269_v59, 4  ;;  %v3141_v34 = vmul.bf16 %v3132_v23, %v7759_v29 }
 0x3c5   : > { %4261 = vrot.lane.b32.xlu0 %v3605_v50, %s9432_s14  ;;  %3726 = vrot.lane.b32.xlu1 %v3203_v36, %s5408_s16  ;;  %s9560_s14 = smov 111   ;;  %v3747_v50 = vrot.slane %v3227_v6, 4  ;;  %v4112_v36 = vrot.slane %v3477_v35, 4  ;;  %v3700_v35 = vrot.slane %v3181_v16, 4  ;;  %v3467_v16 = vsel %vm9588_vm0, %v9562_v14, %v9563_v55 }
 0x3c6   : > { %v3659_v27 = vrot.slane %v3141_v34, 4  ;;  %v9589_v34 = vld [vmem:[#allocation8_spill] sm:$0xff]  ;;  %vm9602_vm0 = vcmask 7168  }
 0x3c9   : > { %4291 = vrot.lane.b32.xlu0 %v4283_v40, %s9312_s15  ;;  %3754 = vrot.lane.b32.xlu1 %v3746_v45, %s9554_s29  ;;  %v4150_v40 = vrot.slane %v3501_v58, 4  ;;  %v9568_v45 = vld [vmem:[#allocation109_spill] sm:$0xff] }
 0x3ca   : > { %v3542_v18 = vmul.bf16 %v9568_v45, %v7749_v44 }
 0x3cd   : > { %4304 = vrot.lane.b32.xlu0 %v3647_v13, %s5430_s18  ;;  %3769 = vrot.lane.b32.xlu1 %v3245_v33, %s9523_s8  ;;  %v4193_v13 = vrot.slane %v3542_v18, 4  ;;  %v9569_v33 = vld [vmem:[#allocation118_spill] sm:$0xff] }
 0x3ce   : > { %v3584_v7 = vmul.bf16 %v9569_v33, %v7749_v44 }
 0x3d0   : > { %v4236_v38 = vrot.slane %v3584_v7, 4 }
 0x3d1   : > { %3670 = vrot.lane.b32.xlu0 %v3661_v39, %s9532_s20  ;;  %3797 = vrot.lane.b32.xlu1 %v3789_v5, %s9560_s14  ;;  %v3288_v5 = vmul.bf16 %v3279_v52, %v7759_v29 }
 0x3d5   : > { %3685 = vrot.lane.b32.xlu0 %v3162_v48, %s5405_s13  ;;  %3812 = vrot.lane.b32.xlu1 %v3287_v1, %s9526_s19  ;;  %v9572_v48 = vld [vmem:[#allocation113_spill] sm:$0xff]  ;;  %s9600_s13 = smov 62  }
 0x3d6   : > { %v3626_v1 = vmul.bf16 %v9572_v48, %v7749_v44 }
 0x3d9   : > { %3713 = vrot.lane.b32.xlu0 %v3704_v11, %s9547_s17  ;;  %3840 = vrot.lane.b32.xlu1 %v3832_v26, %s9312_s15  ;;  %v3657_v11 = vrot.slane %v3139_v3, 4  ;;  %v4280_v26 = vrot.slane %v3626_v1, 4 }
 0x3dd   : > { %3728 = vrot.lane.b32.xlu0 %v3204_v15, %s5408_s16  ;;  %4115 = vrot.lane.b32.xlu1 %v4110_v2, %s9532_s20  ;;  %v9577_v15 = vld [vmem:[#allocation111_spill] sm:$0xff]  ;;  %s9610_s16 = smov 56  }
 0x3de   : > { %v3173_v2 = vsel %vm9578_vm11, %v9576_v56, %v9577_v15  ;;  %vm9596_vm11 = vcmask 531456  }
 0x3df   : > { %v3182_v58 = vmul.bf16 %v3173_v2, %v7749_v44  ;;  %v3299_v2 = vsel %vm810_vm15, %v7570_v42, %v9589_v34 }
 0x3e1   : > { %3756 = vrot.lane.b32.xlu0 %v3747_v50, %s9554_s29  ;;  %4119 = vrot.lane.b32.xlu1 %v4112_v36, %s9532_s20  ;;  %v9580_v50 = vld [vmem:[#allocation93_spill] sm:$0xff] }
 0x3e2   : > { %v3223_v36 = vmul.bf16 %v9580_v50, %v7718_v8 }
 0x3e3   : > { %v7928_v0 = vpop.permute.xlu1 %4137  ;;  %v7930_v22 = vpop.permute.xlu0 %4177 }
 0x3e4   : > { %v3743_v18 = vrot.slane %v3223_v36, 4 }
 0x3e5   : > { %3771 = vrot.lane.b32.xlu0 %v3246_v9, %s9523_s8  ;;  %4156 = vrot.lane.b32.xlu1 %v4150_v40, %s9449_s23  ;;  %v3215_v9 = vsel %vm9582_vm14, %v9580_v50, %v9581_v25 }
 0x3e6   : > { %v3224_v52 = vmul.bf16 %v3215_v9, %v7749_v44  ;;  %v3308_v9 = vmul.bf16 %v3299_v2, %v7749_v44 }
 0x3e7   : > { %v7939_v41 = vpop.permute.xlu1 %4139  ;;  %v7941_v10 = vpop.permute.xlu0 %4179 }
 0x3e9   : > { %3799 = vrot.lane.b32.xlu0 %v3790_v43, %s9560_s14  ;;  %4198 = vrot.lane.b32.xlu1 %v4193_v13, %s9438_s22  ;;  %v3701_v43 = vrot.slane %v3182_v58, 4  ;;  %v9584_v13 = vld [vmem:[#allocation82_spill] sm:$0xff]  ;;  %v3476_v58 = vmul.bf16 %v3467_v16, %v7749_v44 }
 0x3ea   : > { %v3265_v7 = vmul.bf16 %v9584_v13, %v7718_v8 }
 0x3eb   : > { %v7950_v32 = vpop.permute.xlu1 %3687  ;;  %v7952_v39 = vpop.permute.xlu0 %4221  ;;  %v4111_v55 = vrot.slane %v3476_v58, 4 }
 0x3ec   : > { %v3786_v23 = vrot.slane %v3265_v7, 4  ;;  %v9593_v7 = vld [vmem:[#allocation81_spill] sm:$0xff] }
 0x3ed   : > { %3814 = vrot.lane.b32.xlu0 %v3288_v5, %s9526_s19  ;;  %4241 = vrot.lane.b32.xlu1 %v4236_v38, %s5438_s9  ;;  %v9585_v5 = vld [vmem:[#allocation127_spill] sm:$0xff] }
 0x3ee   : > { %v3257_v38 = vsel %vm9586_vm13, %v9584_v13, %v9585_v5  ;;  %v3534_v13 = vsel %vm9592_vm8, %v9568_v45, %v7355_v51  ;;  %v3576_v51 = vsel %vm9582_vm14, %v9569_v33, %v7383_v12  ;;  %vm9605_vm8 = vmmov %vm9596_vm11 }
 0x3ef   : > { %v7964_v47 = vpop.permute.xlu1 %3730  ;;  %v7966_v61 = vpop.permute.xlu0 %4223  ;;  %v3266_v56 = vmul.bf16 %v3257_v38, %v7749_v44  ;;  %v9595_v38 = vld [vmem:[#allocation83_spill] sm:$0xff]  ;;  %v3543_v16 = vmul.bf16 %v3534_v13, %v7759_v29 }
 0x3f0   : > { %9575 = vst [vmem:[#allocation20_spill] sm:$0xff] %v7964_v47  ;;  %v3328_v33 = vmul.bf16 %v9595_v38, %v7718_v8 }
 0x3f1   : > { %3662 = vrot.lane.b32.xlu0 %v3657_v11, %s9532_s20  ;;  %4285 = vrot.lane.b32.xlu1 %v4280_v26, %s9312_s15  ;;  %v3744_v11 = vrot.slane %v3224_v52, 4  ;;  %v3307_v26 = vmul.bf16 %v7570_v42, %v7718_v8  ;;  %v3787_v36 = vrot.slane %v3266_v56, 4  ;;  %v3830_v42 = vrot.slane %v3308_v9, 4 }
 0x3f2   : > { %v3341_v52 = vsel %vm9594_vm10, %v7590_v19, %v9593_v7  ;;  %v3585_v9 = vmul.bf16 %v3576_v51, %v7759_v29 }
 0x3f3   : > { %v7976_v63 = vpop.permute.xlu1 %3773  ;;  %v7978_v6 = vpop.permute.xlu0 %4265  ;;  %v3829_v50 = vrot.slane %v3307_v26, 4  ;;  %v3350_v2 = vmul.bf16 %v3341_v52, %v7749_v44  ;;  %v3131_v52 = vsel %vm9602_vm0, %v9571_v53, %v9573_v57  ;;  %vm9611_vm0 = vcmask 138240  }
 0x3f4   : > { %9579 = vst [vmem:[#allocation21_spill] sm:$0xff] %v7976_v63  ;;  %v4237_v12 = vrot.slane %v3585_v9, 4 }
 0x3f5   : > { %3705 = vrot.lane.b32.xlu0 %v3700_v35, %s9547_s17  ;;  %3666 = vrot.lane.b32.xlu1 %v3659_v27, %s9532_s20  ;;  %v3873_v58 = vrot.slane %v3350_v2, 4 }
 0x3f7   : > { %v7988_v40 = vpop.permute.xlu1 %3816  ;;  %v7990_v59 = vpop.permute.xlu0 %4267 }
 0x3f8   : > { %9583 = vst [vmem:[#allocation22_spill] sm:$0xff] %v7988_v40 }
 0x3f9   : > { %3748 = vrot.lane.b32.xlu0 %v3743_v18, %s9554_s29  ;;  %3707 = vrot.lane.b32.xlu1 %v3701_v43, %s9547_s17  ;;  %v3500_v43 = vmul.bf16 %v9565_v31, %v7749_v44 }
 0x3fb   : > { %v8000_v3 = vpop.permute.xlu1 %3681  ;;  %v8002_v1 = vpop.permute.xlu0 %4308  ;;  %v4149_v31 = vrot.slane %v3500_v43, 4 }
 0x3fc   : > { %9587 = vst [vmem:[#allocation23_spill] sm:$0xff] %v8000_v3  ;;  %v3349_v3 = vmul.bf16 %v7590_v19, %v7718_v8 }
 0x3fd   : > { %3791 = vrot.lane.b32.xlu0 %v3786_v23, %s9560_s14  ;;  %3750 = vrot.lane.b32.xlu1 %v3744_v11, %s9554_s29  ;;  %v3320_v23 = vsel %vm9596_vm11, %v9595_v38, %v7598_v60  ;;  %vm9606_vm11 = vcmask 64512  }
 0x3fe   : > { %v3329_v56 = vmul.bf16 %v3320_v23, %v7749_v44  ;;  %v9603_v23 = vld [vmem:[#allocation84_spill] sm:$0xff]  ;;  %v3174_v53 = vsel %vm9606_vm11, %v9577_v15, %v9546_v28  ;;  %v9608_v15 = vld [vmem:[#allocation90_spill] sm:$0xff]  ;;  %vm9618_vm11 = vcmask 531456  }
 0x3ff   : > { %v8015_v35 = vpop.permute.xlu1 %3724  ;;  %v8017_v27 = vpop.permute.xlu0 %4310 }
 0x400   : > { %9590 = vst [vmem:[#allocation25_spill] sm:$0xff] %v8015_v35 }
 0x401   : > { %3834 = vrot.lane.b32.xlu0 %v3829_v50, %s9312_s15  ;;  %3793 = vrot.lane.b32.xlu1 %v3787_v36, %s9560_s14  ;;  %v4194_v36 = vrot.slane %v3543_v16, 4 }
 0x403   : > { %v8023_v18 = vpop.permute.xlu1 %3767  ;;  %v8025_v14 = vpop.permute.xlu0 %3689 }
 0x404   : > { %9591 = vst [vmem:[#allocation26_spill] sm:$0xff] %v8023_v18  ;;  %v9623_v18 = vld [vmem:[#allocation87_spill] sm:$0xff] }
 0x405   : > { %4117 = vrot.lane.b32.xlu0 %v4111_v55, %s9532_s20  ;;  %3836 = vrot.lane.b32.xlu1 %v3830_v42, %s9312_s15  ;;  %v3618_v55 = vsel %vm9586_vm13, %v9572_v48, %v7413_v30  ;;  %v9604_v30 = vld [vmem:[#allocation78_spill] sm:$0xff]  ;;  %vm9609_vm13 = vcmask 588800  }
 0x406   : > { %v3627_v13 = vmul.bf16 %v3618_v55, %v7759_v29  ;;  %v3322_v48 = vsel %vm9605_vm8, %v9604_v30, %v9603_v23  ;;  %vm9615_vm8 = vmmov %vm9609_vm13 }
 0x407   : > { %v8040_v11 = vpop.permute.xlu1 %3810  ;;  %v8042_v26 = vpop.permute.xlu0 %3732  ;;  %v3331_v2 = vmul.bf16 %v3322_v48, %v7661_v24 }
 0x408   : > { %9597 = vst [vmem:[#allocation27_spill] sm:$0xff] %v8040_v11  ;;  %9598 = vst [vmem:[#allocation24_spill] sm:$0xff] %v8042_v26  ;;  %v4281_v16 = vrot.slane %v3627_v13, 4  ;;  %v9607_v13 = vld [vmem:[#allocation89_spill] sm:$0xff] }
 0x409   : > { %4154 = vrot.lane.b32.xlu0 %v4149_v31, %s9449_s23  ;;  %3855 = vrot.lane.b32.xlu1 %v3329_v56, %s5430_s18  ;;  %v3343_v31 = vsel %vm9594_vm10, %v7594_v54, %v7602_v20  ;;  %v3383_v28 = vsel %vm994_vm1, %v7606_v49, %v9607_v13  ;;  %s9627_s23 = smov 48  }
 0x40a   : > { %v3352_v51 = vmul.bf16 %v3343_v31, %v7661_v24 }
 0x40b   : > { %v8052_v45 = vpop.permute.xlu1 %4133  ;;  %v8054_v50 = vpop.permute.xlu0 %3775 }
 0x40c   : > { %9599 = vst [vmem:[#allocation28_spill] sm:$0xff] %v8054_v50  ;;  %v3875_v9 = vrot.slane %v3352_v51, 4  ;;  %v3392_v51 = vmul.bf16 %v3383_v28, %v7749_v44 }
 0x40d   : > { %4200 = vrot.lane.b32.xlu0 %v4194_v36, %s9438_s22  ;;  %3879 = vrot.lane.b32.xlu1 %v3873_v58, %s9600_s13  ;;  %v3140_v36 = vmul.bf16 %v3131_v52, %v7749_v44  ;;  %v3362_v52 = vsel %vm9609_vm13, %v9608_v15, %v7614_v4  ;;  %s9612_s22 = smov 55   ;;  %vm9624_vm13 = vcmask 605184  }
 0x40f   : > { %v8062_v42 = vpop.permute.xlu1 %4175  ;;  %v8064_v43 = vpop.permute.xlu0 %3818  ;;  %v3658_v55 = vrot.slane %v3140_v36, 4 }
 0x410   : > { %9601 = vst [vmem:[#allocation29_spill] sm:$0xff] %v8064_v43 }
 0x411   : > { %4243 = vrot.lane.b32.xlu0 %v4237_v12, %s5438_s9  ;;  %3853 = vrot.lane.b32.xlu1 %v3328_v33, %s5430_s18  ;;  %v3183_v12 = vmul.bf16 %v3174_v53, %v7759_v29  ;;  %v3216_v33 = vsel %vm9582_vm14, %v9581_v25, %v9552_v46  ;;  %v3258_v46 = vsel %vm9611_vm0, %v9585_v5, %v9558_v37  ;;  %vm9621_vm14 = vcmask 654336   ;;  %vm9631_vm0 = vmmov %vm9624_vm13 }
 0x412   : > { %v3225_v36 = vmul.bf16 %v3216_v33, %v7759_v29  ;;  %v3300_v33 = vsel %vm810_vm15, %v9589_v34, %v7576_v17  ;;  %v3370_v37 = vmul.bf16 %v9608_v15, %v7718_v8  ;;  %v9617_v17 = vld [vmem:[#allocation103_spill] sm:$0xff] }
 0x413   : > { %v8080_v56 = vpop.permute.xlu1 %4202  ;;  %v8082_v38 = vpop.permute.xlu0 %4121 }
 0x415   : > { %4287 = vrot.lane.b32.xlu0 %v4281_v16, %s9312_s15  ;;  %3859 = vrot.lane.b32.xlu1 %v3331_v2, %s5430_s18  ;;  %v3371_v16 = vmul.bf16 %v3362_v52, %v7749_v44  ;;  %v3702_v2 = vrot.slane %v3183_v12, 4  ;;  %v3267_v12 = vmul.bf16 %v3258_v46, %v7759_v29  ;;  %v9616_v46 = vld [vmem:[#allocation104_spill] sm:$0xff] }
 0x416   : > { %v3385_v34 = vsel %vm994_vm1, %v9617_v17, %v9616_v46 }
 0x417   : > { %v8092_v57 = vpop.permute.xlu1 %4219  ;;  %v8094_v58 = vpop.permute.xlu0 %4123  ;;  %v3788_v5 = vrot.slane %v3267_v12, 4 }
 0x419   : > { %3883 = vrot.lane.b32.xlu1 %v3875_v9, %s9600_s13  ;;  %3664 = vrot.lane.b32.xlu0 %v3658_v55, %s9532_s20  ;;  %v3916_v9 = vrot.slane %v3392_v51, 4  ;;  %v3745_v55 = vrot.slane %v3225_v36, 4  ;;  %v9614_v51 = vld [vmem:[#allocation91_spill] sm:$0xff] }
 0x41b   : > { %v8108_v48 = vpop.permute.xlu1 %4245  ;;  %v8110_v31 = vpop.permute.xlu0 %4135 }
 0x41d   : > { %3898 = vrot.lane.b32.xlu1 %v3371_v16, %s9610_s16  ;;  %3709 = vrot.lane.b32.xlu0 %v3702_v2, %s9547_s17  ;;  %v3309_v16 = vmul.bf16 %v3300_v33, %v7759_v29  ;;  %v9613_v2 = vld [vmem:[#allocation85_spill] sm:$0xff]  ;;  %v3394_v33 = vmul.bf16 %v3385_v34, %v7661_v24  ;;  %s8876_s17 = scalar_lea.hbm %s8926_s7, %s5160_s21 }
 0x41e   : > { %v3364_v36 = vsel %vm9615_vm8, %v9614_v51, %v9613_v2  ;;  %v9620_v34 = vld [vmem:[#allocation105_spill] sm:$0xff]  ;;  %vm9634_vm8 = vmmov %vm9621_vm14 }
 0x41f   : > { %v8120_v25 = vpop.permute.xlu1 %4263  ;;  %v8122_v53 = vpop.permute.xlu0 %4158  ;;  %v3373_v15 = vmul.bf16 %v3364_v36, %v7661_v24  ;;  %v3831_v12 = vrot.slane %v3309_v16, 4  ;;  %v3918_v43 = vrot.slane %v3394_v33, 4  ;;  %v3342_v16 = vsel %vm9594_vm10, %v9593_v7, %v7594_v54  ;;  %v9619_v36 = vld [vmem:[#allocation86_spill] sm:$0xff] }
 0x420   : > { %vm9637_vm10 = vcmask 588800  }
 0x421   : > { %3922 = vrot.lane.b32.xlu1 %v3916_v9, %s9612_s22  ;;  %3752 = vrot.lane.b32.xlu0 %v3745_v55, %s9554_s29 }
 0x423   : > { %v8130_v28 = vpop.permute.xlu1 %4289  ;;  %v8132_v52 = vpop.permute.xlu0 %4160 }
 0x425   : > { %3896 = vrot.lane.b32.xlu1 %v3370_v37, %s9610_s16  ;;  %3795 = vrot.lane.b32.xlu0 %v3788_v5, %s9560_s14  ;;  %v3311_v37 = vmul.bf16 %v7586_v62, %v7667_v21  ;;  %v3321_v62 = vsel %vm9618_vm11, %v7598_v60, %v9604_v30  ;;  %v3351_v60 = vmul.bf16 %v3342_v16, %v7759_v29  ;;  %vm9641_vm11 = vmmov %vm9634_vm8  ;;  %s5439_s14 = smov [#allocation2]  }
 0x426   : > { %v3330_v54 = vmul.bf16 %v3321_v62, %v7759_v29 }
 0x427   : > { %v8145_v9 = vpop.permute.xlu1 %4306  ;;  %v8147_v55 = vpop.permute.xlu0 %4173  ;;  %v3833_v11 = vrot.slane %v3311_v37, 4  ;;  %v3874_v35 = vrot.slane %v3351_v60, 4 }
 0x429   : > { %3902 = vrot.lane.b32.xlu1 %v3373_v15, %s9610_s16  ;;  %3838 = vrot.lane.b32.xlu0 %v3831_v12, %s9312_s15  ;;  %v3425_v15 = vsel %vm9621_vm14, %v9620_v34, %v9619_v36  ;;  %v9622_v12 = vld [vmem:[#allocation9_spill] sm:$0xff]  ;;  %vm4183_vm14 = vcmask 646144  }
 0x42a   : > { %v3404_v33 = vsel %vm9624_vm13, %v9623_v18, %v9622_v12  ;;  %v3434_v7 = vmul.bf16 %v3425_v15, %v7749_v44  ;;  %v3412_v15 = vmul.bf16 %v9623_v18, %v7718_v8  ;;  %vm4251_vm13 = vcmask 580608  }
 0x42b   : > { %v8155_v5 = vpop.permute.xlu1 %3668  ;;  %v8157_v40 = vpop.permute.xlu0 %4204 }
 0x42c   : > { %v3959_v50 = vrot.slane %v3434_v7, 4  ;;  %v9632_v7 = vld [vmem:[#allocation11_spill] sm:$0xff] }
 0x42d   : > { %3926 = vrot.lane.b32.xlu1 %v3918_v43, %s9612_s22  ;;  %3842 = vrot.lane.b32.xlu0 %v3833_v11, %s9312_s15  ;;  %v3413_v11 = vmul.bf16 %v3404_v33, %v7749_v44  ;;  %s9626_s15 = smov 54   ;;  %v3872_v33 = vrot.slane %v3349_v3, 4  ;;  %v3332_v3 = vmul.bf16 %v9603_v23, %v7667_v21  ;;  %v3384_v23 = vsel %vm994_vm1, %v9607_v13, %v9617_v17 }
 0x42f   : > { %v8173_v37 = vpop.permute.xlu1 %3683  ;;  %v8175_v43 = vpop.permute.xlu0 %4217 }
 0x430   : > { %9625 = vst [vmem:[#allocation30_spill] sm:$0xff] %v8173_v37 }
 0x431   : > { %3941 = vrot.lane.b32.xlu1 %v3413_v11, %s9626_s15  ;;  %3857 = vrot.lane.b32.xlu0 %v3330_v54, %s5430_s18  ;;  %v9629_v11 = vld [vmem:[#allocation88_spill] sm:$0xff] }
 0x432   : > { %v9630_v54 = vld [vmem:[#allocation92_spill] sm:$0xff] }
 0x433   : > { %v8183_v30 = vpop.permute.xlu1 %3711  ;;  %v8185_v63 = vpop.permute.xlu0 %4247  ;;  %v3406_v19 = vsel %vm9631_vm0, %v9630_v54, %v9629_v11  ;;  %vm9647_vm0 = vmmov %vm9637_vm10 }
 0x434   : > { %v3415_v37 = vmul.bf16 %v3406_v19, %v7661_v24 }
 0x435   : > { %3965 = vrot.lane.b32.xlu1 %v3959_v50, %s9627_s23  ;;  %3881 = vrot.lane.b32.xlu0 %v3874_v35, %s9600_s13  ;;  %v9633_v50 = vld [vmem:[#allocation107_spill] sm:$0xff] }
 0x436   : > { %v3427_v35 = vsel %vm9634_vm8, %v9633_v50, %v9632_v7  ;;  %vm9651_vm8 = vcmask 531456  }
 0x437   : > { %v8191_v62 = vpop.permute.xlu1 %3726  ;;  %v8193_v16 = vpop.permute.xlu0 %4261  ;;  %v3436_v18 = vmul.bf16 %v3427_v35, %v7661_v24 }
 0x438   : > { %9628 = vst [vmem:[#allocation31_spill] sm:$0xff] %v8191_v62 }
 0x439   : > { %3939 = vrot.lane.b32.xlu1 %v3412_v15, %s9626_s15  ;;  %3877 = vrot.lane.b32.xlu0 %v3872_v33, %s9600_s13  ;;  %v3353_v15 = vmul.bf16 %v7602_v20, %v7667_v21  ;;  %v3363_v20 = vsel %vm9637_vm10, %v7614_v4, %v9614_v51  ;;  %v4166_v4 = vsel %vm9641_vm11, %v8122_v53, %v8132_v52  ;;  %vm9652_vm10 = vmmov %vm9641_vm11  ;;  %vm9653_vm11 = vcmask 605184  }
 0x43b   : > { %v8205_v60 = vpop.permute.xlu1 %3754  ;;  %v8207_v62 = vpop.permute.xlu0 %4291  ;;  %v3876_v26 = vrot.slane %v3353_v15, 4  ;;  %v9640_v15 = vld [vmem:[#allocation125_spill] sm:$0xff] }
 0x43c   : > { %9635 = vst [vmem:[#allocation33_spill] sm:$0xff] %v8205_v60  ;;  %v3961_v60 = vrot.slane %v3436_v18, 4  ;;  %v3372_v18 = vmul.bf16 %v3363_v20, %v7759_v29 }
 0x43d   : > { %3945 = vrot.lane.b32.xlu1 %v3415_v37, %s9626_s15  ;;  %3861 = vrot.lane.b32.xlu0 %v3332_v3, %s5430_s18  ;;  %v9638_v37 = vld [vmem:[#allocation102_spill] sm:$0xff]  ;;  %s9642_s18 = smov 47  }
 0x43e   : > { %v3458_v19 = vmul.bf16 %v9638_v37, %v7667_v21 }
 0x43f   : > { %v8217_v33 = vpop.permute.xlu1 %3769  ;;  %v8219_v47 = vpop.permute.xlu0 %4304 }
 0x440   : > { %9636 = vst [vmem:[#allocation34_spill] sm:$0xff] %v8217_v33  ;;  %v4373_v17 = vsel %vm1289_vm3, %v3458_v19, %v8094_v58 }
 0x441   : > { %3969 = vrot.lane.b32.xlu1 %v3961_v60, %s9627_s23  ;;  %3885 = vrot.lane.b32.xlu0 %v3876_v26, %s9600_s13  ;;  %v3122_v60 = vmul.bf16 %v7661_v24, %v9640_v15  ;;  %v3393_v26 = vmul.bf16 %v3384_v23, %v7759_v29  ;;  %v4143_v23 = vsel %vm1154_vm12, %v7928_v0, %v7939_v41  ;;  %s5343_s13 = sshll.u32 %s5439_s14, 4  ;;  %s5344_s13 = int_to_ptr.vmem [resolvable:$false] %s5343_s13 }
 0x442   : > { %v3391_v15 = vmul.bf16 %v7606_v49, %v7718_v8 }
 0x443   : > { %v8231_v35 = vpop.permute.xlu1 %3797  ;;  %v3671_v3 = vpop.permute.xlu0 %3670  ;;  %v3917_v19 = vrot.slane %v3393_v26, 4 }
 0x444   : > { %9639 = vst [vmem:[#allocation35_spill] sm:$0xff] %v8231_v35  ;;  %v3675_v13 = vsel %vm1291_vm4, %v8155_v5, %v3671_v3  ;;  %v9644_v35 = vld [vmem:[#allocation99_spill] sm:$0xff]  ;;  %v3915_v49 = vrot.slane %v3391_v15, 4  ;;  %v3374_v15 = vmul.bf16 %v9613_v2, %v7667_v21 }
 0x445   : > { %3900 = vrot.lane.b32.xlu0 %v3372_v18, %s9610_s16  ;;  %4492 = vrot.lane.b32.xlu1 %v4373_v17, %s9642_s18  ;;  %v3991_v51 = vsel %vm1289_vm3, %v3122_v60, %v3675_v13  ;;  %v4385_v18 = vsel %vm1289_vm3, %v4143_v23, %v4166_v4  ;;  %v4211_v60 = vsel %vm994_vm1, %v8157_v40, %v9644_v35  ;;  %v9645_v13 = vld [vmem:[#allocation98_spill] sm:$0xff] }
 0x446   : > { %4641 = vmatprep.subr.bf16.mxu1 %v3991_v51  ;;  %v4187_v17 = vsel %vm4183_vm14, %v7941_v10, %v9645_v13  ;;  %v4254_v4 = vsel %vm4251_vm13, %v8108_v48, %v8185_v63  ;;  %v4229_v35 = vsel %vm9647_vm0, %v7952_v39, %v7966_v61  ;;  %v9649_v13 = vld [vmem:[#allocation10_spill] sm:$0xff]  ;;  %vm9659_vm0 = vmmov %vm9652_vm10 }
 0x447   : > { %v8250_v20 = vpop.permute.xlu1 %3812  ;;  %v8252_v3 = vpop.permute.xlu0 %3685 }
 0x448   : > { %9643 = vst [vmem:[#allocation32_spill] sm:$0xff] %v8250_v20  ;;  %v4403_v20 = vsel %vm1289_vm3, %v4187_v17, %v4211_v60  ;;  %v4415_v60 = vsel %vm1289_vm3, %v4229_v35, %v4254_v4  ;;  %v9650_v17 = vld [vmem:[#allocation108_spill] sm:$0xff]  ;;  %v3426_v4 = vsel %vm9652_vm10, %v9619_v36, %v9633_v50  ;;  %v3405_v35 = vsel %vm9653_vm11, %v9622_v12, %v9630_v54  ;;  %vm9666_vm11 = vmmov %vm9659_vm0 }
 0x449   : > { %3924 = vrot.lane.b32.xlu0 %v3917_v19, %s9612_s22  ;;  %4500 = vrot.lane.b32.xlu1 %v4385_v18, %s9642_s18  ;;  %v3395_v18 = vmul.bf16 %v9616_v46, %v7667_v21  ;;  %v3433_v54 = vmul.bf16 %v9620_v34, %v7718_v8  ;;  %v3416_v34 = vmul.bf16 %v9629_v11, %v7667_v21  ;;  %v9656_v11 = vld [vmem:[#allocation124_spill] sm:$0xff]  ;;  %vm9665_vm10 = vcmask 531456  }
 0x44b   : > { %v8265_v26 = vpop.permute.xlu1 %3840  ;;  %v3714_v51 = vpop.permute.xlu0 %3713 }
 0x44c   : > { %9646 = vst [vmem:[#allocation36_spill] sm:$0xff] %v8265_v26 }
 0x44d   : > { %3920 = vrot.lane.b32.xlu0 %v3915_v49, %s9612_s22  ;;  %4512 = vrot.lane.b32.xlu1 %v4403_v20, %s9642_s18  ;;  %v4298_v20 = vsel %vm810_vm15, %v8207_v62, %v9649_v13  ;;  %v4274_v49 = vsel %vm9651_vm8, %v7990_v59, %v9650_v17  ;;  %v3435_v13 = vmul.bf16 %v3426_v4, %v7759_v29  ;;  %vm9664_vm8 = vcmask 588800  }
 0x44e   : > { %v4433_v46 = vsel %vm1289_vm3, %v4274_v49, %v4298_v20 }
 0x44f   : > { %v8276_v23 = vpop.permute.xlu1 %4115  ;;  %v8278_v19 = vpop.permute.xlu0 %3728  ;;  %v3960_v12 = vrot.slane %v3435_v13, 4 }
 0x450   : > { %9648 = vst [vmem:[#allocation38_spill] sm:$0xff] %v8278_v19  ;;  %v3919_v19 = vrot.slane %v3395_v18, 4  ;;  %v3414_v18 = vmul.bf16 %v3405_v35, %v7759_v29 }
 0x451   : > { %3904 = vrot.lane.b32.xlu0 %v3374_v15, %s9610_s16  ;;  %4520 = vrot.lane.b32.xlu1 %v4415_v60, %s9642_s18  ;;  %s5345_s16 = scalar_lea.vmem %s5344_s13, 256 }
 0x453   : > { %v8293_v26 = vpop.permute.xlu1 %4119  ;;  %v8295_v2 = vpop.permute.xlu0 %3756 }
 0x455   : > { %3928 = vrot.lane.b32.xlu0 %v3919_v19, %s9612_s22  ;;  %4532 = vrot.lane.b32.xlu1 %v4433_v46, %s9642_s18  ;;  %v3958_v46 = vrot.slane %v3433_v54, 4 }
 0x457   : > { %v8306_v15 = vpop.permute.xlu1 %4156  ;;  %v8308_v60 = vpop.permute.xlu0 %3771 }
 0x458   : > { %v8315_v19 = vsel %vm1573_vm9, %v8217_v33, %v8308_v60  ;;  %v9658_v33 = vld [vmem:[#allocation97_spill] sm:$0xff] }
 0x459   : > { %9654 = vst [vmem:[#allocation39_spill] sm:$0xff] %v8315_v19  ;;  %3943 = vrot.lane.b32.xlu0 %v3414_v18, %s9626_s15  ;;  %v3437_v18 = vmul.bf16 %v9632_v7, %v7667_v21  ;;  %v9657_v7 = vld [vmem:[#allocation15_spill] sm:$0xff] }
 0x45b   : > { %v8318_v36 = vpop.permute.xlu1 %4198  ;;  %v8320_v50 = vpop.permute.xlu0 %3799 }
 0x45c   : > { %v4391_v20 = vsel %vm1289_vm3, %v8147_v55, %v8318_v36 }
 0x45d   : > { %3967 = vrot.lane.b32.xlu0 %v3960_v12, %s9627_s23  ;;  %4504 = vrot.lane.b32.xlu1 %v4391_v20, %s9642_s18  ;;  %v3718_v12 = vsel %vm1395_vm6, %v8183_v30, %v3714_v51  ;;  %v3694_v51 = vsel %vm1343_vm5, %v7950_v32, %v8025_v14 }
 0x45f   : > { %v8329_v17 = vpop.permute.xlu1 %4241  ;;  %v8331_v49 = vpop.permute.xlu0 %3814 }
 0x460   : > { %9655 = vst [vmem:[#allocation41_spill] sm:$0xff] %v8331_v49  ;;  %v3121_v49 = vmul.bf16 %v7759_v29, %v9656_v11  ;;  %v4007_v11 = vsel %vm1289_vm3, %v3694_v51, %v3718_v12  ;;  %v4210_v12 = vsel %vm994_vm1, %v8080_v56, %v8157_v40  ;;  %v9660_v51 = vld [vmem:[#allocation106_spill] sm:$0xff]  ;;  %v9662_v40 = vld [vmem:[#allocation13_spill] sm:$0xff] }
 0x461   : > { %3963 = vrot.lane.b32.xlu0 %v3958_v46, %s9627_s23  ;;  %v3962_v46 = vrot.slane %v3437_v18, 4 }
 0x463   : > { %v8334_v4 = vpop.permute.xlu1 %4285  ;;  %v8336_v35 = vpop.permute.xlu0 %3662 }
 0x464   : > { %v4421_v13 = vsel %vm1289_vm3, %v8193_v16, %v8334_v4 }
 0x465   : > { %3947 = vrot.lane.b32.xlu0 %v3416_v34, %s9626_s15  ;;  %4524 = vrot.lane.b32.xlu1 %v4421_v13, %s9642_s18  ;;  %v3448_v34 = vsel %vm1154_vm12, %v9657_v7, %v9638_v37  ;;  %v4128_v13 = vsel %vm1291_vm4, %v8082_v38, %v8094_v58  ;;  %v4167_v58 = vsel %vm9659_vm0, %v8132_v52, %v9658_v33  ;;  %vm9667_vm0 = vcmask 515072  }
 0x467   : > { %v8349_v54 = vpop.permute.xlu1 %3666  ;;  %v8351_v20 = vpop.permute.xlu0 %3705 }
 0x468   : > { %v3674_v21 = vsel %vm1291_vm4, %v8349_v54, %v8155_v5  ;;  %v3457_v5 = vmul.bf16 %v3448_v34, %v7661_v24  ;;  %v4388_v24 = vsel %vm1289_vm3, %v7939_v41, %v4167_v58  ;;  %v4255_v41 = vsel %vm4251_vm13, %v8185_v63, %v9660_v51 }
 0x469   : > { %3971 = vrot.lane.b32.xlu0 %v3962_v46, %s9627_s23  ;;  %v3987_v18 = vsel %vm1289_vm3, %v3121_v49, %v3674_v21  ;;  %v4186_v21 = vsel %vm4183_vm14, %v7930_v22, %v7941_v10  ;;  %s269_s23 = sand.u32 1, %s5393_s25  }
 0x46a   : > { %4642 = vmatpush1.bf16.msra.mxu1 %v3987_v18  ;;  %v4370_v14 = vsel %vm1289_vm3, %v3457_v5, %v4128_v13  ;;  %v4400_v34 = vsel %vm1289_vm3, %v4186_v21, %v4210_v12  ;;  %v9661_v13 = vld [vmem:[#allocation101_spill] sm:$0xff]  ;;  %v4297_v12 = vsel %vm810_vm15, %v8130_v28, %v8207_v62  ;;  %s5031_s28 = scalar_lea.sflag [#allocation3], %s269_s23 }
 0x46b   : > { %v8371_v19 = vpop.permute.xlu1 %3707  ;;  %4643 = vmatprep.subr.bf16.mxu1 %v4007_v11  ;;  %v8373_v37 = vpop.permute.xlu0 %3748  ;;  %v3446_v18 = vsel %vm1154_vm12, %v9662_v40, %v9661_v13  ;;  %v9663_v11 = vld [vmem:[#allocation100_spill] sm:$0xff] }
 0x46c   : > { %v4230_v10 = vsel %vm9664_vm8, %v7966_v61, %v9663_v11  ;;  %v3455_v58 = vmul.bf16 %v3446_v18, %v7749_v44  ;;  %v3454_v18 = vmul.bf16 %v9662_v40, %v7718_v8  ;;  %v4142_v40 = vsel %vm1154_vm12, %v8110_v31, %v7928_v0 }
 0x46d   : > { %4490 = vrot.lane.b32.xlu0 %v4370_v14, %s9642_s18  ;;  %v4418_v63 = vsel %vm1289_vm3, %v4230_v10, %v4255_v41  ;;  %vm9670_vm8 = vcmask 64512  }
 0x46f   : > { %v8380_v46 = vpop.permute.xlu1 %3750  ;;  %v8382_v49 = vpop.permute.xlu0 %3791 }
 0x471   : > { %4502 = vrot.lane.b32.xlu0 %v4388_v24, %s9642_s18 }
 0x473   : > { %v8393_v52 = vpop.permute.xlu1 %3793  ;;  %v8395_v33 = vpop.permute.xlu0 %3834 }
 0x475   : > { %4510 = vrot.lane.b32.xlu0 %v4400_v34, %s9642_s18  ;;  %v4273_v34 = vsel %vm9665_vm10, %v7978_v6, %v7990_v59  ;;  %vm9671_vm10 = vcmask 588800  }
 0x476   : > { %v4430_v62 = vsel %vm1289_vm3, %v4273_v34, %v4297_v12  ;;  %v9668_v12 = vld [vmem:[#allocation17_spill] sm:$0xff]  ;;  %v4184_v34 = vsel %vm4183_vm14, %v8147_v55, %v8062_v42  ;;  %v4228_v55 = vsel %vm9671_vm10, %v8092_v57, %v7952_v39 }
 0x477   : > { %v8408_v5 = vpop.permute.xlu1 %3836  ;;  %v4118_v14 = vpop.permute.xlu0 %4117 }
 0x478   : > { %v4126_v24 = vsel %vm1291_vm4, %v4118_v14, %v8293_v26  ;;  %v4125_v61 = vsel %vm1291_vm4, %v8276_v23, %v4118_v14  ;;  %v4165_v23 = vsel %vm9666_vm11, %v8306_v15, %v8122_v53  ;;  %v4314_v53 = vsel %vm9667_vm0, %v8219_v47, %v8145_v9  ;;  %vm9672_vm11 = vmmov %vm9667_vm0 }
 0x479   : > { %4522 = vrot.lane.b32.xlu0 %v4418_v63, %s9642_s18  ;;  %v4364_v21 = vsel %vm1289_vm3, %v3455_v58, %v4126_v24  ;;  %v4361_v11 = vsel %vm1289_vm3, %v3454_v18, %v4125_v61  ;;  %v4382_v58 = vsel %vm1289_vm3, %v4142_v40, %v4165_v23  ;;  %v4406_v18 = vsel %vm1289_vm3, %v8175_v43, %v8329_v17  ;;  %vm9674_vm0 = vmmov %vm9670_vm8 }
 0x47a   : > { %4486 = vrot.lane.b32.xlu1 %v4364_v21, %s9642_s18  ;;  %v9669_v21 = vld [vmem:[#allocation12_spill] sm:$0xff]  ;;  %vm9677_vm10 = vmmov %vm9672_vm11 }
 0x47b   : > { %v8425_v51 = vpop.permute.xlu1 %3855  ;;  %v4155_v41 = vpop.permute.xlu0 %4154  ;;  %v4355_v61 = vsel %vm9670_vm8, %v9669_v21, %v9668_v12  ;;  %vm9676_vm8 = vmmov %vm9674_vm0 }
 0x47c   : > { %v4376_v14 = vsel %vm1289_vm3, %v8052_v45, %v4155_v41 }
 0x47d   : > { %4530 = vrot.lane.b32.xlu0 %v4430_v62, %s9642_s18  ;;  %v4439_v62 = vsel %vm1289_vm3, %v4314_v53, %v4355_v61  ;;  %v4127_v53 = vsel %vm1291_vm4, %v8293_v26, %v8082_v38  ;;  %v9673_v61 = vld [vmem:[#allocation14_spill] sm:$0xff]  ;;  %v4316_v26 = vsel %vm9677_vm10, %v8002_v1, %v8017_v27 }
 0x47e   : > { %4484 = vrot.lane.b32.xlu1 %v4361_v11, %s9642_s18  ;;  %v4356_v39 = vsel %vm9674_vm0, %v9668_v12, %v9673_v61  ;;  %v9678_v12 = vld [vmem:[#allocation123_spill] sm:$0xff]  ;;  %vm9681_vm0 = vcmask 654336  }
 0x47f   : > { %v8436_v10 = vpop.permute.xlu1 %3879  ;;  %v8438_v59 = vpop.permute.xlu0 %4200 }
 0x480   : > { %v4208_v24 = vsel %vm994_vm1, %v8318_v36, %v8438_v59 }
 0x481   : > { %4494 = vrot.lane.b32.xlu0 %v4376_v14, %s9642_s18  ;;  %v4394_v36 = vsel %vm1289_vm3, %v4184_v34, %v4208_v24  ;;  %v4315_v14 = vsel %vm9672_vm11, %v8145_v9, %v8002_v1  ;;  %v9675_v34 = vld [vmem:[#allocation16_spill] sm:$0xff]  ;;  %vm9680_vm11 = vcmask 531456  }
 0x482   : > { %4498 = vrot.lane.b32.xlu1 %v4382_v58, %s9642_s18  ;;  %v4450_v58 = vsel %vm1238_vm2, %v4439_v62, 0  ;;  %v4357_v9 = vsel %vm9676_vm8, %v9673_v61, %v9675_v34  ;;  %v9679_v62 = vld [vmem:[#allocation122_spill] sm:$0xff]  ;;  %vm9684_vm8 = vcmask 973824   ;;  %v3693_v61 = vsel %vm1343_vm5, %v8252_v3, %v7950_v32 }
 0x483   : > { %v8454_v63 = vpop.permute.xlu1 %3853  ;;  %v8456_v0 = vpop.permute.xlu0 %4243 }
 0x484   : > { %v4253_v11 = vsel %vm4251_vm13, %v8456_v0, %v8108_v48  ;;  %v3447_v48 = vsel %vm1154_vm12, %v9661_v13, %v9657_v7 }
 0x485   : > { %4514 = vrot.lane.b32.xlu0 %v4406_v18, %s9642_s18  ;;  %v4412_v24 = vsel %vm1289_vm3, %v4228_v55, %v4253_v11  ;;  %v3456_v38 = vmul.bf16 %v3447_v48, %v7759_v29  ;;  %v3119_v11 = vmul.bf16 %v7718_v8, %v9679_v62  ;;  %v4442_v55 = vsel %vm1289_vm3, %v4315_v14, %v4356_v39  ;;  %v9690_v62 = vld [vmem:[#allocation31_spill] sm:$0xff] }
 0x486   : > { %4506 = vrot.lane.b32.xlu1 %v4394_v36, %s9642_s18  ;;  %v3120_v36 = vmul.bf16 %v7749_v44, %v9678_v12  ;;  %v4164_v44 = vsel %vm9681_vm0, %v4155_v41, %v8306_v15  ;;  %v4445_v15 = vsel %vm1289_vm3, %v4316_v26, %v4357_v9  ;;  %v9685_v41 = vld [vmem:[#allocation30_spill] sm:$0xff]  ;;  %v3715_v39 = vsel %vm1395_vm6, %v8351_v20, %v8371_v19  ;;  %v9686_v9 = vld [vmem:[#allocation33_spill] sm:$0xff]  ;;  %v9688_v20 = vld [vmem:[#allocation23_spill] sm:$0xff] }
 0x487   : > { %v8474_v23 = vpop.permute.xlu1 %3859  ;;  %v8476_v40 = vpop.permute.xlu0 %4287  ;;  %v4209_v12 = vsel %vm994_vm1, %v8438_v59, %v8080_v56  ;;  %vm9695_vm1 = vcmask 908288   ;;  %vm9702_vm0 = vcmask 588800  }
 0x488   : > { %v4295_v7 = vsel %vm810_vm15, %v8334_v4, %v8476_v40  ;;  %v4271_v4 = vsel %vm9680_vm11, %v8193_v16, %v8120_v25  ;;  %v9682_v16 = vld [vmem:[#allocation24_spill] sm:$0xff] }
 0x489   : > { %4536 = vrot.lane.b32.xlu0 %v4450_v58, %s9642_s18  ;;  %v4367_v58 = vsel %vm1289_vm3, %v3456_v38, %v4127_v53  ;;  %v4424_v8 = vsel %vm1289_vm3, %v4271_v4, %v4295_v7  ;;  %v3692_v53 = vsel %vm1343_vm5, %v9685_v41, %v8252_v3 }
 0x48a   : > { %4518 = vrot.lane.b32.xlu1 %v4412_v24, %s9642_s18  ;;  %v9683_v24 = vld [vmem:[#allocation20_spill] sm:$0xff] }
 0x48b   : > { %v8507_v13 = vpop.permute.xlu1 %3883  ;;  %v3665_v18 = vpop.permute.xlu0 %3664 }
 0x48c   : > { %v3672_v29 = vsel %vm1291_vm4, %v8336_v35, %v3665_v18  ;;  %v3673_v1 = vsel %vm1291_vm4, %v3665_v18, %v8349_v54  ;;  %v3737_v35 = vsel %vm9684_vm8, %v9683_v24, %v9682_v16  ;;  %v4141_v54 = vsel %vm1154_vm12, %v8052_v45, %v8110_v31 }
 0x48d   : > { %4488 = vrot.lane.b32.xlu0 %v4367_v58, %s9642_s18  ;;  %v3983_v14 = vsel %vm1289_vm3, %v3120_v36, %v3673_v1  ;;  %v3979_v48 = vsel %vm1289_vm3, %v3119_v11, %v3672_v29  ;;  %v4451_v31 = vsel %vm1238_vm2, %v4442_v55, 0  ;;  %vm9687_vm4 = vcmask 965632   ;;  %v9694_v1 = vld [vmem:[#allocation35_spill] sm:$0xff] }
 0x48e   : > { %4526 = vrot.lane.b32.xlu1 %v4424_v8, %s9642_s18  ;;  %4600 = vmatprep.subr.bf16.mxu0 %v3983_v14  ;;  %v3761_v38 = vsel %vm9687_vm4, %v9686_v9, %v8295_v2  ;;  %v4379_v3 = vsel %vm1289_vm3, %v4141_v54, %v4164_v44  ;;  %v3691_v18 = vsel %vm1343_vm5, %v9688_v20, %v9685_v41  ;;  %vm9693_vm12 = vmmov %vm9687_vm4  ;;  %v4452_v29 = vsel %vm1238_vm2, %v4445_v15, 0  ;;  %v9698_v14 = vld [vmem:[#allocation25_spill] sm:$0xff] }
 0x48f   : > { %v8545_v7 = vpop.permute.xlu1 %3898  ;;  %4601 = vmatpush1.bf16.msra.mxu0 %v3979_v48  ;;  %v3710_v45 = vpop.permute.xlu0 %3709  ;;  %v3995_v55 = vsel %vm1289_vm3, %v3691_v18, %v3715_v39  ;;  %v3758_v59 = vsel %vm9693_vm12, %v8373_v37, %v8380_v46  ;;  %v3804_v58 = vsel %vm9695_vm1, %v9694_v1, %v8320_v50  ;;  %vm9697_vm10 = vmmov %vm9687_vm4  ;;  %v4252_v16 = vsel %vm4251_vm13, %v8329_v17, %v8456_v0 }
 0x490   : > { %v3716_v26 = vsel %vm1395_vm6, %v8371_v19, %v3710_v45  ;;  %v3717_v32 = vsel %vm1395_vm6, %v3710_v45, %v8183_v30  ;;  %v4185_v30 = vsel %vm4183_vm14, %v8062_v42, %v7930_v22  ;;  %v9689_v19 = vld [vmem:[#allocation38_spill] sm:$0xff]  ;;  %vm9691_vm6 = vmmov %vm9684_vm8  ;;  %v4023_v22 = vsel %vm1289_vm3, %v3737_v35, %v3761_v38  ;;  %v9701_v35 = vld [vmem:[#allocation21_spill] sm:$0xff] }
 0x491   : > { %4496 = vrot.lane.b32.xlu0 %v4379_v3, %s9642_s18  ;;  %v3999_v2 = vsel %vm1289_vm3, %v3692_v53, %v3716_v26  ;;  %v4003_v36 = vsel %vm1289_vm3, %v3693_v61, %v3717_v32  ;;  %v3735_v11 = vsel %vm9691_vm6, %v9690_v62, %v9689_v19  ;;  %vm9692_vm5 = vmmov %vm9691_vm6  ;;  %v4397_v8 = vsel %vm1289_vm3, %v4185_v30, %v4209_v12  ;;  %v4750_v61 = vld [vmem:[%s8924_s5] sm:$0xff]  ;;  %v9711_v12 = vld [vmem:[#allocation32_spill] sm:$0xff] }
 0x492   : > { %4538 = vrot.lane.b32.xlu1 %v4451_v31, %s9642_s18  ;;  %4602 = vmatprep.subr.bf16.mxu0 %v3999_v2  ;;  %v3736_v56 = vsel %vm9692_vm5, %v9689_v19, %v9683_v24  ;;  %vm9696_vm14 = vmmov %vm9687_vm4  ;;  %v4227_v41 = vsel %vm9702_vm0, %v8175_v43, %v8092_v57  ;;  %v3779_v39 = vsel %vm1573_vm9, %v8308_v60, %v9701_v35  ;;  %v9706_v31 = vld [vmem:[#allocation34_spill] sm:$0xff]  ;;  %v9708_v60 = vld [vmem:[#allocation39_spill] sm:$0xff]  ;;  %vm9709_vm6 = vcmask 531456  }
 0x493   : > { %4644 = vmatpush1.bf16.msra.mxu1 %v4003_v36  ;;  %v8579_v4 = vpop.permute.xlu1 %3922  ;;  %4603 = vmatpush1.bf16.msra.mxu0 %v3995_v55  ;;  %v3753_v42 = vpop.permute.xlu0 %3752  ;;  %vm9699_vm11 = vmmov %vm9692_vm5  ;;  %v4296_v26 = vsel %vm810_vm15, %v8476_v40, %v8130_v28  ;;  %v4272_v20 = vsel %vm9709_vm6, %v8120_v25, %v7978_v6  ;;  %v3844_v18 = vsel %vm810_vm15, %v8395_v33, %v8408_v5  ;;  %v9710_v40 = vld [vmem:[#allocation41_spill] sm:$0xff]  ;;  %v9713_v25 = vld [vmem:[#allocation27_spill] sm:$0xff]  ;;  %vm9716_vm12 = vcmask 515072  }
 0x494   : > { %4645 = vmatprep.subr.bf16.mxu1 %v4023_v22  ;;  %v3759_v44 = vsel %vm9696_vm14, %v8380_v46, %v3753_v42  ;;  %v3760_v37 = vsel %vm9697_vm10, %v3753_v42, %v9686_v9  ;;  %v3734_v48 = vsel %vm9699_vm11, %v9698_v14, %v9690_v62  ;;  %v9700_v46 = vld [vmem:[#allocation28_spill] sm:$0xff]  ;;  %vm9703_vm13 = vmmov %vm9695_vm1  ;;  %v9707_v9 = vld [vmem:[#allocation26_spill] sm:$0xff]  ;;  %v4427_v30 = vsel %vm1289_vm3, %v4272_v20, %v4296_v26 }
 0x495   : > { %4508 = vrot.lane.b32.xlu0 %v4397_v8, %s9642_s18  ;;  %v4015_v50 = vsel %vm1289_vm3, %v3735_v11, %v3759_v44  ;;  %v4019_v24 = vsel %vm1289_vm3, %v3736_v56, %v3760_v37  ;;  %v3780_v54 = vsel %vm1573_vm9, %v9701_v35, %v9700_v46  ;;  %v4011_v15 = vsel %vm1289_vm3, %v3734_v48, %v3758_v59  ;;  %vm9704_vm8 = vmmov %vm9695_vm1  ;;  %v9715_v62 = vld [vmem:[#allocation18_spill] sm:$0xff]  ;;  %v9717_v56 = vld [vmem:[#allocation19_spill] sm:$0xff] }
 0x496   : > { %4540 = vrot.lane.b32.xlu1 %v4452_v29, %s9642_s18  ;;  %4604 = vmatprep.subr.bf16.mxu0 %v4015_v50  ;;  %v3801_v17 = vsel %vm9703_vm13, %v8382_v49, %v8393_v52  ;;  %v4039_v0 = vsel %vm1289_vm3, %v3780_v54, %v3804_v58  ;;  %vm9705_vm4 = vmmov %vm9695_vm1  ;;  %v4409_v49 = vsel %vm1289_vm3, %v4227_v41, %v4252_v16  ;;  %vm9718_vm1 = vcmask 64512   ;;  %v8670_v42 = vld [vmem:[%s8923_s4] sm:$0xff]  ;;  %v9721_v29 = vld [vmem:[#allocation22_spill] sm:$0xff] }
 0x497   : > { %4646 = vmatpush1.bf16.msra.mxu1 %v4019_v24  ;;  %4605 = vmatpush1.bf16.msra.mxu0 %v4011_v15  ;;  %v3796_v53 = vpop.permute.xlu0 %3795  ;;  %v8618_v45 = vpop.permute.xlu1 %3896  ;;  %v3777_v38 = vsel %vm1573_vm9, %v9707_v9, %v9706_v31  ;;  %vm9712_vm9 = vcmask 900096   ;;  %v4436_v6 = vsel %vm1289_vm3, %v8219_v47, %v9669_v21  ;;  %v4317_v11 = vsel %vm9716_vm12, %v8017_v27, %v9715_v62  ;;  %v9719_v21 = vld [vmem:[#allocation36_spill] sm:$0xff]  ;;  %v9720_v27 = vld [vmem:[#allocation29_spill] sm:$0xff]  ;;  %vm9724_vm11 = vmmov %vm9716_vm12 }
 0x498   : > { %4647 = vmatprep.subr.bf16.mxu1 %v4039_v0  ;;  %v3802_v57 = vsel %vm9704_vm8, %v8393_v52, %v3796_v53  ;;  %v3803_v43 = vsel %vm9705_vm4, %v3796_v53, %v9694_v1  ;;  %v4027_v3 = vsel %vm1289_vm3, %v3777_v38, %v3801_v17  ;;  %v3821_v2 = vsel %vm9712_vm9, %v9711_v12, %v9710_v40  ;;  %vm9714_vm5 = vmmov %vm9712_vm9 }
 0x499   : > { %4516 = vrot.lane.b32.xlu0 %v4409_v49, %s9642_s18  ;;  %v4031_v32 = vsel %vm1289_vm3, %v9708_v60, %v3802_v57  ;;  %v4035_v52 = vsel %vm1289_vm3, %v3779_v39, %v3803_v43  ;;  %v3820_v33 = vsel %vm9714_vm5, %v9713_v25, %v9711_v12  ;;  %v4358_v47 = vsel %vm9718_vm1, %v9675_v34, %v9717_v56  ;;  %vm9722_vm14 = vmmov %vm9714_vm5 }
 0x49a   : > { %4753 = vperm.xlu1 %5283, %v4750_v61   ;;  %4606 = vmatprep.subr.bf16.mxu0 %v4031_v32  ;;  %v3823_v1 = vsel %vm9722_vm14, %v9721_v29, %v9720_v27  ;;  %v4449_v44 = vsel %vm1238_vm2, %v4436_v6, 0  ;;  %v5126_v34 = vcombine.high %v8670_v42, %v8670_v42  ;;  %vm9723_vm10 = vmmov %vm9714_vm5  ;;  %v4448_v14 = vsel %vm1289_vm3, %v4317_v11, %v4358_v47 }
 0x49b   : > { %4648 = vmatpush1.bf16.msra.mxu1 %v4035_v52  ;;  %4607 = vmatpush1.bf16.msra.mxu0 %v4027_v3  ;;  %v3839_v28 = vpop.permute.xlu0 %3838  ;;  %v8659_v55 = vpop.permute.xlu1 %3902  ;;  %v3822_v37 = vsel %vm9723_vm10, %v9710_v40, %v9721_v29  ;;  %v4453_v24 = vsel %vm1238_vm2, %v4448_v14, 0  ;;  %vm9725_vm0 = vcmask 506880   ;;  %vm9726_vm13 = vmmov %vm9724_vm11  ;;  %vm9732_vm5 = vcmask 449536  }
 0x49c   : > { %v3845_v36 = vsel %vm810_vm15, %v8408_v5, %v3839_v28  ;;  %v4043_v5 = vsel %vm1289_vm3, %v3820_v33, %v3844_v18  ;;  %v3846_v59 = vsel %vm810_vm15, %v3839_v28, %v9719_v21  ;;  %4632 = vmatprep.mubr.bf16.mxu0 %v5126_v34  ;;  %4673 = vmatprep.mubr.bf16.mxu1 %v5126_v34  ;;  %vm9727_vm2 = vmmov %vm9725_vm0  ;;  %vm9736_vm10 = vcmask 441344  }
 0x49d   : > { %4528 = vrot.lane.b32.xlu0 %v4427_v30, %s9642_s18  ;;  %v4047_v19 = vsel %vm1289_vm3, %v3821_v2, %v3845_v36  ;;  %v4051_v48 = vsel %vm1289_vm3, %v3822_v37, %v3846_v59  ;;  %v3863_v0 = vsel %vm9726_vm13, %v8454_v63, %v8425_v51  ;;  %vm9728_vm8 = vmmov %vm9725_vm0  ;;  %v3906_v20 = vsel %vm2223_vm7, %v8618_v45, %v8545_v7 }
 0x49e   : > { %4608 = vmatprep.subr.bf16.mxu0 %v4047_v19  ;;  %vm9729_vm4 = vmmov %vm9724_vm11 }
 0x49f   : > { %4609 = vmatpush1.bf16.msra.mxu0 %v4043_v5  ;;  %v3843_v22 = vpop.permute.xlu0 %3842  ;;  %v3927_v50 = vpop.permute.xlu1 %3926  ;;  %vm9730_vm6 = vmmov %vm9725_vm0 }
 0x4a0   : > { %v3847_v58 = vsel %vm810_vm15, %v9719_v21, %v3843_v22  ;;  %vm9731_vm9 = vmmov %vm9729_vm4 }
 0x4a1   : > { %4534 = vrot.lane.b32.xlu0 %v4449_v44, %s9642_s18  ;;  %v4055_v8 = vsel %vm1289_vm3, %v3823_v1, %v3847_v58  ;;  %vm9733_vm12 = vmmov %vm9732_vm5 }
 0x4a2   : > { %4649 = vmatprep.subr.bf16.mxu1 %v4055_v8  ;;  %vm9734_vm1 = vmmov %vm9732_vm5 }
 0x4a3   : > { %4650 = vmatpush1.bf16.msra.mxu1 %v4051_v48  ;;  %v3858_v16 = vpop.permute.xlu0 %3857  ;;  %v3942_v41 = vpop.permute.xlu1 %3941  ;;  %vm9735_vm14 = vmmov %vm9734_vm1 }
 0x4a4   : > { %v3864_v35 = vsel %vm9724_vm11, %v8425_v51, %v3858_v16  ;;  %v3865_v51 = vsel %vm9731_vm9, %v3858_v16, %v8474_v23  ;;  %vm9737_vm11 = vcmask 392192  }
 0x4a5   : > { %4542 = vrot.lane.b32.xlu0 %v4453_v24, %s9642_s18  ;;  %s5107_s18 = sshll.u32 %s269_s23, 3 }
 0x4a6   : > { %s271_s9 = scalar_lea.vmem [#allocation2], %s5107_s18 }
 0x4a7   : > { %v3882_v46 = vpop.permute.xlu0 %3881  ;;  %v3966_v57 = vpop.permute.xlu1 %3965  ;;  %s5044_s8 = sshll.u32 %s271_s9, 4  ;;  %s8878_s8 = int_to_ptr.vmem [resolvable:$true] %s5044_s8 }
 0x4a8   : > { %v3888_v54 = vsel %vm9725_vm0, %v8436_v10, %v3882_v46  ;;  %v3889_v43 = vsel %vm9728_vm8, %v3882_v46, %v8507_v13  ;;  %vm9738_vm0 = vmmov %vm9736_vm10  ;;  %s5339_s29 = scalar_lea.vmem %s8878_s8, 128  ;;  %p5346_p0 = scmp.lt.s32.totalorder %s8878_s8, %s5344_s13 }
 0x4a9   : > { %v4063_v15 = vsel %vm1289_vm3, %v3864_v35, %v3888_v54  ;;  %v4067_v38 = vsel %vm1289_vm3, %v3865_v51, %v3889_v43  ;;  %p5340_p11 = scmp.ne.s32.totalorder %s8878_s8, %s5339_s29  ;;  %p5347_p1 = scmp.lt.s32.totalorder %s5345_s16, %s5339_s29 }
 0x4aa   : > { %4610 = vmatprep.subr.bf16.mxu0 %v4063_v15 }
 0x4ab   : > { %v3878_v17 = vpop.permute.xlu0 %3877  ;;  %v3940_v63 = vpop.permute.xlu1 %3939  ;;  %p5341_p12 = pnand %p5340_p11, %p5518_p5  ;;  %p5348_p2 = por %p5347_p1, %p5346_p0 }
 0x4ac   : > { %v3887_v53 = vsel %vm9727_vm2, %v3878_v17, %v8436_v10  ;;  %v3949_v21 = vsel %vm9738_vm0, %v3940_v63, %v3942_v41  ;;  %vm9741_vm2 = vmmov %vm9738_vm0 }
 0x4ad   : > { %v4059_v61 = vsel %vm1289_vm3, %v3863_v0, %v3887_v53  ;;  %p5342_p13 = pneg %p5341_p12 }
 0x4ae   : > { %4611 = vmatpush1.bf16.msra.mxu0 %v4059_v61 }
 0x4af   : > { %v3862_v39 = vpop.permute.xlu0 %3861  ;;  %v3946_v32 = vpop.permute.xlu1 %3945  ;;  %p5349_p3 = pnand %p5348_p2, %p5342_p13 }
 0x4b0   : > { %v3866_v31 = vsel %vm9729_vm4, %v8474_v23, %v3862_v39  ;;  %vm9743_vm4 = vmmov %vm9738_vm0 }
 0x4b3   : > { %v3886_v49 = vpop.permute.xlu0 %3885  ;;  %v3970_v40 = vpop.permute.xlu1 %3969 }
 0x4b4   : > { %v3890_v9 = vsel %vm9730_vm6, %v8507_v13, %v3886_v49  ;;  %vm9744_vm6 = vcmask 384000  }
 0x4b5   : > { %v4071_v10 = vsel %vm1289_vm3, %v3866_v31, %v3890_v9 }
 0x4b6   : > { %4651 = vmatprep.subr.bf16.mxu1 %v4071_v10 }
 0x4b7   : > { %4652 = vmatpush1.bf16.msra.mxu1 %v4067_v38  ;;  %v3901_v26 = vpop.permute.xlu0 %3900  ;;  %v4493_v30 = vpop.permute.xlu1 %4492 }
 0x4b8   : > { %v3907_v52 = vsel %vm2223_vm7, %v8545_v7, %v3901_v26  ;;  %v3908_v7 = vsel %vm2223_vm7, %v3901_v26, %v8659_v55 }
 0x4bb   : > { %v3925_v60 = vpop.permute.xlu0 %3924  ;;  %v4501_v19 = vpop.permute.xlu1 %4500 }
 0x4bc   : > { %v3931_v3 = vsel %vm9732_vm5, %v8579_v4, %v3925_v60  ;;  %v3932_v2 = vsel %vm9734_vm1, %v3925_v60, %v3927_v50 }
 0x4bd   : > { %v4079_v13 = vsel %vm1289_vm3, %v3907_v52, %v3931_v3 }
 0x4be   : > { %4612 = vmatprep.subr.bf16.mxu0 %v4079_v13 }
 0x4bf   : > { %v3921_v23 = vpop.permute.xlu0 %3920 }
 0x4c0   : > { %v3930_v18 = vsel %vm9733_vm12, %v3921_v23, %v8579_v4  ;;  %v4083_v4 = vsel %vm1289_vm3, %v3908_v7, %v3932_v2 }
 0x4c1   : > { %v4075_v28 = vsel %vm1289_vm3, %v3906_v20, %v3930_v18 }
 0x4c2   : > { %4613 = vmatpush1.bf16.msra.mxu0 %v4075_v28 }
 0x4c3   : > { %v3905_v12 = vpop.permute.xlu0 %3904 }
 0x4c4   : > { %v3909_v6 = vsel %vm2223_vm7, %v8659_v55, %v3905_v12  ;;  %v4513_v55 = vpop.permute.xlu1 %4512  ;;  %vm9739_vm7 = vmmov %vm9737_vm11 }
 0x4c5   : > { %vm9740_vm13 = vmmov %vm9739_vm7 }
 0x4c6   : > { %vm9742_vm8 = vmmov %vm9739_vm7 }
 0x4c7   : > { %v3929_v36 = vpop.permute.xlu0 %3928 }
 0x4c8   : > { %v3933_v25 = vsel %vm9735_vm14, %v3927_v50, %v3929_v36  ;;  %v4521_v29 = vpop.permute.xlu1 %4520 }
 0x4c9   : > { %v4087_v45 = vsel %vm1289_vm3, %v3909_v6, %v3933_v25 }
 0x4ca   : > { %4653 = vmatprep.subr.bf16.mxu1 %v4087_v45 }
 0x4cb   : > { %4654 = vmatpush1.bf16.msra.mxu1 %v4083_v4  ;;  %v3944_v33 = vpop.permute.xlu0 %3943 }
 0x4cc   : > { %v3950_v11 = vsel %vm9736_vm10, %v3942_v41, %v3944_v33  ;;  %v3951_v37 = vsel %vm9743_vm4, %v3944_v33, %v3946_v32  ;;  %v4533_v16 = vpop.permute.xlu1 %4532 }
 0x4cf   : > { %v3968_v62 = vpop.permute.xlu0 %3967 }
 0x4d0   : > { %v3974_v5 = vsel %vm9737_vm11, %v3966_v57, %v3968_v62  ;;  %v3975_v1 = vsel %vm9740_vm13, %v3968_v62, %v3970_v40  ;;  %v4505_v46 = vpop.permute.xlu1 %4504 }
 0x4d1   : > { %v4095_v56 = vsel %vm1289_vm3, %v3950_v11, %v3974_v5  ;;  %v4099_v14 = vsel %vm1289_vm3, %v3951_v37, %v3975_v1  ;;  %v9766_v5 = vld [vmem:[#allocation112_spill] sm:$0xff]  ;;  %v5309_v1 = vld [vmem:[%s8925_s6 + $0x80] sm:$0xff]  }
 0x4d2   : > { %4614 = vmatprep.subr.bf16.mxu0 %v4095_v56  ;;  %v5313_v37 = vld [vmem:[%s8925_s6 + $0x88] sm:$0xff]  }
 0x4d3   : > { %v3964_v47 = vpop.permute.xlu0 %3963 }
 0x4d4   : > { %v3973_v59 = vsel %vm9739_vm7, %v3964_v47, %v3966_v57 }
 0x4d5   : > { %v4091_v22 = vsel %vm1289_vm3, %v3949_v21, %v3973_v59  ;;  %v5125_v59 = vcombine.low %v8670_v42, %v8670_v42  ;;  %v5308_v42 = vld [vmem:[%s8925_s6 + $0x8] sm:$0xff]  }
 0x4d6   : > { %4615 = vmatpush1.bf16.msra.mxu0 %v4091_v22  ;;  %v5305_v22 = vld [vmem:[%s8925_s6] sm:$0xff]  }
 0x4d7   : > { %v3948_v27 = vpop.permute.xlu0 %3947  ;;  %v4525_v54 = vpop.permute.xlu1 %4524 }
 0x4d8   : > { %v3952_v44 = vsel %vm9741_vm2, %v3946_v32, %v3948_v27  ;;  %v5306_v27 = vld [vmem:[%s8925_s6 + $0x48] sm:$0xff]  }
 0x4db   : > { %v3972_v58 = vpop.permute.xlu0 %3971 }
 0x4dc   : > { %v3976_v34 = vsel %vm9742_vm8, %v3970_v40, %v3972_v58  ;;  %v5310_v58 = vld [vmem:[%s8925_s6 + $0x50] sm:$0xff]  }
 0x4dd   : > { %v4103_v8 = vsel %vm1289_vm3, %v3952_v44, %v3976_v34  ;;  %vm9745_vm3 = vmmov %vm9744_vm6  ;;  %v5311_v44 = vld [vmem:[%s8925_s6 + $0xc8] sm:$0xff]   ;;  %v5312_v34 = vld [vmem:[%s8925_s6 + $0x10] sm:$0xff]  }
 0x4de   : > { %4655 = vmatprep.subr.bf16.mxu1 %v4103_v8  ;;  %vm9746_vm9 = vmmov %vm9745_vm3  ;;  %v5314_v8 = vld [vmem:[%s8925_s6 + $0x58] sm:$0xff]  }
 0x4df   : > { %4656 = vmatpush1.bf16.msra.mxu1 %v4099_v14  ;;  %v4491_v48 = vpop.permute.xlu0 %4490  ;;  %vm9747_vm5 = vmmov %vm9745_vm3  ;;  %v5315_v14 = vld [vmem:[%s8925_s6 + $0xd0] sm:$0xff]  }
 0x4e0   : > { %v4547_v50 = vsel %vm9744_vm6, %v4491_v48, %v4493_v30  ;;  %vm9748_vm12 = vmmov %vm9745_vm3 }
 0x4e1   : > { %4657 = vmatprep.subr.bf16.mxu1 %v4547_v50  ;;  %vm9749_vm1 = vmmov %vm9745_vm3  ;;  %v5318_v50 = vld [vmem:[%s8925_s6 + $0x60] sm:$0xff]  }
 0x4e2   : > { %vm9750_vm14 = vmmov %vm9749_vm1 }
 0x4e3   : > { %v4503_v24 = vpop.permute.xlu0 %4502  ;;  %vm9751_vm10 = vmmov %vm9749_vm1 }
 0x4e4   : > { %v4551_v10 = vsel %vm9748_vm12, %v4501_v19, %v4503_v24  ;;  %vm9752_vm11 = vmmov %vm9749_vm1  ;;  %v5319_v24 = vld [vmem:[%s8925_s6 + $0xd8] sm:$0xff]  }
 0x4e5   : > { %vm9753_vm0 = vmmov %vm9749_vm1 }
 0x4e6   : > { %vm9754_vm7 = vmmov %vm9753_vm0 }
 0x4e7   : > { %v4511_v35 = vpop.permute.xlu0 %4510  ;;  %vm9755_vm13 = vmmov %vm9753_vm0 }
 0x4e8   : > { %v4555_v52 = vsel %vm9752_vm11, %v4511_v35, %v4513_v55  ;;  %vm9756_vm2 = vmmov %vm9753_vm0  ;;  %v5304_v55 = vld [vmem:[%s8925_s6 + $0x40] sm:$0xff]  }
 0x4e9   : > { %vm9757_vm8 = vmmov %vm9753_vm0 }
 0x4ea   : > { %vm9758_vm4 = vmmov %vm9753_vm0 }
 0x4eb   : > { %v4523_v15 = vpop.permute.xlu0 %4522  ;;  %vm9759_vm6 = vmmov %vm9753_vm0 }
 0x4ec   : > { %v4487_v41 = vpop.permute.xlu1 %4486  ;;  %v4559_v28 = vsel %vm9756_vm2, %v4521_v29, %v4523_v15  ;;  %vm9763_vm12 = vmmov %vm9753_vm0  ;;  %v5323_v15 = vld [vmem:[%s8925_s6 + $0xe0] sm:$0xff]  }
 0x4ed   : > { %vm9768_vm11 = vmmov %vm9753_vm0 }
 0x4ef   : > { %v4531_v17 = vpop.permute.xlu0 %4530 }
 0x4f0   : > { %v4485_v0 = vpop.permute.xlu1 %4484 }
 0x4f1   : > { %v4544_v51 = vsel %vm9747_vm5, %v4485_v0, %v4487_v41  ;;  %vm9762_vm5 = vmmov %vm9753_vm0  ;;  %v5326_v0 = vld [vmem:[%s8925_s6 + $0x70] sm:$0xff]  }
 0x4f3   : > { %v4495_v53 = vpop.permute.xlu0 %4494 }
 0x4f4   : > { %v4499_v61 = vpop.permute.xlu1 %4498 }
 0x4f5   : > { %v4550_v26 = vsel %vm9749_vm1, %v4499_v61, %v4501_v19  ;;  %vm9764_vm1 = vmmov %vm9753_vm0 }
 0x4f7   : > { %v4515_v39 = vpop.permute.xlu0 %4514 }
 0x4f8   : > { %v4507_v43 = vpop.permute.xlu1 %4506 }
 0x4f9   : > { %v4552_v20 = vsel %vm9755_vm13, %v4505_v46, %v4507_v43  ;;  %v5320_v46 = vld [vmem:[%s8925_s6 + $0x20] sm:$0xff]  }
 0x4fb   : > { %v4537_v57 = vpop.permute.xlu0 %4536 }
 0x4fc   : > { %v4519_v63 = vpop.permute.xlu1 %4518 }
 0x4fd   : > { %v4558_v12 = vsel %vm9757_vm8, %v4519_v63, %v4521_v29  ;;  %v5307_v29 = vld [vmem:[%s8925_s6 + $0xc0] sm:$0xff]  }
 0x4ff   : > { %v4489_v49 = vpop.permute.xlu0 %4488 }
 0x500   : > { %v4546_v31 = vsel %vm9745_vm3, %v4489_v49, %v4491_v48  ;;  %v4545_v9 = vsel %vm9746_vm9, %v4487_v41, %v4489_v49  ;;  %v4527_v18 = vpop.permute.xlu1 %4526  ;;  %vm9760_vm3 = vmmov %vm9753_vm0  ;;  %v5316_v48 = vld [vmem:[%s8925_s6 + $0x18] sm:$0xff]   ;;  %v5324_v41 = vld [vmem:[%s8925_s6 + $0x28] sm:$0xff]  }
 0x501   : > { %4616 = vmatprep.subr.bf16.mxu0 %v4545_v9  ;;  %4658 = vmatpush1.bf16.msra.mxu1 %v4546_v31  ;;  %v4563_v30 = vsel %vm9760_vm3, %v4531_v17, %v4533_v16  ;;  %vm9761_vm9 = vmmov %vm9753_vm0  ;;  %v4560_v4 = vsel %vm9763_vm12, %v4525_v54, %v4527_v18  ;;  %v5317_v16 = vld [vmem:[%s8925_s6 + $0x90] sm:$0xff]   ;;  %v5322_v54 = vld [vmem:[%s8925_s6 + $0x68] sm:$0xff]  }
 0x502   : > { %4617 = vmatpush1.bf16.msra.mxu0 %v4544_v51  ;;  %4659 = vmatprep.subr.bf16.mxu1 %v4551_v10  ;;  %v5332_v49 = vld [vmem:[%s8925_s6 + $0x38] sm:$0xff]   ;;  %v5333_v31 = vld [vmem:[%s8925_s6 + $0xb0] sm:$0xff]  }
 0x503   : > { %v4497_v38 = vpop.permute.xlu0 %4496  ;;  %v5334_v9 = vld [vmem:[%s8925_s6 + $0xf8] sm:$0xff]  }
 0x504   : > { %v4548_v60 = vsel %vm9750_vm14, %v4495_v53, %v4497_v38  ;;  %v4549_v32 = vsel %vm9751_vm10, %v4497_v38, %v4499_v61  ;;  %v4539_v6 = vpop.permute.xlu1 %4538  ;;  %vm9765_vm14 = vmmov %vm9753_vm0  ;;  %v5327_v53 = vld [vmem:[%s8925_s6 + $0xe8] sm:$0xff]   ;;  %v5328_v61 = vld [vmem:[%s8925_s6 + $0x30] sm:$0xff]  }
 0x505   : > { %4618 = vmatprep.subr.bf16.mxu0 %v4549_v32  ;;  %4660 = vmatpush1.bf16.msra.mxu1 %v4550_v26  ;;  %v4565_v33 = vsel %vm9764_vm1, %v4537_v57, %v4539_v6  ;;  %vm9767_vm10 = vmmov %vm9753_vm0  ;;  %v5335_v51 = vld [vmem:[%s8925_s6 + $0xb8] sm:$0xff]  }
 0x506   : > { %4619 = vmatpush1.bf16.msra.mxu0 %v4548_v60  ;;  %4661 = vmatprep.subr.bf16.mxu1 %v4555_v52 }
 0x507   : > { %v4509_v3 = vpop.permute.xlu0 %4508 }
 0x508   : > { %v4554_v13 = vsel %vm9753_vm0, %v4509_v3, %v4511_v35  ;;  %v4553_v23 = vsel %vm9754_vm7, %v4507_v43, %v4509_v3  ;;  %v4541_v11 = vpop.permute.xlu1 %4540  ;;  %v5321_v35 = vld [vmem:[%s8925_s6 + $0x98] sm:$0xff]   ;;  %v5331_v43 = vld [vmem:[%s8925_s6 + $0xf0] sm:$0xff]  }
 0x509   : > { %4620 = vmatprep.subr.bf16.mxu0 %v4553_v23  ;;  %4662 = vmatpush1.bf16.msra.mxu1 %v4554_v13  ;;  %v4566_v21 = vsel %vm9768_vm11, %v4539_v6, %v4541_v11 }
 0x50a   : > { %4621 = vmatpush1.bf16.msra.mxu0 %v4552_v20  ;;  %4663 = vmatprep.subr.bf16.mxu1 %v4559_v28 }
 0x50b   : > { %v4517_v40 = vpop.permute.xlu0 %4516 }
 0x50c   : > { %v4556_v2 = vsel %vm9758_vm4, %v4515_v39, %v4517_v40  ;;  %v4557_v36 = vsel %vm9759_vm6, %v4517_v40, %v4519_v63  ;;  %v5329_v39 = vld [vmem:[%s8925_s6 + $0xa8] sm:$0xff]  }
 0x50d   : > { %4622 = vmatprep.subr.bf16.mxu0 %v4557_v36  ;;  %4664 = vmatpush1.bf16.msra.mxu1 %v4558_v12 }
 0x50e   : > { %4623 = vmatpush1.bf16.msra.mxu0 %v4556_v2  ;;  %4665 = vmatprep.subr.bf16.mxu1 %v4563_v30 }
 0x50f   : > { %v4529_v25 = vpop.permute.xlu0 %4528 }
 0x510   : > { %v4562_v7 = vsel %vm9761_vm9, %v4529_v25, %v4531_v17  ;;  %v4561_v45 = vsel %vm9762_vm5, %v4527_v18, %v4529_v25  ;;  %v5325_v17 = vld [vmem:[%s8925_s6 + $0xa0] sm:$0xff]  }
 0x511   : > { %4624 = vmatprep.subr.bf16.mxu0 %v4561_v45  ;;  %4666 = vmatpush1.bf16.msra.mxu1 %v4562_v7 }
 0x512   : > { %4625 = vmatpush1.bf16.msra.mxu0 %v4560_v4 }
 0x513   : > { %4626 = vmatprep.subr.bf16.mxu0 %v4565_v33  ;;  %v4535_v19 = vpop.permute.xlu0 %4534 }
 0x514   : > { %v4564_v62 = vsel %vm9765_vm14, %v4535_v19, %v4537_v57  ;;  %v5330_v57 = vld [vmem:[%s8925_s6 + $0x78] sm:$0xff]  }
 0x516   : > { %4627 = vmatpush1.bf16.msra.mxu0 %v4564_v62 }
 0x517   : > { %4628 = vmatprep.subr.bf16.mxu0 %v9766_v5  ;;  %v4543_v56 = vpop.permute.xlu0 %4542 }
 0x518   : > { %v4567_v47 = vsel %vm9767_vm10, %v4541_v11, %v4543_v56 }
 0x519   : > { %4667 = vmatprep.subr.bf16.mxu1 %v4567_v47  ;;  %v4754_v6 = vpop.permute.xlu1 %4753 }
 0x51a   : > { %4629 = vmatpush1.bf16.msra.mxu0 %v9766_v5  ;;  %4668 = vmatpush1.bf16.msra.mxu1 %v4566_v21 }
 0x51b   : > { %4630 = vmatprep.subr.bf16.mxu0 %v9766_v5  ;;  %4669 = vmatprep.subr.bf16.mxu1 %v9766_v5 }
 0x51e   : > { %4631 = vmatpush1.bf16.msra.mxu0 %v9766_v5  ;;  %4670 = vmatpush1.bf16.msra.mxu1 %v9766_v5 }
 0x51f   : > { %4671 = vmatprep.subr.bf16.mxu1 %v9766_v5  ;;  %5163 = vmatprep.subr.bf16.mxu0 %v5304_v55 }
 0x521   : > { %4633 = vmatmul.mubr.bf16.vlgmr.msra.gmra.mrb[4].mxu0 %v5125_v59 }
 0x522   : > { %4672 = vmatpush1.bf16.msra.mxu1 %v9766_v5  ;;  %5164 = vmatpush3.bf16.msra.mxu0 %v5305_v22 }
 0x523   : > { %5165 = vmatprep.subr.bf16.mxu0 %v5306_v27  ;;  %5185 = vmatprep.subr.bf16.mxu1 %v5307_v29 }
 0x525   : > { %4674 = vmatmul.mubr.bf16.vlgmr.msra.gmra.mrb[4].mxu1 %v5125_v59 }
 0x526   : > { %5166 = vmatpush3.bf16.msra.mxu0 %v5308_v42  ;;  %5186 = vmatpush3.bf16.msra.mxu1 %v5309_v1 }
 0x527   : > { %5167 = vmatprep.subr.bf16.mxu0 %v5310_v58  ;;  %5187 = vmatprep.subr.bf16.mxu1 %v5311_v44 }
 0x52a   : > { %5168 = vmatpush3.bf16.msra.mxu0 %v5312_v34  ;;  %5188 = vmatpush3.bf16.msra.mxu1 %v5313_v37 }
 0x52b   : > { %5169 = vmatprep.subr.bf16.mxu0 %v5314_v8  ;;  %5189 = vmatprep.subr.bf16.mxu1 %v5315_v14 }
 0x52e   : > { %5170 = vmatpush3.bf16.msra.mxu0 %v5316_v48  ;;  %5190 = vmatpush3.bf16.msra.mxu1 %v5317_v16 }
 0x52f   : > { %5171 = vmatprep.subr.bf16.mxu0 %v5318_v50  ;;  %5191 = vmatprep.subr.bf16.mxu1 %v5319_v24 }
 0x532   : > { %5172 = vmatpush3.bf16.msra.mxu0 %v5320_v46  ;;  %5192 = vmatpush3.bf16.msra.mxu1 %v5321_v35 }
 0x533   : > { %5173 = vmatprep.subr.bf16.mxu0 %v5322_v54  ;;  %5193 = vmatprep.subr.bf16.mxu1 %v5323_v15 }
 0x536   : > { %5174 = vmatpush3.bf16.msra.mxu0 %v5324_v41  ;;  %5194 = vmatpush3.bf16.msra.mxu1 %v5325_v17 }
 0x537   : > { %5175 = vmatprep.subr.bf16.mxu0 %v5326_v0  ;;  %5195 = vmatprep.subr.bf16.mxu1 %v5327_v53 }
 0x53a   : > { %5176 = vmatpush3.bf16.msra.mxu0 %v5328_v61  ;;  %5196 = vmatpush3.bf16.msra.mxu1 %v5329_v39 }
 0x53b   : > { %5177 = vmatprep.subr.bf16.mxu0 %v5330_v57  ;;  %5197 = vmatprep.subr.bf16.mxu1 %v5331_v43 }
 0x53e   : > { %5178 = vmatpush3.bf16.msra.mxu0 %v5332_v49  ;;  %5198 = vmatpush3.bf16.msra.mxu1 %v5333_v31 }
 0x53f   : > { %5199 = vmatprep.subr.bf16.mxu1 %v5334_v9 }
 0x542   : > { %5200 = vmatpush3.bf16.msra.mxu1 %v5335_v51 }
 0x5f4   : > { %v4634_v10 = vpop.f32.mrb[4].mxu0 }
 0x5f5   : > { %v4682_v63 = vpack.c.bf16 %v4634_v10, %v4634_v10  ;;  %v4636_v38 = vpop.f32.mrb[5].mxu0 }
 0x5f6   : > { %v4683_v26 = vpack.c.bf16 %v4636_v38, %v4636_v38  ;;  %v4638_v60 = vpop.f32.mrb[6].mxu0 }
 0x5f7   : > { %v4639_v32 = vpop.f32.mrb[7].mxu0 }
 0x5f8   : > { %v4675_v52 = vpop.f32.mrb[4].mxu1  ;;  %4980 = vmatprep.mubr.bf16.mxu0 %v4683_v26 }
 0x5f9   : > { %v4677_v3 = vpop.f32.mrb[5].mxu1  ;;  %4981 = vmatmul.mubr.bf16.vlgmr.msra.gmra.mrb[8].mxu0 %v4682_v63  ;;  %v4684_v20 = vpack.c.bf16 %v4675_v52, %v4675_v52 }
 0x5fa   : > { %v4685_v13 = vpack.c.bf16 %v4677_v3, %v4677_v3  ;;  %v4679_v23 = vpop.f32.mrb[6].mxu1 }
 0x5fb   : > { %v4680_v18 = vpop.f32.mrb[7].mxu1 }
 0x5fc   : > { %5020 = vmatprep.mubr.bf16.mxu1 %v4685_v13 }
 0x5fd   : > { %5021 = vmatmul.mubr.bf16.vlgmr.msra.gmra.mrb[8].mxu1 %v4684_v20 }
 0x6cc   : > { %v5179_v28 = vpop.f32.mrb[8].mxu0 }
 0x6cd   : > { %v5180_v40 = vpop.f32.mrb[9].mxu0 }
 0x6ce   : > { %v5181_v12 = vadd.f32 %v5180_v40, %v5179_v28  ;;  %v5182_v2 = vpop.f32.mrb[10].mxu0 }
 0x6cf   : > { %v5183_v36 = vpop.f32.mrb[11].mxu0 }
 0x6d0   : > { %v5201_v30 = vpop.f32.mrb[8].mxu1  ;;  %v4983_v7 = vadd.f32 %v5181_v12, %v4754_v6 }
 0x6d1   : > { %v5202_v25 = vpop.f32.mrb[9].mxu1 }
 0x6d2   : > { %v5203_v45 = vadd.f32 %v5202_v25, %v5201_v30  ;;  %v5204_v4 = vpop.f32.mrb[10].mxu1 }
 0x6d3   : > { %v5205_v33 = vpop.f32.mrb[11].mxu1 }
 0x6d4   : > { %v5023_v19 = vadd.f32 %v5203_v45, %v4983_v7 }
 0x6d6   : > { %5029 = vst.msk [vmem:[%s271_s9] sm:$0xff] %vm810_vm15, %v5023_v19 }
 0x6d7   : > { %5352 = shalt.err (!%p5349_p3)
}
 0x6d8   : > { %s5353_s22 = scalar_lea.hbm %s8876_s17, 128  ;;  %s5357_s18 = scalar_lea.hbm %s8926_s7, 256 }
 0x6d9   : > { %p5354_p4 = scmp.ne.s32.totalorder %s8876_s17, %s5353_s22  ;;  %p5358_p9 = scmp.lt.u32.totalorder %s8876_s17, %s8926_s7 }
 0x6da   : > { %p5359_p10 = scmp.lt.u32.totalorder %s5357_s18, %s5353_s22  ;;  %p5361_p12 = scmp.lt.u32.totalorder %s5353_s22, %s8876_s17 }
 0x6db   : > { %p5355_p7 = pnand %p5354_p4, %p5518_p5 }
 0x6dc   : > { %p5360_p11 = por %p5359_p10, %p5358_p9 }
 0x6dd   : > { %p5356_p8 = pneg %p5355_p7 }
 0x6de   : > { %p5362_p13 = por %p5361_p12, %p5360_p11 }
 0x6e0   : > { %p5363_p0 = pnand %p5362_p13, %p5356_p8 }
 0x6e2   : > { %5366 = shalt.err (!%p5363_p0)
}
 0x6e3   : > { %5208 = dma.vmem_to_hbm [thread:$0]  (%p5518_p5), %s8878_s8, 128, %s8876_s17, %s5031_s28  }
 0x6e4 PF: > { %p5214_p1 = scmp.ge.s32.totalorder %s5401_s27, 2  ;;  %s5056_s19 = sand.u32 1, %s5389_s24  }
 0x6e5   : > { %s5057_s20 = scalar_lea.sflag [#allocation3], %s5056_s19 }
 0x6e6   : > { %p5211_p2 = pnand %p5214_p1, %p5522_p6 }
 0x6e8   : > { %5384 = dma.done.wait (!%p5211_p2), %s5057_s20, 128  }
 0x6e9   : > { %5386 = vsyncadd (!%p5211_p2), %s5057_s20, 4294967168  ;;  %p17_p3 = scmp.ge.s32.totalorder %s5505_s30, 4   ;;  %s9769_s24 = smov %s5393_s25 }
 0x6ea   : > { %s9770_s25 = smov %s5397_s26  ;;  %s9771_s26 = smov %s5516_s10 }
 0x6eb   : > { %s9772_s27 = smov %s5505_s30  ;;  %19 = sbr.rel (!%p17_p3) target bundleno = 3 (0x3), region = 83 }
 0x6f2   :  { %5062 = vsyncpa [#allocation3], 1 }
 0x6f3   :  { %5064 = vsyncpa [#allocation3 + $0x1], 1 }

</bundles_post_ra>
